<compile_context>
chip_gen: v7x
topology: tpu7x:2x2x1
jax: 0.10.0
libtpu: 0.0.40
codegen_flags: <defaults>
</compile_context>

<pallas_src>
import functools

import jax
import jax.numpy as jnp
from jax.experimental import pallas as pl
from jax.experimental.pallas import tpu as pltpu


def _pick_tile(n, cap, unit):
    """Largest t <= cap with n % t == 0 and (t == n or t % unit == 0)."""
    if n <= cap:
        return n
    t = (cap // unit) * unit
    while t >= unit:
        if n % t == 0:
            return t
        t -= unit
    return n  # fall back to the full (always-legal) dimension


# ----------------------------- Pallas kernels ------------------------------

def _matmul_kernel(x_ref, w_ref, o_ref):
    o_ref[...] = jnp.dot(x_ref[...], w_ref[...],
                         preferred_element_type=jnp.float32)


def matmul_bf16(x, w):
    """x: (M, K) bf16, w: (K, NN) bf16 -> (M, NN) f32 (MXU-native operands)."""
    M, K = x.shape
    NN = w.shape[1]
    tm = _pick_tile(M, 512, 8)
    tn = _pick_tile(NN, 1024, 128)
    return pl.pallas_call(
        _matmul_kernel,
        out_shape=jax.ShapeDtypeStruct((M, NN), jnp.float32),
        grid_spec=pltpu.PrefetchScalarGridSpec(
            num_scalar_prefetch=0,
            grid=(M // tm, NN // tn),
            in_specs=[
                pl.BlockSpec((tm, K), lambda i, j: (i, 0)),
                pl.BlockSpec((K, tn), lambda i, j: (0, j)),
            ],
            out_specs=pl.BlockSpec((tm, tn), lambda i, j: (i, j)),
        ),
        compiler_params=pltpu.CompilerParams(
            dimension_semantics=("parallel", "parallel")),
    )(x, w)


def _bn_stats_kernel(x_ref, sum_ref, sq_ref):
    @pl.when(pl.program_id(0) == 0)
    def _():
        sum_ref[...] = jnp.zeros_like(sum_ref)
        sq_ref[...] = jnp.zeros_like(sq_ref)

    x = x_ref[...]
    sum_ref[...] += jnp.sum(x, axis=0, keepdims=True)
    sq_ref[...] += jnp.sum(x * x, axis=0, keepdims=True)


def bn_stats(x):
    """x: (R, L) f32 -> per-lane (sum, sum_sq), each (1, L) f32."""
    R, L = x.shape
    tr = _pick_tile(R, 1024, 8)
    return pl.pallas_call(
        _bn_stats_kernel,
        out_shape=(jax.ShapeDtypeStruct((1, L), jnp.float32),
                   jax.ShapeDtypeStruct((1, L), jnp.float32)),
        grid_spec=pltpu.PrefetchScalarGridSpec(
            num_scalar_prefetch=0,
            grid=(R // tr,),
            in_specs=[pl.BlockSpec((tr, L), lambda i: (i, 0))],
            out_specs=(pl.BlockSpec((1, L), lambda i: (0, 0)),
                       pl.BlockSpec((1, L), lambda i: (0, 0))),
        ),
        compiler_params=pltpu.CompilerParams(
            dimension_semantics=("arbitrary",)),
    )(x)


def _affine_act_kernel(x_ref, scale_ref, shift_ref, o_ref, *, activation):
    y = x_ref[...] * scale_ref[...] + shift_ref[...]   # f32 elementwise math
    if activation == "relu":
        y = jnp.maximum(y, 0.0)
    elif activation == "tanh":
        y = jnp.tanh(y)
    o_ref[...] = y.astype(o_ref.dtype)


def affine_act(x, scale, shift, activation, out_dtype):
    """Fused y = act(x * scale + shift) on a lane-dense (R, L) slab."""
    R, L = x.shape
    tr = _pick_tile(R, 1024, 8)
    return pl.pallas_call(
        functools.partial(_affine_act_kernel, activation=activation),
        out_shape=jax.ShapeDtypeStruct((R, L), out_dtype),
        grid_spec=pltpu.PrefetchScalarGridSpec(
            num_scalar_prefetch=0,
            grid=(R // tr,),
            in_specs=[
                pl.BlockSpec((tr, L), lambda i: (i, 0)),
                pl.BlockSpec((1, L), lambda i: (0, 0)),
                pl.BlockSpec((1, L), lambda i: (0, 0)),
            ],
            out_specs=pl.BlockSpec((tr, L), lambda i: (i, 0)),
        ),
        compiler_params=pltpu.CompilerParams(
            dimension_semantics=("parallel",)),
    )(x, scale, shift)


# ------------------------------- JAX glue -----------------------------------

def conv_transpose_cols(x_rows_bf16, w_pt):
    """Per-input-pixel tap products: (N*H*W, Ci) @ (Ci, 16*Co) -> (M, 16*Co) f32.

    w_pt is PyTorch ConvTranspose2d layout (Cin, Cout, kH, kW); output columns
    are ordered (kh, kw, co)."""
    Ci, Co, k, _ = w_pt.shape
    wm = jnp.transpose(w_pt, (0, 2, 3, 1)).reshape(Ci, k * k * Co)
    return matmul_bf16(x_rows_bf16, wm.astype(jnp.bfloat16))


def _col2im_stride2(y_cols, N, H, W, Co):
    """Overlap-add for ConvTranspose2d(k=4, stride=2, pad=1).

    y[n, 2i+r, 2j+c, co] = sum_{dh,dw in {0,1}} Yp[n, i+r+dh, j+c+dw,
                                                  3-r-2dh, 3-c-2dw, co]
    where Yp is y_cols reshaped to (N,H,W,4,4,Co) and spatially zero-padded."""
    Y = y_cols.reshape(N, H, W, 4, 4, Co)
    Yp = jnp.pad(Y, ((0, 0), (1, 1), (1, 1), (0, 0), (0, 0), (0, 0)))
    phases = []
    for r in range(2):
        for c in range(2):
            acc = None
            for dh in range(2):
                for dw in range(2):
                    kh = 3 - r - 2 * dh
                    kw = 3 - c - 2 * dw
                    sl = Yp[:, r + dh:r + dh + H, c + dw:c + dw + W, kh, kw, :]
                    acc = sl if acc is None else acc + sl
            phases.append(acc)                           # (N, H, W, Co)
    p = jnp.stack(phases, axis=0).reshape(2, 2, N, H, W, Co)
    out = jnp.transpose(p, (2, 3, 0, 4, 1, 5))           # (N, H, r, W, c, Co)
    return out.reshape(N, 2 * H, 2 * W, Co)


def bn_relu_block(slab, W, C, gamma, beta, eps=1e-5):
    """Training-mode BatchNorm2d + ReLU on a lane-dense (N*H, W*C) slab.

    Returns a bf16 slab of the same shape (feeds the next bf16 matmul)."""
    R = slab.shape[0]
    s_wc, sq_wc = bn_stats(slab)
    s = s_wc.reshape(W, C).sum(axis=0)
    sq = sq_wc.reshape(W, C).sum(axis=0)
    m = float(R * W)                                     # = N*H*W samples/chan
    mean = s / m
    var = sq / m - mean * mean
    scale = gamma / jnp.sqrt(var + eps)
    shift = beta - mean * scale
    scale_wc = jnp.tile(scale, W).reshape(1, W * C)
    shift_wc = jnp.tile(shift, W).reshape(1, W * C)
    return affine_act(slab, scale_wc, shift_wc, "relu", jnp.bfloat16)


# ------------------------------ Generator -----------------------------------

def init_params(key, d=16):
    """weight_init(mean=0, std=0.02), zero biases, BN gamma=1 / beta=0."""
    specs = [
        ("deconv1", 100, d * 8),
        ("deconv2", d * 8, d * 4),
        ("deconv3", d * 4, d * 2),
        ("deconv4", d * 2, d),
        ("deconv5", d, 3),
    ]
    params = {}
    for name, ci, co in specs:
        key, wk = jax.random.split(key)
        params[name + "_w"] = 0.02 * jax.random.normal(
            wk, (ci, co, 4, 4), jnp.float32)
        params[name + "_b"] = jnp.zeros((co,), jnp.float32)
        if name != "deconv5":
            params[name + "_gamma"] = jnp.ones((co,), jnp.float32)
            params[name + "_beta"] = jnp.zeros((co,), jnp.float32)
    return params


def generator_forward(params, z_nchw):
    """z_nchw: (N, 100, 1, 1) -> (N, 3, 64, 64), matching the PyTorch module."""
    N = z_nchw.shape[0]

    # --- deconv1 (stride 1, pad 0, 1x1 input): pure dense layer, oh=kh, ow=kw.
    x = jnp.transpose(z_nchw, (0, 2, 3, 1)).reshape(N, -1).astype(jnp.bfloat16)
    w1 = params["deconv1_w"]
    C = w1.shape[1]
    y = conv_transpose_cols(x, w1)                       # (N, 16*C) f32
    H = W = 4
    slab = y.reshape(N * H, W * C)                       # lane-dense (N*H, W*C)
    # conv bias cancels exactly under training-mode BN (and is 0 at init).
    slab = bn_relu_block(slab, W, C,
                         params["deconv1_gamma"], params["deconv1_beta"])

    # --- deconv2..deconv4 (stride 2, pad 1) + BN + ReLU.
    for idx in (2, 3, 4):
        w = params[f"deconv{idx}_w"]
        Ci, Co = w.shape[0], w.shape[1]
        x_rows = slab.reshape(N * H * W, Ci)             # contiguous reshape
        y_cols = conv_transpose_cols(x_rows, w)          # (N*H*W, 16*Co) f32
        y = _col2im_stride2(y_cols, N, H, W, Co)         # (N, 2H, 2W, Co)
        H, W = 2 * H, 2 * W
        slab = y.reshape(N * H, W * Co)
        slab = bn_relu_block(slab, W, Co,
                             params[f"deconv{idx}_gamma"],
                             params[f"deconv{idx}_beta"])

    # --- deconv5 (stride 2, pad 1) + bias + tanh.  Pad Co 3->8 so the matmul
    #     output (16*Co) and the tanh slab stay lane-dense.
    w5 = params["deconv5_w"]
    b5 = params["deconv5_b"]
    Ci, Co = w5.shape[0], w5.shape[1]
    Cp = Co if Co >= 8 else 8
    w5p = jnp.pad(w5, ((0, 0), (0, Cp - Co), (0, 0), (0, 0)))
    b5p = jnp.pad(b5, (0, Cp - Co))
    x_rows = slab.reshape(N * H * W, Ci)
    y_cols = conv_transpose_cols(x_rows, w5p)            # (N*H*W, 16*Cp) f32
    y = _col2im_stride2(y_cols, N, H, W, Cp)             # (N, 2H, 2W, Cp)
    H, W = 2 * H, 2 * W
    slab = y.reshape(N * H, W * Cp)
    ones = jnp.ones((1, W * Cp), jnp.float32)
    shift = jnp.tile(b5p, W).reshape(1, W * Cp)
    out = affine_act(slab, ones, shift, "tanh", jnp.float32)
    out = out.reshape(N, H, W, Cp)[..., :Co]
    return jnp.transpose(out, (0, 3, 1, 2))              # back to NCHW


# ----------------------- pure-JAX f32 reference (check) ---------------------

def _reference_forward(params, z_nchw):
    """Zero-dilate + pad + im2col + f32 matmul reference of the same module."""
    def convt(x, w_pt, b, stride, pad):
        Ci, Co, k, _ = w_pt.shape
        N, Hh, Ww, Cc = x.shape
        if stride > 1:
            xd = jnp.zeros((N, (Hh - 1) * stride + 1, (Ww - 1) * stride + 1, Cc),
                           x.dtype)
            xd = xd.at[:, ::stride, ::stride, :].set(x)
        else:
            xd = x
        pe = k - 1 - pad
        xp = jnp.pad(xd, ((0, 0), (pe, pe), (pe, pe), (0, 0)))
        OH, OW = xp.shape[1] - k + 1, xp.shape[2] - k + 1
        cols = [xp[:, kh:kh + OH, kw:kw + OW, :]
                for kh in range(k) for kw in range(k)]
        patches = jnp.stack(cols, axis=3).reshape(N * OH * OW, k * k * Cc)
        wf = jnp.transpose(jnp.flip(w_pt, (2, 3)), (2, 3, 0, 1)).reshape(
            k * k * Ci, Co)
        return (patches @ wf + b).reshape(N, OH, OW, Co)

    def bnrelu(x, g, bta, eps=1e-5):
        m = x.mean((0, 1, 2))
        v = ((x - m) ** 2).mean((0, 1, 2))
        return jnp.maximum((x - m) / jnp.sqrt(v + eps) * g + bta, 0.0)

    x = jnp.transpose(z_nchw, (0, 2, 3, 1)).astype(jnp.float32)
    x = bnrelu(convt(x, params["deconv1_w"], params["deconv1_b"], 1, 0),
               params["deconv1_gamma"], params["deconv1_beta"])
    x = bnrelu(convt(x, params["deconv2_w"], params["deconv2_b"], 2, 1),
               params["deconv2_gamma"], params["deconv2_beta"])
    x = bnrelu(convt(x, params["deconv3_w"], params["deconv3_b"], 2, 1),
               params["deconv3_gamma"], params["deconv3_beta"])
    x = bnrelu(convt(x, params["deconv4_w"], params["deconv4_b"], 2, 1),
               params["deconv4_gamma"], params["deconv4_beta"])
    x = jnp.tanh(convt(x, params["deconv5_w"], params["deconv5_b"], 2, 1))
    return jnp.transpose(x, (0, 3, 1, 2))


if __name__ == "__main__":
    key = jax.random.PRNGKey(0)
    pkey, zkey = jax.random.split(key)
    d = 16                                    # small width (reference default 128)
    params = init_params(pkey, d=d)
    z = jax.random.normal(zkey, (2, 100, 1, 1), jnp.float32)

    out = jax.block_until_ready(jax.jit(generator_forward)(params, z))

    assert out.shape == (2, 3, 64, 64), out.shape
    assert bool(jnp.all(jnp.isfinite(out)))
    assert bool(jnp.all(jnp.abs(out) <= 1.0 + 1e-6))      # tanh range

    # Cross-check the Pallas pipeline (bf16 MXU operands) against an f32
    # XLA reference of the identical module.
    ref = jax.block_until_ready(jax.jit(_reference_forward)(params, z))
    err = float(jnp.max(jnp.abs(out - ref)))
    assert err < 3e-2, f"max abs deviation from f32 reference: {err}"

    print("KERNEL_OK")
</pallas_src>

<mosaic_0001>
module attributes {stable_mosaic.version = 11 : i64} {
  func.func @_matmul_kernel(%arg0: i32, %arg1: i32, %arg2: memref<2x100xbf16, #tpu.memory_space<vmem>>, %arg3: memref<100x1024xbf16, #tpu.memory_space<vmem>>, %arg4: memref<2x1024xf32, #tpu.memory_space<vmem>>) attributes {dimension_semantics = [#tpu.dimension_semantics<parallel>, #tpu.dimension_semantics<parallel>], iteration_bounds = array<i64: 1, 2>, scalar_prefetch = 0 : i64, scratch_operands = 0 : i64, tpu.core_type = #tpu.core_type<tc>, window_params = [{transform_indices = @transform_0, window_bounds = array<i64: 2, 100>}, {transform_indices = @transform_1, window_bounds = array<i64: 100, 1024>}, {transform_indices = @transform_2, window_bounds = array<i64: 2, 1024>}]} {
    %c0 = arith.constant 0 : index
    %c0_0 = arith.constant 0 : index
    %0 = vector.load %arg2[%c0, %c0_0] : memref<2x100xbf16, #tpu.memory_space<vmem>>, vector<2x100xbf16>
    %c0_1 = arith.constant 0 : index
    %c0_2 = arith.constant 0 : index
    %1 = vector.load %arg3[%c0_1, %c0_2] : memref<100x1024xbf16, #tpu.memory_space<vmem>>, vector<100x1024xbf16>
    %cst = arith.constant dense<0.000000e+00> : vector<2x1024xf32>
    %2 = tpu.matmul %0, %1, %cst {dimension_numbers = #tpu.dot_dimension_numbers<[1], [0], [0], [1], [0, 0, 1, 1], [], []>} : vector<2x100xbf16>, vector<100x1024xbf16>, vector<2x1024xf32> -> vector<2x1024xf32>
    %c0_3 = arith.constant 0 : index
    %c0_4 = arith.constant 0 : index
    %3 = vector.load %arg4[%c0_3, %c0_4] : memref<2x1024xf32, #tpu.memory_space<vmem>>, vector<2x1024xf32>
    tpu.vector_store %arg4[%c0_3, %c0_4], %2 {strides = array<i32>} : memref<2x1024xf32, #tpu.memory_space<vmem>>, vector<2x1024xf32>,
    return
  }
  func.func @transform_0(%arg0: i32, %arg1: i32) -> (i32, i32) {
    %c0_i32 = arith.constant 0 : i32
    %c0_i32_0 = arith.constant 0 : i32
    return %arg0, %c0_i32 : i32, i32
  }
  func.func @transform_1(%arg0: i32, %arg1: i32) -> (i32, i32) {
    %c0_i32 = arith.constant 0 : i32
    %c0_i32_0 = arith.constant 0 : i32
    return %c0_i32, %arg1 : i32, i32
  }
  func.func @transform_2(%arg0: i32, %arg1: i32) -> (i32, i32) {
    %c0_i32 = arith.constant 0 : i32
    return %arg0, %arg1 : i32, i32
  }
}

module attributes {stable_mosaic.version = 11 : i64} {
  func.func @_bn_stats_kernel(%arg0: i32, %arg1: memref<8x512xf32, #tpu.memory_space<vmem>>, %arg2: memref<1x512xf32, #tpu.memory_space<vmem>>, %arg3: memref<1x512xf32, #tpu.memory_space<vmem>>) attributes {dimension_semantics = [#tpu.dimension_semantics<arbitrary>], iteration_bounds = array<i64: 1>, scalar_prefetch = 0 : i64, scratch_operands = 0 : i64, tpu.core_type = #tpu.core_type<tc>, window_params = [{transform_indices = @transform_0, window_bounds = array<i64: 8, 512>}, {pipeline_mode = #tpu.pipeline_mode<synchronous>, transform_indices = @transform_1, window_bounds = array<i64: 1, 512>}, {pipeline_mode = #tpu.pipeline_mode<synchronous>, transform_indices = @transform_2, window_bounds = array<i64: 1, 512>}]} {
    %c0_i32 = arith.constant 0 : i32
    %0 = arith.cmpi eq, %arg0, %c0_i32 : i32
    %1 = arith.extui %0 : i1 to i32
    %c0_i32_0 = arith.constant 0 : i32
    %2 = arith.cmpi ne, %1, %c0_i32_0 : i32
    scf.if %2 {
      %cst_11 = arith.constant 0.000000e+00 : f32
      %15 = vector.broadcast %cst_11 : f32 to vector<1x512xf32>
      %c0_12 = arith.constant 0 : index
      %c0_13 = arith.constant 0 : index
      %16 = vector.load %arg2[%c0_12, %c0_13] : memref<1x512xf32, #tpu.memory_space<vmem>>, vector<1x512xf32>
      tpu.vector_store %arg2[%c0_12, %c0_13], %15 {strides = array<i32>} : memref<1x512xf32, #tpu.memory_space<vmem>>, vector<1x512xf32>,
      %cst_14 = arith.constant 0.000000e+00 : f32
      %17 = vector.broadcast %cst_14 : f32 to vector<1x512xf32>
      %c0_15 = arith.constant 0 : index
      %c0_16 = arith.constant 0 : index
      %18 = vector.load %arg3[%c0_15, %c0_16] : memref<1x512xf32, #tpu.memory_space<vmem>>, vector<1x512xf32>
      tpu.vector_store %arg3[%c0_15, %c0_16], %17 {strides = array<i32>} : memref<1x512xf32, #tpu.memory_space<vmem>>, vector<1x512xf32>,
    } else {
    }
    %c0 = arith.constant 0 : index
    %c0_1 = arith.constant 0 : index
    %3 = vector.load %arg1[%c0, %c0_1] : memref<8x512xf32, #tpu.memory_space<vmem>>, vector<8x512xf32>
    %c0_2 = arith.constant 0 : index
    %c0_3 = arith.constant 0 : index
    %4 = vector.load %arg2[%c0_2, %c0_3] : memref<1x512xf32, #tpu.memory_space<vmem>>, vector<1x512xf32>
    %cst = arith.constant dense<0.000000e+00> : vector<512xf32>
    %5 = vector.multi_reduction <add>, %3, %cst [0] : vector<8x512xf32> to vector<512xf32>
    %6 = vector.shape_cast %5 : vector<512xf32> to vector<1x512xf32>
    %7 = arith.addf %4, %6 : vector<1x512xf32>
    %c0_4 = arith.constant 0 : index
    %c0_5 = arith.constant 0 : index
    %8 = vector.load %arg2[%c0_4, %c0_5] : memref<1x512xf32, #tpu.memory_space<vmem>>, vector<1x512xf32>
    tpu.vector_store %arg2[%c0_4, %c0_5], %7 {strides = array<i32>} : memref<1x512xf32, #tpu.memory_space<vmem>>, vector<1x512xf32>,
    %c0_6 = arith.constant 0 : index
    %c0_7 = arith.constant 0 : index
    %9 = vector.load %arg3[%c0_6, %c0_7] : memref<1x512xf32, #tpu.memory_space<vmem>>, vector<1x512xf32>
    %10 = arith.mulf %3, %3 : vector<8x512xf32>
    %cst_8 = arith.constant dense<0.000000e+00> : vector<512xf32>
    %11 = vector.multi_reduction <add>, %10, %cst_8 [0] : vector<8x512xf32> to vector<512xf32>
    %12 = vector.shape_cast %11 : vector<512xf32> to vector<1x512xf32>
    %13 = arith.addf %9, %12 : vector<1x512xf32>
    %c0_9 = arith.constant 0 : index
    %c0_10 = arith.constant 0 : index
    %14 = vector.load %arg3[%c0_9, %c0_10] : memref<1x512xf32, #tpu.memory_space<vmem>>, vector<1x512xf32>
    tpu.vector_store %arg3[%c0_9, %c0_10], %13 {strides = array<i32>} : memref<1x512xf32, #tpu.memory_space<vmem>>, vector<1x512xf32>,
    return
  }
  func.func @transform_0(%arg0: i32) -> (i32, i32) {
    %c0_i32 = arith.constant 0 : i32
    %c0_i32_0 = arith.constant 0 : i32
    return %arg0, %c0_i32 : i32, i32
  }
  func.func @transform_1(%arg0: i32) -> (i32, i32) {
    %c0_i32 = arith.constant 0 : i32
    %c0_i32_0 = arith.constant 0 : i32
    %c0_i32_1 = arith.constant 0 : i32
    return %c0_i32, %c0_i32_0 : i32, i32
  }
  func.func @transform_2(%arg0: i32) -> (i32, i32) {
    %c0_i32 = arith.constant 0 : i32
    %c0_i32_0 = arith.constant 0 : i32
    %c0_i32_1 = arith.constant 0 : i32
    return %c0_i32, %c0_i32_0 : i32, i32
  }
}

module attributes {stable_mosaic.version = 11 : i64} {
  func.func @_affine_act_kernel(%arg0: i32, %arg1: memref<8x512xf32, #tpu.memory_space<vmem>>, %arg2: memref<1x512xf32, #tpu.memory_space<vmem>>, %arg3: memref<1x512xf32, #tpu.memory_space<vmem>>, %arg4: memref<8x512xbf16, #tpu.memory_space<vmem>>) attributes {dimension_semantics = [#tpu.dimension_semantics<parallel>], iteration_bounds = array<i64: 1>, scalar_prefetch = 0 : i64, scratch_operands = 0 : i64, tpu.core_type = #tpu.core_type<tc>, window_params = [{transform_indices = @transform_0, window_bounds = array<i64: 8, 512>}, {pipeline_mode = #tpu.pipeline_mode<synchronous>, transform_indices = @transform_1, window_bounds = array<i64: 1, 512>}, {pipeline_mode = #tpu.pipeline_mode<synchronous>, transform_indices = @transform_2, window_bounds = array<i64: 1, 512>}, {transform_indices = @transform_3, window_bounds = array<i64: 8, 512>}]} {
    %c0 = arith.constant 0 : index
    %c0_0 = arith.constant 0 : index
    %0 = vector.load %arg1[%c0, %c0_0] : memref<8x512xf32, #tpu.memory_space<vmem>>, vector<8x512xf32>
    %c0_1 = arith.constant 0 : index
    %c0_2 = arith.constant 0 : index
    %1 = vector.load %arg2[%c0_1, %c0_2] : memref<1x512xf32, #tpu.memory_space<vmem>>, vector<1x512xf32>
    %2 = vector.broadcast %1 : vector<1x512xf32> to vector<8x512xf32>
    %3 = arith.mulf %0, %2 : vector<8x512xf32>
    %c0_3 = arith.constant 0 : index
    %c0_4 = arith.constant 0 : index
    %4 = vector.load %arg3[%c0_3, %c0_4] : memref<1x512xf32, #tpu.memory_space<vmem>>, vector<1x512xf32>
    %5 = vector.broadcast %4 : vector<1x512xf32> to vector<8x512xf32>
    %6 = arith.addf %3, %5 : vector<8x512xf32>
    %cst = arith.constant 0.000000e+00 : f32
    %7 = vector.broadcast %cst : f32 to vector<8x512xf32>
    %8 = arith.maximumf %6, %7 : vector<8x512xf32>
    %9 = arith.truncf %8 : vector<8x512xf32> to vector<8x512xbf16>
    %c0_5 = arith.constant 0 : index
    %c0_6 = arith.constant 0 : index
    %10 = vector.load %arg4[%c0_5, %c0_6] : memref<8x512xbf16, #tpu.memory_space<vmem>>, vector<8x512xbf16>
    tpu.vector_store %arg4[%c0_5, %c0_6], %9 {strides = array<i32>} : memref<8x512xbf16, #tpu.memory_space<vmem>>, vector<8x512xbf16>,
    return
  }
  func.func @transform_0(%arg0: i32) -> (i32, i32) {
    %c0_i32 = arith.constant 0 : i32
    %c0_i32_0 = arith.constant 0 : i32
    return %arg0, %c0_i32 : i32, i32
  }
  func.func @transform_1(%arg0: i32) -> (i32, i32) {
    %c0_i32 = arith.constant 0 : i32
    %c0_i32_0 = arith.constant 0 : i32
    %c0_i32_1 = arith.constant 0 : i32
    return %c0_i32, %c0_i32_0 : i32, i32
  }
  func.func @transform_2(%arg0: i32) -> (i32, i32) {
    %c0_i32 = arith.constant 0 : i32
    %c0_i32_0 = arith.constant 0 : i32
    %c0_i32_1 = arith.constant 0 : i32
    return %c0_i32, %c0_i32_0 : i32, i32
  }
  func.func @transform_3(%arg0: i32) -> (i32, i32) {
    %c0_i32 = arith.constant 0 : i32
    %c0_i32_0 = arith.constant 0 : i32
    return %arg0, %c0_i32 : i32, i32
  }
}

module attributes {stable_mosaic.version = 11 : i64} {
  func.func @_matmul_kernel(%arg0: i32, %arg1: i32, %arg2: memref<32x128xbf16, #tpu.memory_space<vmem>>, %arg3: memref<128x1024xbf16, #tpu.memory_space<vmem>>, %arg4: memref<32x1024xf32, #tpu.memory_space<vmem>>) attributes {dimension_semantics = [#tpu.dimension_semantics<parallel>, #tpu.dimension_semantics<parallel>], iteration_bounds = array<i64: 1, 1>, scalar_prefetch = 0 : i64, scratch_operands = 0 : i64, tpu.core_type = #tpu.core_type<tc>, window_params = [{transform_indices = @transform_0, window_bounds = array<i64: 32, 128>}, {transform_indices = @transform_1, window_bounds = array<i64: 128, 1024>}, {transform_indices = @transform_2, window_bounds = array<i64: 32, 1024>}]} {
    %c0 = arith.constant 0 : index
    %c0_0 = arith.constant 0 : index
    %0 = vector.load %arg2[%c0, %c0_0] : memref<32x128xbf16, #tpu.memory_space<vmem>>, vector<32x128xbf16>
    %c0_1 = arith.constant 0 : index
    %c0_2 = arith.constant 0 : index
    %1 = vector.load %arg3[%c0_1, %c0_2] : memref<128x1024xbf16, #tpu.memory_space<vmem>>, vector<128x1024xbf16>
    %cst = arith.constant dense<0.000000e+00> : vector<32x1024xf32>
    %2 = tpu.matmul %0, %1, %cst {dimension_numbers = #tpu.dot_dimension_numbers<[1], [0], [0], [1], [0, 0, 1, 1], [], []>} : vector<32x128xbf16>, vector<128x1024xbf16>, vector<32x1024xf32> -> vector<32x1024xf32>
    %c0_3 = arith.constant 0 : index
    %c0_4 = arith.constant 0 : index
    %3 = vector.load %arg4[%c0_3, %c0_4] : memref<32x1024xf32, #tpu.memory_space<vmem>>, vector<32x1024xf32>
    tpu.vector_store %arg4[%c0_3, %c0_4], %2 {strides = array<i32>} : memref<32x1024xf32, #tpu.memory_space<vmem>>, vector<32x1024xf32>,
    return
  }
  func.func @transform_0(%arg0: i32, %arg1: i32) -> (i32, i32) {
    %c0_i32 = arith.constant 0 : i32
    %c0_i32_0 = arith.constant 0 : i32
    return %arg0, %c0_i32 : i32, i32
  }
  func.func @transform_1(%arg0: i32, %arg1: i32) -> (i32, i32) {
    %c0_i32 = arith.constant 0 : i32
    %c0_i32_0 = arith.constant 0 : i32
    return %c0_i32, %arg1 : i32, i32
  }
  func.func @transform_2(%arg0: i32, %arg1: i32) -> (i32, i32) {
    %c0_i32 = arith.constant 0 : i32
    return %arg0, %arg1 : i32, i32
  }
}

module attributes {stable_mosaic.version = 11 : i64} {
  func.func @_bn_stats_kernel(%arg0: i32, %arg1: memref<16x512xf32, #tpu.memory_space<vmem>>, %arg2: memref<1x512xf32, #tpu.memory_space<vmem>>, %arg3: memref<1x512xf32, #tpu.memory_space<vmem>>) attributes {dimension_semantics = [#tpu.dimension_semantics<arbitrary>], iteration_bounds = array<i64: 1>, scalar_prefetch = 0 : i64, scratch_operands = 0 : i64, tpu.core_type = #tpu.core_type<tc>, window_params = [{transform_indices = @transform_0, window_bounds = array<i64: 16, 512>}, {pipeline_mode = #tpu.pipeline_mode<synchronous>, transform_indices = @transform_1, window_bounds = array<i64: 1, 512>}, {pipeline_mode = #tpu.pipeline_mode<synchronous>, transform_indices = @transform_2, window_bounds = array<i64: 1, 512>}]} {
    %c0_i32 = arith.constant 0 : i32
    %0 = arith.cmpi eq, %arg0, %c0_i32 : i32
    %1 = arith.extui %0 : i1 to i32
    %c0_i32_0 = arith.constant 0 : i32
    %2 = arith.cmpi ne, %1, %c0_i32_0 : i32
    scf.if %2 {
      %cst_11 = arith.constant 0.000000e+00 : f32
      %15 = vector.broadcast %cst_11 : f32 to vector<1x512xf32>
      %c0_12 = arith.constant 0 : index
      %c0_13 = arith.constant 0 : index
      %16 = vector.load %arg2[%c0_12, %c0_13] : memref<1x512xf32, #tpu.memory_space<vmem>>, vector<1x512xf32>
      tpu.vector_store %arg2[%c0_12, %c0_13], %15 {strides = array<i32>} : memref<1x512xf32, #tpu.memory_space<vmem>>, vector<1x512xf32>,
      %cst_14 = arith.constant 0.000000e+00 : f32
      %17 = vector.broadcast %cst_14 : f32 to vector<1x512xf32>
      %c0_15 = arith.constant 0 : index
      %c0_16 = arith.constant 0 : index
      %18 = vector.load %arg3[%c0_15, %c0_16] : memref<1x512xf32, #tpu.memory_space<vmem>>, vector<1x512xf32>
      tpu.vector_store %arg3[%c0_15, %c0_16], %17 {strides = array<i32>} : memref<1x512xf32, #tpu.memory_space<vmem>>, vector<1x512xf32>,
    } else {
    }
    %c0 = arith.constant 0 : index
    %c0_1 = arith.constant 0 : index
    %3 = vector.load %arg1[%c0, %c0_1] : memref<16x512xf32, #tpu.memory_space<vmem>>, vector<16x512xf32>
    %c0_2 = arith.constant 0 : index
    %c0_3 = arith.constant 0 : index
    %4 = vector.load %arg2[%c0_2, %c0_3] : memref<1x512xf32, #tpu.memory_space<vmem>>, vector<1x512xf32>
    %cst = arith.constant dense<0.000000e+00> : vector<512xf32>
    %5 = vector.multi_reduction <add>, %3, %cst [0] : vector<16x512xf32> to vector<512xf32>
    %6 = vector.shape_cast %5 : vector<512xf32> to vector<1x512xf32>
    %7 = arith.addf %4, %6 : vector<1x512xf32>
    %c0_4 = arith.constant 0 : index
    %c0_5 = arith.constant 0 : index
    %8 = vector.load %arg2[%c0_4, %c0_5] : memref<1x512xf32, #tpu.memory_space<vmem>>, vector<1x512xf32>
    tpu.vector_store %arg2[%c0_4, %c0_5], %7 {strides = array<i32>} : memref<1x512xf32, #tpu.memory_space<vmem>>, vector<1x512xf32>,
    %c0_6 = arith.constant 0 : index
    %c0_7 = arith.constant 0 : index
    %9 = vector.load %arg3[%c0_6, %c0_7] : memref<1x512xf32, #tpu.memory_space<vmem>>, vector<1x512xf32>
    %10 = arith.mulf %3, %3 : vector<16x512xf32>
    %cst_8 = arith.constant dense<0.000000e+00> : vector<512xf32>
    %11 = vector.multi_reduction <add>, %10, %cst_8 [0] : vector<16x512xf32> to vector<512xf32>
    %12 = vector.shape_cast %11 : vector<512xf32> to vector<1x512xf32>
    %13 = arith.addf %9, %12 : vector<1x512xf32>
    %c0_9 = arith.constant 0 : index
    %c0_10 = arith.constant 0 : index
    %14 = vector.load %arg3[%c0_9, %c0_10] : memref<1x512xf32, #tpu.memory_space<vmem>>, vector<1x512xf32>
    tpu.vector_store %arg3[%c0_9, %c0_10], %13 {strides = array<i32>} : memref<1x512xf32, #tpu.memory_space<vmem>>, vector<1x512xf32>,
    return
  }
  func.func @transform_0(%arg0: i32) -> (i32, i32) {
    %c0_i32 = arith.constant 0 : i32
    %c0_i32_0 = arith.constant 0 : i32
    return %arg0, %c0_i32 : i32, i32
  }
  func.func @transform_1(%arg0: i32) -> (i32, i32) {
    %c0_i32 = arith.constant 0 : i32
    %c0_i32_0 = arith.constant 0 : i32
    %c0_i32_1 = arith.constant 0 : i32
    return %c0_i32, %c0_i32_0 : i32, i32
  }
  func.func @transform_2(%arg0: i32) -> (i32, i32) {
    %c0_i32 = arith.constant 0 : i32
    %c0_i32_0 = arith.constant 0 : i32
    %c0_i32_1 = arith.constant 0 : i32
    return %c0_i32, %c0_i32_0 : i32, i32
  }
}

module attributes {stable_mosaic.version = 11 : i64} {
  func.func @_affine_act_kernel(%arg0: i32, %arg1: memref<16x512xf32, #tpu.memory_space<vmem>>, %arg2: memref<1x512xf32, #tpu.memory_space<vmem>>, %arg3: memref<1x512xf32, #tpu.memory_space<vmem>>, %arg4: memref<16x512xbf16, #tpu.memory_space<vmem>>) attributes {dimension_semantics = [#tpu.dimension_semantics<parallel>], iteration_bounds = array<i64: 1>, scalar_prefetch = 0 : i64, scratch_operands = 0 : i64, tpu.core_type = #tpu.core_type<tc>, window_params = [{transform_indices = @transform_0, window_bounds = array<i64: 16, 512>}, {pipeline_mode = #tpu.pipeline_mode<synchronous>, transform_indices = @transform_1, window_bounds = array<i64: 1, 512>}, {pipeline_mode = #tpu.pipeline_mode<synchronous>, transform_indices = @transform_2, window_bounds = array<i64: 1, 512>}, {transform_indices = @transform_3, window_bounds = array<i64: 16, 512>}]} {
    %c0 = arith.constant 0 : index
    %c0_0 = arith.constant 0 : index
    %0 = vector.load %arg1[%c0, %c0_0] : memref<16x512xf32, #tpu.memory_space<vmem>>, vector<16x512xf32>
    %c0_1 = arith.constant 0 : index
    %c0_2 = arith.constant 0 : index
    %1 = vector.load %arg2[%c0_1, %c0_2] : memref<1x512xf32, #tpu.memory_space<vmem>>, vector<1x512xf32>
    %2 = vector.broadcast %1 : vector<1x512xf32> to vector<16x512xf32>
    %3 = arith.mulf %0, %2 : vector<16x512xf32>
    %c0_3 = arith.constant 0 : index
    %c0_4 = arith.constant 0 : index
    %4 = vector.load %arg3[%c0_3, %c0_4] : memref<1x512xf32, #tpu.memory_space<vmem>>, vector<1x512xf32>
    %5 = vector.broadcast %4 : vector<1x512xf32> to vector<16x512xf32>
    %6 = arith.addf %3, %5 : vector<16x512xf32>
    %cst = arith.constant 0.000000e+00 : f32
    %7 = vector.broadcast %cst : f32 to vector<16x512xf32>
    %8 = arith.maximumf %6, %7 : vector<16x512xf32>
    %9 = arith.truncf %8 : vector<16x512xf32> to vector<16x512xbf16>
    %c0_5 = arith.constant 0 : index
    %c0_6 = arith.constant 0 : index
    %10 = vector.load %arg4[%c0_5, %c0_6] : memref<16x512xbf16, #tpu.memory_space<vmem>>, vector<16x512xbf16>
    tpu.vector_store %arg4[%c0_5, %c0_6], %9 {strides = array<i32>} : memref<16x512xbf16, #tpu.memory_space<vmem>>, vector<16x512xbf16>,
    return
  }
  func.func @transform_0(%arg0: i32) -> (i32, i32) {
    %c0_i32 = arith.constant 0 : i32
    %c0_i32_0 = arith.constant 0 : i32
    return %arg0, %c0_i32 : i32, i32
  }
  func.func @transform_1(%arg0: i32) -> (i32, i32) {
    %c0_i32 = arith.constant 0 : i32
    %c0_i32_0 = arith.constant 0 : i32
    %c0_i32_1 = arith.constant 0 : i32
    return %c0_i32, %c0_i32_0 : i32, i32
  }
  func.func @transform_2(%arg0: i32) -> (i32, i32) {
    %c0_i32 = arith.constant 0 : i32
    %c0_i32_0 = arith.constant 0 : i32
    %c0_i32_1 = arith.constant 0 : i32
    return %c0_i32, %c0_i32_0 : i32, i32
  }
  func.func @transform_3(%arg0: i32) -> (i32, i32) {
    %c0_i32 = arith.constant 0 : i32
    %c0_i32_0 = arith.constant 0 : i32
    return %arg0, %c0_i32 : i32, i32
  }
}

module attributes {stable_mosaic.version = 11 : i64} {
  func.func @_matmul_kernel(%arg0: i32, %arg1: i32, %arg2: memref<128x64xbf16, #tpu.memory_space<vmem>>, %arg3: memref<64x512xbf16, #tpu.memory_space<vmem>>, %arg4: memref<128x512xf32, #tpu.memory_space<vmem>>) attributes {dimension_semantics = [#tpu.dimension_semantics<parallel>, #tpu.dimension_semantics<parallel>], iteration_bounds = array<i64: 1, 1>, scalar_prefetch = 0 : i64, scratch_operands = 0 : i64, tpu.core_type = #tpu.core_type<tc>, window_params = [{transform_indices = @transform_0, window_bounds = array<i64: 128, 64>}, {transform_indices = @transform_1, window_bounds = array<i64: 64, 512>}, {transform_indices = @transform_2, window_bounds = array<i64: 128, 512>}]} {
    %c0 = arith.constant 0 : index
    %c0_0 = arith.constant 0 : index
    %0 = vector.load %arg2[%c0, %c0_0] : memref<128x64xbf16, #tpu.memory_space<vmem>>, vector<128x64xbf16>
    %c0_1 = arith.constant 0 : index
    %c0_2 = arith.constant 0 : index
    %1 = vector.load %arg3[%c0_1, %c0_2] : memref<64x512xbf16, #tpu.memory_space<vmem>>, vector<64x512xbf16>
    %cst = arith.constant dense<0.000000e+00> : vector<128x512xf32>
    %2 = tpu.matmul %0, %1, %cst {dimension_numbers = #tpu.dot_dimension_numbers<[1], [0], [0], [1], [0, 0, 1, 1], [], []>} : vector<128x64xbf16>, vector<64x512xbf16>, vector<128x512xf32> -> vector<128x512xf32>
    %c0_3 = arith.constant 0 : index
    %c0_4 = arith.constant 0 : index
    %3 = vector.load %arg4[%c0_3, %c0_4] : memref<128x512xf32, #tpu.memory_space<vmem>>, vector<128x512xf32>
    tpu.vector_store %arg4[%c0_3, %c0_4], %2 {strides = array<i32>} : memref<128x512xf32, #tpu.memory_space<vmem>>, vector<128x512xf32>,
    return
  }
  func.func @transform_0(%arg0: i32, %arg1: i32) -> (i32, i32) {
    %c0_i32 = arith.constant 0 : i32
    %c0_i32_0 = arith.constant 0 : i32
    return %arg0, %c0_i32 : i32, i32
  }
  func.func @transform_1(%arg0: i32, %arg1: i32) -> (i32, i32) {
    %c0_i32 = arith.constant 0 : i32
    %c0_i32_0 = arith.constant 0 : i32
    return %c0_i32, %arg1 : i32, i32
  }
  func.func @transform_2(%arg0: i32, %arg1: i32) -> (i32, i32) {
    %c0_i32 = arith.constant 0 : i32
    return %arg0, %arg1 : i32, i32
  }
}

module attributes {stable_mosaic.version = 11 : i64} {
  func.func @_bn_stats_kernel(%arg0: i32, %arg1: memref<32x512xf32, #tpu.memory_space<vmem>>, %arg2: memref<1x512xf32, #tpu.memory_space<vmem>>, %arg3: memref<1x512xf32, #tpu.memory_space<vmem>>) attributes {dimension_semantics = [#tpu.dimension_semantics<arbitrary>], iteration_bounds = array<i64: 1>, scalar_prefetch = 0 : i64, scratch_operands = 0 : i64, tpu.core_type = #tpu.core_type<tc>, window_params = [{transform_indices = @transform_0, window_bounds = array<i64: 32, 512>}, {pipeline_mode = #tpu.pipeline_mode<synchronous>, transform_indices = @transform_1, window_bounds = array<i64: 1, 512>}, {pipeline_mode = #tpu.pipeline_mode<synchronous>, transform_indices = @transform_2, window_bounds = array<i64: 1, 512>}]} {
    %c0_i32 = arith.constant 0 : i32
    %0 = arith.cmpi eq, %arg0, %c0_i32 : i32
    %1 = arith.extui %0 : i1 to i32
    %c0_i32_0 = arith.constant 0 : i32
    %2 = arith.cmpi ne, %1, %c0_i32_0 : i32
    scf.if %2 {
      %cst_11 = arith.constant 0.000000e+00 : f32
      %15 = vector.broadcast %cst_11 : f32 to vector<1x512xf32>
      %c0_12 = arith.constant 0 : index
      %c0_13 = arith.constant 0 : index
      %16 = vector.load %arg2[%c0_12, %c0_13] : memref<1x512xf32, #tpu.memory_space<vmem>>, vector<1x512xf32>
      tpu.vector_store %arg2[%c0_12, %c0_13], %15 {strides = array<i32>} : memref<1x512xf32, #tpu.memory_space<vmem>>, vector<1x512xf32>,
      %cst_14 = arith.constant 0.000000e+00 : f32
      %17 = vector.broadcast %cst_14 : f32 to vector<1x512xf32>
      %c0_15 = arith.constant 0 : index
      %c0_16 = arith.constant 0 : index
      %18 = vector.load %arg3[%c0_15, %c0_16] : memref<1x512xf32, #tpu.memory_space<vmem>>, vector<1x512xf32>
      tpu.vector_store %arg3[%c0_15, %c0_16], %17 {strides = array<i32>} : memref<1x512xf32, #tpu.memory_space<vmem>>, vector<1x512xf32>,
    } else {
    }
    %c0 = arith.constant 0 : index
    %c0_1 = arith.constant 0 : index
    %3 = vector.load %arg1[%c0, %c0_1] : memref<32x512xf32, #tpu.memory_space<vmem>>, vector<32x512xf32>
    %c0_2 = arith.constant 0 : index
    %c0_3 = arith.constant 0 : index
    %4 = vector.load %arg2[%c0_2, %c0_3] : memref<1x512xf32, #tpu.memory_space<vmem>>, vector<1x512xf32>
    %cst = arith.constant dense<0.000000e+00> : vector<512xf32>
    %5 = vector.multi_reduction <add>, %3, %cst [0] : vector<32x512xf32> to vector<512xf32>
    %6 = vector.shape_cast %5 : vector<512xf32> to vector<1x512xf32>
    %7 = arith.addf %4, %6 : vector<1x512xf32>
    %c0_4 = arith.constant 0 : index
    %c0_5 = arith.constant 0 : index
    %8 = vector.load %arg2[%c0_4, %c0_5] : memref<1x512xf32, #tpu.memory_space<vmem>>, vector<1x512xf32>
    tpu.vector_store %arg2[%c0_4, %c0_5], %7 {strides = array<i32>} : memref<1x512xf32, #tpu.memory_space<vmem>>, vector<1x512xf32>,
    %c0_6 = arith.constant 0 : index
    %c0_7 = arith.constant 0 : index
    %9 = vector.load %arg3[%c0_6, %c0_7] : memref<1x512xf32, #tpu.memory_space<vmem>>, vector<1x512xf32>
    %10 = arith.mulf %3, %3 : vector<32x512xf32>
    %cst_8 = arith.constant dense<0.000000e+00> : vector<512xf32>
    %11 = vector.multi_reduction <add>, %10, %cst_8 [0] : vector<32x512xf32> to vector<512xf32>
    %12 = vector.shape_cast %11 : vector<512xf32> to vector<1x512xf32>
    %13 = arith.addf %9, %12 : vector<1x512xf32>
    %c0_9 = arith.constant 0 : index
    %c0_10 = arith.constant 0 : index
    %14 = vector.load %arg3[%c0_9, %c0_10] : memref<1x512xf32, #tpu.memory_space<vmem>>, vector<1x512xf32>
    tpu.vector_store %arg3[%c0_9, %c0_10], %13 {strides = array<i32>} : memref<1x512xf32, #tpu.memory_space<vmem>>, vector<1x512xf32>,
    return
  }
  func.func @transform_0(%arg0: i32) -> (i32, i32) {
    %c0_i32 = arith.constant 0 : i32
    %c0_i32_0 = arith.constant 0 : i32
    return %arg0, %c0_i32 : i32, i32
  }
  func.func @transform_1(%arg0: i32) -> (i32, i32) {
    %c0_i32 = arith.constant 0 : i32
    %c0_i32_0 = arith.constant 0 : i32
    %c0_i32_1 = arith.constant 0 : i32
    return %c0_i32, %c0_i32_0 : i32, i32
  }
  func.func @transform_2(%arg0: i32) -> (i32, i32) {
    %c0_i32 = arith.constant 0 : i32
    %c0_i32_0 = arith.constant 0 : i32
    %c0_i32_1 = arith.constant 0 : i32
    return %c0_i32, %c0_i32_0 : i32, i32
  }
}

module attributes {stable_mosaic.version = 11 : i64} {
  func.func @_affine_act_kernel(%arg0: i32, %arg1: memref<32x512xf32, #tpu.memory_space<vmem>>, %arg2: memref<1x512xf32, #tpu.memory_space<vmem>>, %arg3: memref<1x512xf32, #tpu.memory_space<vmem>>, %arg4: memref<32x512xbf16, #tpu.memory_space<vmem>>) attributes {dimension_semantics = [#tpu.dimension_semantics<parallel>], iteration_bounds = array<i64: 1>, scalar_prefetch = 0 : i64, scratch_operands = 0 : i64, tpu.core_type = #tpu.core_type<tc>, window_params = [{transform_indices = @transform_0, window_bounds = array<i64: 32, 512>}, {pipeline_mode = #tpu.pipeline_mode<synchronous>, transform_indices = @transform_1, window_bounds = array<i64: 1, 512>}, {pipeline_mode = #tpu.pipeline_mode<synchronous>, transform_indices = @transform_2, window_bounds = array<i64: 1, 512>}, {transform_indices = @transform_3, window_bounds = array<i64: 32, 512>}]} {
    %c0 = arith.constant 0 : index
    %c0_0 = arith.constant 0 : index
    %0 = vector.load %arg1[%c0, %c0_0] : memref<32x512xf32, #tpu.memory_space<vmem>>, vector<32x512xf32>
    %c0_1 = arith.constant 0 : index
    %c0_2 = arith.constant 0 : index
    %1 = vector.load %arg2[%c0_1, %c0_2] : memref<1x512xf32, #tpu.memory_space<vmem>>, vector<1x512xf32>
    %2 = vector.broadcast %1 : vector<1x512xf32> to vector<32x512xf32>
    %3 = arith.mulf %0, %2 : vector<32x512xf32>
    %c0_3 = arith.constant 0 : index
    %c0_4 = arith.constant 0 : index
    %4 = vector.load %arg3[%c0_3, %c0_4] : memref<1x512xf32, #tpu.memory_space<vmem>>, vector<1x512xf32>
    %5 = vector.broadcast %4 : vector<1x512xf32> to vector<32x512xf32>
    %6 = arith.addf %3, %5 : vector<32x512xf32>
    %cst = arith.constant 0.000000e+00 : f32
    %7 = vector.broadcast %cst : f32 to vector<32x512xf32>
    %8 = arith.maximumf %6, %7 : vector<32x512xf32>
    %9 = arith.truncf %8 : vector<32x512xf32> to vector<32x512xbf16>
    %c0_5 = arith.constant 0 : index
    %c0_6 = arith.constant 0 : index
    %10 = vector.load %arg4[%c0_5, %c0_6] : memref<32x512xbf16, #tpu.memory_space<vmem>>, vector<32x512xbf16>
    tpu.vector_store %arg4[%c0_5, %c0_6], %9 {strides = array<i32>} : memref<32x512xbf16, #tpu.memory_space<vmem>>, vector<32x512xbf16>,
    return
  }
  func.func @transform_0(%arg0: i32) -> (i32, i32) {
    %c0_i32 = arith.constant 0 : i32
    %c0_i32_0 = arith.constant 0 : i32
    return %arg0, %c0_i32 : i32, i32
  }
  func.func @transform_1(%arg0: i32) -> (i32, i32) {
    %c0_i32 = arith.constant 0 : i32
    %c0_i32_0 = arith.constant 0 : i32
    %c0_i32_1 = arith.constant 0 : i32
    return %c0_i32, %c0_i32_0 : i32, i32
  }
  func.func @transform_2(%arg0: i32) -> (i32, i32) {
    %c0_i32 = arith.constant 0 : i32
    %c0_i32_0 = arith.constant 0 : i32
    %c0_i32_1 = arith.constant 0 : i32
    return %c0_i32, %c0_i32_0 : i32, i32
  }
  func.func @transform_3(%arg0: i32) -> (i32, i32) {
    %c0_i32 = arith.constant 0 : i32
    %c0_i32_0 = arith.constant 0 : i32
    return %arg0, %c0_i32 : i32, i32
  }
}

module attributes {stable_mosaic.version = 11 : i64} {
  func.func @_matmul_kernel(%arg0: i32, %arg1: i32, %arg2: memref<512x32xbf16, #tpu.memory_space<vmem>>, %arg3: memref<32x256xbf16, #tpu.memory_space<vmem>>, %arg4: memref<512x256xf32, #tpu.memory_space<vmem>>) attributes {dimension_semantics = [#tpu.dimension_semantics<parallel>, #tpu.dimension_semantics<parallel>], iteration_bounds = array<i64: 1, 1>, scalar_prefetch = 0 : i64, scratch_operands = 0 : i64, tpu.core_type = #tpu.core_type<tc>, window_params = [{transform_indices = @transform_0, window_bounds = array<i64: 512, 32>}, {transform_indices = @transform_1, window_bounds = array<i64: 32, 256>}, {transform_indices = @transform_2, window_bounds = array<i64: 512, 256>}]} {
    %c0 = arith.constant 0 : index
    %c0_0 = arith.constant 0 : index
    %0 = vector.load %arg2[%c0, %c0_0] : memref<512x32xbf16, #tpu.memory_space<vmem>>, vector<512x32xbf16>
    %c0_1 = arith.constant 0 : index
    %c0_2 = arith.constant 0 : index
    %1 = vector.load %arg3[%c0_1, %c0_2] : memref<32x256xbf16, #tpu.memory_space<vmem>>, vector<32x256xbf16>
    %cst = arith.constant dense<0.000000e+00> : vector<512x256xf32>
    %2 = tpu.matmul %0, %1, %cst {dimension_numbers = #tpu.dot_dimension_numbers<[1], [0], [0], [1], [0, 0, 1, 1], [], []>} : vector<512x32xbf16>, vector<32x256xbf16>, vector<512x256xf32> -> vector<512x256xf32>
    %c0_3 = arith.constant 0 : index
    %c0_4 = arith.constant 0 : index
    %3 = vector.load %arg4[%c0_3, %c0_4] : memref<512x256xf32, #tpu.memory_space<vmem>>, vector<512x256xf32>
    tpu.vector_store %arg4[%c0_3, %c0_4], %2 {strides = array<i32>} : memref<512x256xf32, #tpu.memory_space<vmem>>, vector<512x256xf32>,
    return
  }
  func.func @transform_0(%arg0: i32, %arg1: i32) -> (i32, i32) {
    %c0_i32 = arith.constant 0 : i32
    %c0_i32_0 = arith.constant 0 : i32
    return %arg0, %c0_i32 : i32, i32
  }
  func.func @transform_1(%arg0: i32, %arg1: i32) -> (i32, i32) {
    %c0_i32 = arith.constant 0 : i32
    %c0_i32_0 = arith.constant 0 : i32
    return %c0_i32, %arg1 : i32, i32
  }
  func.func @transform_2(%arg0: i32, %arg1: i32) -> (i32, i32) {
    %c0_i32 = arith.constant 0 : i32
    return %arg0, %arg1 : i32, i32
  }
}

module attributes {stable_mosaic.version = 11 : i64} {
  func.func @_bn_stats_kernel(%arg0: i32, %arg1: memref<64x512xf32, #tpu.memory_space<vmem>>, %arg2: memref<1x512xf32, #tpu.memory_space<vmem>>, %arg3: memref<1x512xf32, #tpu.memory_space<vmem>>) attributes {dimension_semantics = [#tpu.dimension_semantics<arbitrary>], iteration_bounds = array<i64: 1>, scalar_prefetch = 0 : i64, scratch_operands = 0 : i64, tpu.core_type = #tpu.core_type<tc>, window_params = [{transform_indices = @transform_0, window_bounds = array<i64: 64, 512>}, {pipeline_mode = #tpu.pipeline_mode<synchronous>, transform_indices = @transform_1, window_bounds = array<i64: 1, 512>}, {pipeline_mode = #tpu.pipeline_mode<synchronous>, transform_indices = @transform_2, window_bounds = array<i64: 1, 512>}]} {
    %c0_i32 = arith.constant 0 : i32
    %0 = arith.cmpi eq, %arg0, %c0_i32 : i32
    %1 = arith.extui %0 : i1 to i32
    %c0_i32_0 = arith.constant 0 : i32
    %2 = arith.cmpi ne, %1, %c0_i32_0 : i32
    scf.if %2 {
      %cst_11 = arith.constant 0.000000e+00 : f32
      %15 = vector.broadcast %cst_11 : f32 to vector<1x512xf32>
      %c0_12 = arith.constant 0 : index
      %c0_13 = arith.constant 0 : index
      %16 = vector.load %arg2[%c0_12, %c0_13] : memref<1x512xf32, #tpu.memory_space<vmem>>, vector<1x512xf32>
      tpu.vector_store %arg2[%c0_12, %c0_13], %15 {strides = array<i32>} : memref<1x512xf32, #tpu.memory_space<vmem>>, vector<1x512xf32>,
      %cst_14 = arith.constant 0.000000e+00 : f32
      %17 = vector.broadcast %cst_14 : f32 to vector<1x512xf32>
      %c0_15 = arith.constant 0 : index
      %c0_16 = arith.constant 0 : index
      %18 = vector.load %arg3[%c0_15, %c0_16] : memref<1x512xf32, #tpu.memory_space<vmem>>, vector<1x512xf32>
      tpu.vector_store %arg3[%c0_15, %c0_16], %17 {strides = array<i32>} : memref<1x512xf32, #tpu.memory_space<vmem>>, vector<1x512xf32>,
    } else {
    }
    %c0 = arith.constant 0 : index
    %c0_1 = arith.constant 0 : index
    %3 = vector.load %arg1[%c0, %c0_1] : memref<64x512xf32, #tpu.memory_space<vmem>>, vector<64x512xf32>
    %c0_2 = arith.constant 0 : index
    %c0_3 = arith.constant 0 : index
    %4 = vector.load %arg2[%c0_2, %c0_3] : memref<1x512xf32, #tpu.memory_space<vmem>>, vector<1x512xf32>
    %cst = arith.constant dense<0.000000e+00> : vector<512xf32>
    %5 = vector.multi_reduction <add>, %3, %cst [0] : vector<64x512xf32> to vector<512xf32>
    %6 = vector.shape_cast %5 : vector<512xf32> to vector<1x512xf32>
    %7 = arith.addf %4, %6 : vector<1x512xf32>
    %c0_4 = arith.constant 0 : index
    %c0_5 = arith.constant 0 : index
    %8 = vector.load %arg2[%c0_4, %c0_5] : memref<1x512xf32, #tpu.memory_space<vmem>>, vector<1x512xf32>
    tpu.vector_store %arg2[%c0_4, %c0_5], %7 {strides = array<i32>} : memref<1x512xf32, #tpu.memory_space<vmem>>, vector<1x512xf32>,
    %c0_6 = arith.constant 0 : index
    %c0_7 = arith.constant 0 : index
    %9 = vector.load %arg3[%c0_6, %c0_7] : memref<1x512xf32, #tpu.memory_space<vmem>>, vector<1x512xf32>
    %10 = arith.mulf %3, %3 : vector<64x512xf32>
    %cst_8 = arith.constant dense<0.000000e+00> : vector<512xf32>
    %11 = vector.multi_reduction <add>, %10, %cst_8 [0] : vector<64x512xf32> to vector<512xf32>
    %12 = vector.shape_cast %11 : vector<512xf32> to vector<1x512xf32>
    %13 = arith.addf %9, %12 : vector<1x512xf32>
    %c0_9 = arith.constant 0 : index
    %c0_10 = arith.constant 0 : index
    %14 = vector.load %arg3[%c0_9, %c0_10] : memref<1x512xf32, #tpu.memory_space<vmem>>, vector<1x512xf32>
    tpu.vector_store %arg3[%c0_9, %c0_10], %13 {strides = array<i32>} : memref<1x512xf32, #tpu.memory_space<vmem>>, vector<1x512xf32>,
    return
  }
  func.func @transform_0(%arg0: i32) -> (i32, i32) {
    %c0_i32 = arith.constant 0 : i32
    %c0_i32_0 = arith.constant 0 : i32
    return %arg0, %c0_i32 : i32, i32
  }
  func.func @transform_1(%arg0: i32) -> (i32, i32) {
    %c0_i32 = arith.constant 0 : i32
    %c0_i32_0 = arith.constant 0 : i32
    %c0_i32_1 = arith.constant 0 : i32
    return %c0_i32, %c0_i32_0 : i32, i32
  }
  func.func @transform_2(%arg0: i32) -> (i32, i32) {
    %c0_i32 = arith.constant 0 : i32
    %c0_i32_0 = arith.constant 0 : i32
    %c0_i32_1 = arith.constant 0 : i32
    return %c0_i32, %c0_i32_0 : i32, i32
  }
}

module attributes {stable_mosaic.version = 11 : i64} {
  func.func @_affine_act_kernel(%arg0: i32, %arg1: memref<64x512xf32, #tpu.memory_space<vmem>>, %arg2: memref<1x512xf32, #tpu.memory_space<vmem>>, %arg3: memref<1x512xf32, #tpu.memory_space<vmem>>, %arg4: memref<64x512xbf16, #tpu.memory_space<vmem>>) attributes {dimension_semantics = [#tpu.dimension_semantics<parallel>], iteration_bounds = array<i64: 1>, scalar_prefetch = 0 : i64, scratch_operands = 0 : i64, tpu.core_type = #tpu.core_type<tc>, window_params = [{transform_indices = @transform_0, window_bounds = array<i64: 64, 512>}, {pipeline_mode = #tpu.pipeline_mode<synchronous>, transform_indices = @transform_1, window_bounds = array<i64: 1, 512>}, {pipeline_mode = #tpu.pipeline_mode<synchronous>, transform_indices = @transform_2, window_bounds = array<i64: 1, 512>}, {transform_indices = @transform_3, window_bounds = array<i64: 64, 512>}]} {
    %c0 = arith.constant 0 : index
    %c0_0 = arith.constant 0 : index
    %0 = vector.load %arg1[%c0, %c0_0] : memref<64x512xf32, #tpu.memory_space<vmem>>, vector<64x512xf32>
    %c0_1 = arith.constant 0 : index
    %c0_2 = arith.constant 0 : index
    %1 = vector.load %arg2[%c0_1, %c0_2] : memref<1x512xf32, #tpu.memory_space<vmem>>, vector<1x512xf32>
    %2 = vector.broadcast %1 : vector<1x512xf32> to vector<64x512xf32>
    %3 = arith.mulf %0, %2 : vector<64x512xf32>
    %c0_3 = arith.constant 0 : index
    %c0_4 = arith.constant 0 : index
    %4 = vector.load %arg3[%c0_3, %c0_4] : memref<1x512xf32, #tpu.memory_space<vmem>>, vector<1x512xf32>
    %5 = vector.broadcast %4 : vector<1x512xf32> to vector<64x512xf32>
    %6 = arith.addf %3, %5 : vector<64x512xf32>
    %cst = arith.constant 0.000000e+00 : f32
    %7 = vector.broadcast %cst : f32 to vector<64x512xf32>
    %8 = arith.maximumf %6, %7 : vector<64x512xf32>
    %9 = arith.truncf %8 : vector<64x512xf32> to vector<64x512xbf16>
    %c0_5 = arith.constant 0 : index
    %c0_6 = arith.constant 0 : index
    %10 = vector.load %arg4[%c0_5, %c0_6] : memref<64x512xbf16, #tpu.memory_space<vmem>>, vector<64x512xbf16>
    tpu.vector_store %arg4[%c0_5, %c0_6], %9 {strides = array<i32>} : memref<64x512xbf16, #tpu.memory_space<vmem>>, vector<64x512xbf16>,
    return
  }
  func.func @transform_0(%arg0: i32) -> (i32, i32) {
    %c0_i32 = arith.constant 0 : i32
    %c0_i32_0 = arith.constant 0 : i32
    return %arg0, %c0_i32 : i32, i32
  }
  func.func @transform_1(%arg0: i32) -> (i32, i32) {
    %c0_i32 = arith.constant 0 : i32
    %c0_i32_0 = arith.constant 0 : i32
    %c0_i32_1 = arith.constant 0 : i32
    return %c0_i32, %c0_i32_0 : i32, i32
  }
  func.func @transform_2(%arg0: i32) -> (i32, i32) {
    %c0_i32 = arith.constant 0 : i32
    %c0_i32_0 = arith.constant 0 : i32
    %c0_i32_1 = arith.constant 0 : i32
    return %c0_i32, %c0_i32_0 : i32, i32
  }
  func.func @transform_3(%arg0: i32) -> (i32, i32) {
    %c0_i32 = arith.constant 0 : i32
    %c0_i32_0 = arith.constant 0 : i32
    return %arg0, %c0_i32 : i32, i32
  }
}

module attributes {stable_mosaic.version = 11 : i64} {
  func.func @_matmul_kernel(%arg0: i32, %arg1: i32, %arg2: memref<512x16xbf16, #tpu.memory_space<vmem>>, %arg3: memref<16x128xbf16, #tpu.memory_space<vmem>>, %arg4: memref<512x128xf32, #tpu.memory_space<vmem>>) attributes {dimension_semantics = [#tpu.dimension_semantics<parallel>, #tpu.dimension_semantics<parallel>], iteration_bounds = array<i64: 4, 1>, scalar_prefetch = 0 : i64, scratch_operands = 0 : i64, tpu.core_type = #tpu.core_type<tc>, window_params = [{transform_indices = @transform_0, window_bounds = array<i64: 512, 16>}, {transform_indices = @transform_1, window_bounds = array<i64: 16, 128>}, {transform_indices = @transform_2, window_bounds = array<i64: 512, 128>}]} {
    %c0 = arith.constant 0 : index
    %c0_0 = arith.constant 0 : index
    %0 = vector.load %arg2[%c0, %c0_0] : memref<512x16xbf16, #tpu.memory_space<vmem>>, vector<512x16xbf16>
    %c0_1 = arith.constant 0 : index
    %c0_2 = arith.constant 0 : index
    %1 = vector.load %arg3[%c0_1, %c0_2] : memref<16x128xbf16, #tpu.memory_space<vmem>>, vector<16x128xbf16>
    %cst = arith.constant dense<0.000000e+00> : vector<512x128xf32>
    %2 = tpu.matmul %0, %1, %cst {dimension_numbers = #tpu.dot_dimension_numbers<[1], [0], [0], [1], [0, 0, 1, 1], [], []>} : vector<512x16xbf16>, vector<16x128xbf16>, vector<512x128xf32> -> vector<512x128xf32>
    %c0_3 = arith.constant 0 : index
    %c0_4 = arith.constant 0 : index
    %3 = vector.load %arg4[%c0_3, %c0_4] : memref<512x128xf32, #tpu.memory_space<vmem>>, vector<512x128xf32>
    tpu.vector_store %arg4[%c0_3, %c0_4], %2 {strides = array<i32>} : memref<512x128xf32, #tpu.memory_space<vmem>>, vector<512x128xf32>,
    return
  }
  func.func @transform_0(%arg0: i32, %arg1: i32) -> (i32, i32) {
    %c0_i32 = arith.constant 0 : i32
    %c0_i32_0 = arith.constant 0 : i32
    return %arg0, %c0_i32 : i32, i32
  }
  func.func @transform_1(%arg0: i32, %arg1: i32) -> (i32, i32) {
    %c0_i32 = arith.constant 0 : i32
    %c0_i32_0 = arith.constant 0 : i32
    return %c0_i32, %arg1 : i32, i32
  }
  func.func @transform_2(%arg0: i32, %arg1: i32) -> (i32, i32) {
    %c0_i32 = arith.constant 0 : i32
    return %arg0, %arg1 : i32, i32
  }
}

module attributes {stable_mosaic.version = 11 : i64} {
  func.func @_affine_act_kernel(%arg0: i32, %arg1: memref<128x512xf32, #tpu.memory_space<vmem>>, %arg2: memref<1x512xf32, #tpu.memory_space<vmem>>, %arg3: memref<1x512xf32, #tpu.memory_space<vmem>>, %arg4: memref<128x512xf32, #tpu.memory_space<vmem>>) attributes {dimension_semantics = [#tpu.dimension_semantics<parallel>], iteration_bounds = array<i64: 1>, scalar_prefetch = 0 : i64, scratch_operands = 0 : i64, tpu.core_type = #tpu.core_type<tc>, window_params = [{transform_indices = @transform_0, window_bounds = array<i64: 128, 512>}, {pipeline_mode = #tpu.pipeline_mode<synchronous>, transform_indices = @transform_1, window_bounds = array<i64: 1, 512>}, {pipeline_mode = #tpu.pipeline_mode<synchronous>, transform_indices = @transform_2, window_bounds = array<i64: 1, 512>}, {transform_indices = @transform_3, window_bounds = array<i64: 128, 512>}]} {
    %c0 = arith.constant 0 : index
    %c0_0 = arith.constant 0 : index
    %0 = vector.load %arg1[%c0, %c0_0] : memref<128x512xf32, #tpu.memory_space<vmem>>, vector<128x512xf32>
    %c0_1 = arith.constant 0 : index
    %c0_2 = arith.constant 0 : index
    %1 = vector.load %arg2[%c0_1, %c0_2] : memref<1x512xf32, #tpu.memory_space<vmem>>, vector<1x512xf32>
    %2 = vector.broadcast %1 : vector<1x512xf32> to vector<128x512xf32>
    %3 = arith.mulf %0, %2 : vector<128x512xf32>
    %c0_3 = arith.constant 0 : index
    %c0_4 = arith.constant 0 : index
    %4 = vector.load %arg3[%c0_3, %c0_4] : memref<1x512xf32, #tpu.memory_space<vmem>>, vector<1x512xf32>
    %5 = vector.broadcast %4 : vector<1x512xf32> to vector<128x512xf32>
    %6 = arith.addf %3, %5 : vector<128x512xf32>
    %7 = math.tanh %6 : vector<128x512xf32>
    %c0_5 = arith.constant 0 : index
    %c0_6 = arith.constant 0 : index
    %8 = vector.load %arg4[%c0_5, %c0_6] : memref<128x512xf32, #tpu.memory_space<vmem>>, vector<128x512xf32>
    tpu.vector_store %arg4[%c0_5, %c0_6], %7 {strides = array<i32>} : memref<128x512xf32, #tpu.memory_space<vmem>>, vector<128x512xf32>,
    return
  }
  func.func @transform_0(%arg0: i32) -> (i32, i32) {
    %c0_i32 = arith.constant 0 : i32
    %c0_i32_0 = arith.constant 0 : i32
    return %arg0, %c0_i32 : i32, i32
  }
  func.func @transform_1(%arg0: i32) -> (i32, i32) {
    %c0_i32 = arith.constant 0 : i32
    %c0_i32_0 = arith.constant 0 : i32
    %c0_i32_1 = arith.constant 0 : i32
    return %c0_i32, %c0_i32_0 : i32, i32
  }
  func.func @transform_2(%arg0: i32) -> (i32, i32) {
    %c0_i32 = arith.constant 0 : i32
    %c0_i32_0 = arith.constant 0 : i32
    %c0_i32_1 = arith.constant 0 : i32
    return %c0_i32, %c0_i32_0 : i32, i32
  }
  func.func @transform_3(%arg0: i32) -> (i32, i32) {
    %c0_i32 = arith.constant 0 : i32
    %c0_i32_0 = arith.constant 0 : i32
    return %arg0, %c0_i32 : i32, i32
  }
}

</mosaic_0001>

<bundles_post_ra>
// kernel: tile.48
= control target key start
LH: loop header
LB: loop body
LE: loop exit
PB: predicated region body
PF: predicated region fallthrough
CT: control target
= control target key end

     0   :  { %s22_s0 = inlined_call_operand.vmem [shape: f32[128], index: 0, kind: input, shape index: {}]   ;;  %s23_s1 = inlined_call_operand.vmem [shape: f32[4,128], index: 1, kind: output, shape index: {}]  }
   0x1   :  { %v4_v0 = vld [vmem:[%s22_s0] ss:$0 sm:$0xff] }
   0x2   :  { %5 = vst [vmem:[%s23_s1] sm:$0xf] %v4_v0 }

// kernel: generator_forward.14
= control target key start
LH: loop header
LB: loop body
LE: loop exit
PB: predicated region body
PF: predicated region fallthrough
CT: control target
= control target key end

     0   :  { %s1142_s9 = smov 0   ;;  %s1144_s10 = smov 0   ;;  %s1394_s0 = inlined_call_operand.vmem [shape: bf16[2,100], index: 0, kind: input, shape index: {}]   ;;  %s1395_s1 = inlined_call_operand.vmem [shape: bf16[100,2048], index: 1, kind: input, shape index: {}]   ;;  %s1396_s2 = inlined_call_operand.vmem [shape: f32[2,2048], index: 2, kind: output, shape index: {}]  }
   0x1   :  { %s1146_s11 = smov 0   ;;  %s1148_s12 = smov 0  }
   0x2   :  { %s1150_s13 = smov 0  }
   0x3 LB: > { %s21_s14 = sadd.s32 1, %s1119_s12  ;;  %p64_p1 = scmp.ne.s32.totalorder %s1111_s10, %s1107_s9  ;;  %s1123_s13 = sphi %s1150_s13, %s12_s13   ;;  %s1119_s12 = sphi %s1148_s12, %s1400_s12   ;;  %s1115_s11 = sphi %s1146_s11, %s1399_s11   ;;  %s1111_s10 = sphi %s1144_s10, %s1398_s10   ;;  %s1107_s9 = sphi %s1142_s9, %s1397_s9  }
   0x4   : > { %p22_p0 = scmp.ge.s32.totalorder %s21_s14, 2  ;;  %p65_p2 = scmp.eq.s32.totalorder %s1123_s13, 0 }
   0x5   : > { %s57_s16 = sadd.s32 1, %s1111_s10  ;;  %p960_p5 = scmp.ge.s32.totalorder %s1123_s13, 2 }
   0x6   : > { %s1402_s14 = smov (%p22_p0, %s21_s14), 0  ;;  %p66_p3 = por %p65_p2, %p64_p1 }
   0x7   : > { %s54_s15 = ssub.s32 %s1119_s12, %s1402_s14  ;;  %124 = sbr.rel (%p960_p5) target bundleno = 45 (0x2d), region = 20 }
   0x8   : > { %p55_p4 = scmp.eq.s32.totalorder %s54_s15, 0 }
   0xa   : > { %s1177_s17 = scalar_select %p55_p4, %s1111_s10, %s57_s16  }
   0xe   : > { %127 = sbr.rel (!%p66_p3) target bundleno = 45 (0x2d), region = 24  ;;  %s129_s18 = sand.u32 (%p66_p3), 1, %s1111_s10  }
   0xf   : > { %s1032_s19 = sshll.u32 (%p66_p3), %s1119_s12, 5  ;;  %s1033_s20 = smul.u32 (%p66_p3), 416, %s129_s18 }
  0x10   : > { %s1185_s23 = scalar_lea.vmem (%p66_p3), %s1395_s1, %s1032_s19 }
  0x11   : > { %v147_v0 = vld [vmem:[%s1185_s23] sm:$0xff] (%p66_p3)  ;;  %v149_v1 = vld [vmem:[%s1185_s23 + $0x8] sm:$0xff] (%p66_p3)  ;;  %v151_v2 = vld [vmem:[%s1185_s23 + $0x10] sm:$0xff] (%p66_p3)  ;;  %s1193_s24 = scalar_lea.vmem (%p66_p3), [#allocation2], %s1033_s20 }
  0x12   : > { %v153_v3 = vld [vmem:[%s1185_s23 + $0x18] sm:$0xff] (%p66_p3)  ;;  %v155_v4 = vld [vmem:[%s1185_s23 + $0x40] sm:$0xff] (%p66_p3)  ;;  %v157_v5 = vld [vmem:[%s1185_s23 + $0x48] sm:$0xff] (%p66_p3)  ;;  %148 = vst [vmem:[%s1193_s24] sm:$0xff] (%p66_p3), %v147_v0 }
  0x13   : > { %150 = vst [vmem:[%s1193_s24 + $0x8] sm:$0xff] (%p66_p3), %v149_v1  ;;  %152 = vst [vmem:[%s1193_s24 + $0x10] sm:$0xff] (%p66_p3), %v151_v2  ;;  %v159_v6 = vld [vmem:[%s1185_s23 + $0x50] sm:$0xff] (%p66_p3)  ;;  %v161_v7 = vld [vmem:[%s1185_s23 + $0x58] sm:$0xff] (%p66_p3) }
  0x14   : > { %154 = vst [vmem:[%s1193_s24 + $0x18] sm:$0xff] (%p66_p3), %v153_v3  ;;  %156 = vst [vmem:[%s1193_s24 + $0x20] sm:$0xff] (%p66_p3), %v155_v4  ;;  %v163_v8 = vld [vmem:[%s1185_s23 + $0x80] sm:$0xff] (%p66_p3)  ;;  %v165_v9 = vld [vmem:[%s1185_s23 + $0x88] sm:$0xff] (%p66_p3) }
  0x15   : > { %158 = vst [vmem:[%s1193_s24 + $0x28] sm:$0xff] %v157_v5  ;;  %160 = vst [vmem:[%s1193_s24 + $0x30] sm:$0xff] %v159_v6  ;;  %v167_v10 = vld [vmem:[%s1185_s23 + $0x90] sm:$0xff]  ;;  %v169_v11 = vld [vmem:[%s1185_s23 + $0x98] sm:$0xff] }
  0x16   : > { %162 = vst [vmem:[%s1193_s24 + $0x38] sm:$0xff] %v161_v7  ;;  %164 = vst [vmem:[%s1193_s24 + $0x40] sm:$0xff] %v163_v8  ;;  %v171_v12 = vld [vmem:[%s1185_s23 + $0xc0] sm:$0xff]  ;;  %v173_v13 = vld [vmem:[%s1185_s23 + $0xc8] sm:$0xff] }
  0x17   : > { %166 = vst [vmem:[%s1193_s24 + $0x48] sm:$0xff] %v165_v9  ;;  %168 = vst [vmem:[%s1193_s24 + $0x50] sm:$0xff] %v167_v10  ;;  %v175_v14 = vld [vmem:[%s1185_s23 + $0xd0] sm:$0xff]  ;;  %v177_v15 = vld [vmem:[%s1185_s23 + $0xd8] sm:$0xff] }
  0x18   : > { %170 = vst [vmem:[%s1193_s24 + $0x58] sm:$0xff] %v169_v11  ;;  %172 = vst [vmem:[%s1193_s24 + $0x60] sm:$0xff] %v171_v12  ;;  %v179_v16 = vld [vmem:[%s1185_s23 + $0x100] sm:$0xff]  ;;  %v181_v17 = vld [vmem:[%s1185_s23 + $0x108] sm:$0xff] }
  0x19   : > { %174 = vst [vmem:[%s1193_s24 + $0x68] sm:$0xff] %v173_v13  ;;  %176 = vst [vmem:[%s1193_s24 + $0x70] sm:$0xff] %v175_v14  ;;  %v183_v18 = vld [vmem:[%s1185_s23 + $0x110] sm:$0xff]  ;;  %v185_v19 = vld [vmem:[%s1185_s23 + $0x118] sm:$0xff] }
  0x1a   : > { %178 = vst [vmem:[%s1193_s24 + $0x78] sm:$0xff] %v177_v15  ;;  %180 = vst [vmem:[%s1193_s24 + $0x80] sm:$0xff] %v179_v16  ;;  %v187_v20 = vld [vmem:[%s1185_s23 + $0x140] sm:$0xff]  ;;  %v189_v21 = vld [vmem:[%s1185_s23 + $0x148] sm:$0xff] }
  0x1b   : > { %182 = vst [vmem:[%s1193_s24 + $0x88] sm:$0xff] %v181_v17  ;;  %184 = vst [vmem:[%s1193_s24 + $0x90] sm:$0xff] %v183_v18  ;;  %v191_v22 = vld [vmem:[%s1185_s23 + $0x150] sm:$0xff]  ;;  %v193_v23 = vld [vmem:[%s1185_s23 + $0x158] sm:$0xff] }
  0x1c   : > { %186 = vst [vmem:[%s1193_s24 + $0x98] sm:$0xff] %v185_v19  ;;  %188 = vst [vmem:[%s1193_s24 + $0xa0] sm:$0xff] %v187_v20  ;;  %v195_v24 = vld [vmem:[%s1185_s23 + $0x180] sm:$0xff]  ;;  %v197_v25 = vld [vmem:[%s1185_s23 + $0x188] sm:$0xff] }
  0x1d   : > { %190 = vst [vmem:[%s1193_s24 + $0xa8] sm:$0xff] %v189_v21  ;;  %192 = vst [vmem:[%s1193_s24 + $0xb0] sm:$0xff] %v191_v22  ;;  %v199_v26 = vld [vmem:[%s1185_s23 + $0x190] sm:$0xff]  ;;  %v201_v27 = vld [vmem:[%s1185_s23 + $0x198] sm:$0xff] }
  0x1e   : > { %194 = vst [vmem:[%s1193_s24 + $0xb8] sm:$0xff] %v193_v23  ;;  %196 = vst [vmem:[%s1193_s24 + $0xc0] sm:$0xff] %v195_v24  ;;  %v203_v28 = vld [vmem:[%s1185_s23 + $0x1c0] sm:$0xff]  ;;  %v205_v29 = vld [vmem:[%s1185_s23 + $0x1c8] sm:$0xff] }
  0x1f   : > { %198 = vst [vmem:[%s1193_s24 + $0xc8] sm:$0xff] %v197_v25  ;;  %200 = vst [vmem:[%s1193_s24 + $0xd0] sm:$0xff] %v199_v26  ;;  %v207_v30 = vld [vmem:[%s1185_s23 + $0x1d0] sm:$0xff]  ;;  %v209_v31 = vld [vmem:[%s1185_s23 + $0x1d8] sm:$0xff] }
  0x20   : > { %202 = vst [vmem:[%s1193_s24 + $0xd8] sm:$0xff] %v201_v27  ;;  %204 = vst [vmem:[%s1193_s24 + $0xe0] sm:$0xff] %v203_v28  ;;  %v211_v32 = vld [vmem:[%s1185_s23 + $0x200] sm:$0xff]  ;;  %v213_v33 = vld [vmem:[%s1185_s23 + $0x208] sm:$0xff] }
  0x21   : > { %206 = vst [vmem:[%s1193_s24 + $0xe8] sm:$0xff] %v205_v29  ;;  %208 = vst [vmem:[%s1193_s24 + $0xf0] sm:$0xff] %v207_v30  ;;  %v215_v34 = vld [vmem:[%s1185_s23 + $0x210] sm:$0xff]  ;;  %v217_v35 = vld [vmem:[%s1185_s23 + $0x218] sm:$0xff] }
  0x22   : > { %210 = vst [vmem:[%s1193_s24 + $0xf8] sm:$0xff] %v209_v31  ;;  %212 = vst [vmem:[%s1193_s24 + $0x100] sm:$0xff] %v211_v32  ;;  %v219_v36 = vld [vmem:[%s1185_s23 + $0x240] sm:$0xff]  ;;  %v221_v37 = vld [vmem:[%s1185_s23 + $0x248] sm:$0xff] }
  0x23   : > { %214 = vst [vmem:[%s1193_s24 + $0x108] sm:$0xff] %v213_v33  ;;  %216 = vst [vmem:[%s1193_s24 + $0x110] sm:$0xff] %v215_v34  ;;  %v223_v38 = vld [vmem:[%s1185_s23 + $0x250] sm:$0xff]  ;;  %v225_v39 = vld [vmem:[%s1185_s23 + $0x258] sm:$0xff] }
  0x24   : > { %218 = vst [vmem:[%s1193_s24 + $0x118] sm:$0xff] %v217_v35  ;;  %220 = vst [vmem:[%s1193_s24 + $0x120] sm:$0xff] %v219_v36  ;;  %v227_v40 = vld [vmem:[%s1185_s23 + $0x280] sm:$0xff]  ;;  %v229_v41 = vld [vmem:[%s1185_s23 + $0x288] sm:$0xff] }
  0x25   : > { %222 = vst [vmem:[%s1193_s24 + $0x128] sm:$0xff] %v221_v37  ;;  %224 = vst [vmem:[%s1193_s24 + $0x130] sm:$0xff] %v223_v38  ;;  %v231_v42 = vld [vmem:[%s1185_s23 + $0x290] sm:$0xff]  ;;  %v233_v43 = vld [vmem:[%s1185_s23 + $0x298] sm:$0xff] }
  0x26   : > { %226 = vst [vmem:[%s1193_s24 + $0x138] sm:$0xff] %v225_v39  ;;  %228 = vst [vmem:[%s1193_s24 + $0x140] sm:$0xff] %v227_v40  ;;  %v235_v44 = vld [vmem:[%s1185_s23 + $0x2c0] sm:$0xff]  ;;  %v237_v45 = vld [vmem:[%s1185_s23 + $0x2c8] sm:$0xff] }
  0x27   : > { %230 = vst [vmem:[%s1193_s24 + $0x148] sm:$0xff] %v229_v41  ;;  %232 = vst [vmem:[%s1193_s24 + $0x150] sm:$0xff] %v231_v42  ;;  %v239_v46 = vld [vmem:[%s1185_s23 + $0x2d0] sm:$0xff]  ;;  %v241_v47 = vld [vmem:[%s1185_s23 + $0x2d8] sm:$0xff] }
  0x28   : > { %234 = vst [vmem:[%s1193_s24 + $0x158] sm:$0xff] %v233_v43  ;;  %236 = vst [vmem:[%s1193_s24 + $0x160] sm:$0xff] %v235_v44  ;;  %v243_v48 = vld [vmem:[%s1185_s23 + $0x300] sm:$0xff]  ;;  %v245_v49 = vld [vmem:[%s1185_s23 + $0x308] sm:$0xff] }
  0x29   : > { %238 = vst [vmem:[%s1193_s24 + $0x168] sm:$0xff] %v237_v45  ;;  %240 = vst [vmem:[%s1193_s24 + $0x170] sm:$0xff] %v239_v46  ;;  %v247_v50 = vld [vmem:[%s1185_s23 + $0x310] sm:$0xff]  ;;  %v249_v51 = vld [vmem:[%s1185_s23 + $0x318] sm:$0xff] }
  0x2a   : > { %242 = vst [vmem:[%s1193_s24 + $0x178] sm:$0xff] %v241_v47  ;;  %244 = vst [vmem:[%s1193_s24 + $0x180] sm:$0xff] %v243_v48 }
  0x2b   : > { %246 = vst [vmem:[%s1193_s24 + $0x188] sm:$0xff] %v245_v49  ;;  %248 = vst [vmem:[%s1193_s24 + $0x190] sm:$0xff] %v247_v50 }
  0x2c   : > { %250 = vst [vmem:[%s1193_s24 + $0x198] sm:$0xff] %v249_v51 }
  0x2d PF: > { %p963_p6 = scmp.ge.s32.totalorder %s1123_s13, 1  ;;  %p255_p7 = scmp.lt.s32.totalorder %s1123_s13, 3 }
  0x2f   : > { %p256_p8 = pnand %p963_p6, %p255_p7 }
  0x30   : > { %s262_s25 = sand.u32 (!%p256_p8), 1, %s1107_s9   ;;  %v1125_v52 = vmov (!%p256_p8), 0   ;;  %vm622_vm0 = vcmask (!%p256_p8), 1041408   ;;  %vm618_vm1 = vcmask (!%p256_p8), 818176   ;;  %s964_s30 = sshll.u32 (!%p256_p8), %s1115_s11, 3 }
  0x31   : > { %259 = sbr.rel (%p256_p8) target bundleno = 333 (0x14d), region = 47  ;;  %679 = vmatprep.mubr.bf16.mxu0 (!%p256_p8), %v1125_v52  ;;  %720 = vmatprep.mubr.bf16.mxu1 (!%p256_p8), %v1125_v52  ;;  %p297_p9 = scmp.lt.s32.totalorder (!%p256_p8), %s964_s30, 15 }
  0x32   : > { %s1034_s26 = smul.u32 (!%p256_p8), 416, %s262_s25 }
  0x34   : > { %s1298_s27 = scalar_lea.vmem (!%p256_p8), [#allocation2], %s1034_s26 }
  0x35   : > { %v306_v53 = vld [vmem:[%s1298_s27] sm:$0xff] (!%p256_p8)  ;;  %v307_v55 = vld [vmem:[%s1298_s27 + $0x8] sm:$0xff] (!%p256_p8)  ;;  %v308_v43 = vld [vmem:[%s1298_s27 + $0x10] sm:$0xff] (!%p256_p8) }
  0x36   : > { %v310_v54 = vld [vmem:[%s1298_s27 + $0x20] sm:$0xff] (!%p256_p8)  ;;  %v311_v57 = vld [vmem:[%s1298_s27 + $0x28] sm:$0xff] (!%p256_p8)  ;;  %v312_v44 = vld [vmem:[%s1298_s27 + $0x30] sm:$0xff] (!%p256_p8) }
  0x37   : > { %v967_v56 = vcombine.high (!%p256_p8), %v306_v53, %v310_v54  ;;  %v966_v58 = vcombine.low (!%p256_p8), %v306_v53, %v310_v54  ;;  %v314_v59 = vld [vmem:[%s1298_s27 + $0x40] sm:$0xff] (!%p256_p8)  ;;  %v969_v61 = vcombine.high (!%p256_p8), %v307_v55, %v311_v57  ;;  %v968_v62 = vcombine.low (!%p256_p8), %v307_v55, %v311_v57  ;;  %v315_v0 = vld [vmem:[%s1298_s27 + $0x48] sm:$0xff] (!%p256_p8)  ;;  %v309_v45 = vld [vmem:[%s1298_s27 + $0x18] sm:$0xff] (!%p256_p8) }
  0x38   : > { %v318_v60 = vld [vmem:[%s1298_s27 + $0x60] sm:$0xff]  ;;  %v319_v1 = vld [vmem:[%s1298_s27 + $0x68] sm:$0xff]  ;;  %v313_v46 = vld [vmem:[%s1298_s27 + $0x38] sm:$0xff]  ;;  %v971_v48 = vcombine.high %v308_v43, %v312_v44  ;;  %v970_v57 = vcombine.low %v308_v43, %v312_v44  ;;  %s1404_s30 = smov (!%p297_p9, %s964_s30), 15 }
  0x39   : > { %v975_v63 = vcombine.high %v314_v59, %v318_v60  ;;  %v322_v2 = vld [vmem:[%s1298_s27 + $0x80] sm:$0xff]  ;;  %647 = vmatprep.subr.bf16.mxu0 %v967_v56  ;;  %v977_v3 = vcombine.high %v315_v0, %v319_v1  ;;  %v323_v5 = vld [vmem:[%s1298_s27 + $0x88] sm:$0xff]  ;;  %688 = vmatprep.subr.bf16.mxu1 %v969_v61  ;;  %v974_v7 = vcombine.low %v314_v59, %v318_v60  ;;  %v316_v51 = vld [vmem:[%s1298_s27 + $0x50] sm:$0xff]  ;;  %s965_s3 = sshll.u32 %s1404_s30, 1 }
  0x3a   : > { %v326_v4 = vld [vmem:[%s1298_s27 + $0xa0] sm:$0xff]  ;;  %v327_v6 = vld [vmem:[%s1298_s27 + $0xa8] sm:$0xff]  ;;  %648 = vmatpush1.bf16.msra.mxu0 %v966_v58  ;;  %689 = vmatpush1.bf16.msra.mxu1 %v968_v62  ;;  %v976_v8 = vcombine.low %v315_v0, %v319_v1  ;;  %v973_v50 = vcombine.high %v309_v45, %v313_v46  ;;  %v320_v53 = vld [vmem:[%s1298_s27 + $0x70] sm:$0xff]  ;;  %v972_v58 = vcombine.low %v309_v45, %v313_v46  ;;  %s302_s6 = scalar_lea.vmem %s1396_s2, %s965_s3 }
  0x3b   : > { %649 = vmatprep.subr.bf16.mxu0 %v975_v63  ;;  %v983_v9 = vcombine.high %v322_v2, %v326_v4  ;;  %690 = vmatprep.subr.bf16.mxu1 %v977_v3  ;;  %v985_v10 = vcombine.high %v323_v5, %v327_v6  ;;  %v330_v11 = vld [vmem:[%s1298_s27 + $0xc0] sm:$0xff]  ;;  %v331_v13 = vld [vmem:[%s1298_s27 + $0xc8] sm:$0xff]  ;;  %v982_v15 = vcombine.low %v322_v2, %v326_v4  ;;  %v317_v54 = vld [vmem:[%s1298_s27 + $0x58] sm:$0xff] }
  0x3c   : > { %v334_v12 = vld [vmem:[%s1298_s27 + $0xe0] sm:$0xff]  ;;  %v335_v14 = vld [vmem:[%s1298_s27 + $0xe8] sm:$0xff]  ;;  %v984_v16 = vcombine.low %v323_v5, %v327_v6  ;;  %v321_v55 = vld [vmem:[%s1298_s27 + $0x78] sm:$0xff]  ;;  %v979_v59 = vcombine.high %v316_v51, %v320_v53  ;;  %v978_v1 = vcombine.low %v316_v51, %v320_v53 }
  0x3d   : > { %v991_v17 = vcombine.high %v330_v11, %v334_v12  ;;  %v993_v18 = vcombine.high %v331_v13, %v335_v14  ;;  %v338_v19 = vld [vmem:[%s1298_s27 + $0x100] sm:$0xff]  ;;  %v339_v21 = vld [vmem:[%s1298_s27 + $0x108] sm:$0xff]  ;;  %v990_v23 = vcombine.low %v330_v11, %v334_v12  ;;  %v992_v24 = vcombine.low %v331_v13, %v335_v14  ;;  %v324_v61 = vld [vmem:[%s1298_s27 + $0x90] sm:$0xff] }
  0x3e   : > { %650 = vmatpush1.bf16.msra.mxu0 %v974_v7  ;;  %691 = vmatpush1.bf16.msra.mxu1 %v976_v8  ;;  %v342_v20 = vld [vmem:[%s1298_s27 + $0x120] sm:$0xff]  ;;  %v343_v22 = vld [vmem:[%s1298_s27 + $0x128] sm:$0xff]  ;;  %v981_v60 = vcombine.high %v317_v54, %v321_v55  ;;  %v328_v62 = vld [vmem:[%s1298_s27 + $0xb0] sm:$0xff]  ;;  %v980_v2 = vcombine.low %v317_v54, %v321_v55 }
  0x3f   : > { %651 = vmatprep.subr.bf16.mxu0 %v983_v9  ;;  %692 = vmatprep.subr.bf16.mxu1 %v985_v10  ;;  %v999_v25 = vcombine.high %v338_v19, %v342_v20  ;;  %v1001_v26 = vcombine.high %v339_v21, %v343_v22  ;;  %v346_v27 = vld [vmem:[%s1298_s27 + $0x140] sm:$0xff]  ;;  %v347_v29 = vld [vmem:[%s1298_s27 + $0x148] sm:$0xff]  ;;  %v998_v31 = vcombine.low %v338_v19, %v342_v20  ;;  %v325_v63 = vld [vmem:[%s1298_s27 + $0x98] sm:$0xff] }
  0x40   : > { %v350_v28 = vld [vmem:[%s1298_s27 + $0x160] sm:$0xff]  ;;  %v351_v30 = vld [vmem:[%s1298_s27 + $0x168] sm:$0xff]  ;;  %v1000_v32 = vcombine.low %v339_v21, %v343_v22  ;;  %v329_v0 = vld [vmem:[%s1298_s27 + $0xb8] sm:$0xff]  ;;  %v987_v3 = vcombine.high %v324_v61, %v328_v62  ;;  %v986_v9 = vcombine.low %v324_v61, %v328_v62 }
  0x41   : > { %v1007_v33 = vcombine.high %v346_v27, %v350_v28  ;;  %v1009_v34 = vcombine.high %v347_v29, %v351_v30  ;;  %v354_v35 = vld [vmem:[%s1298_s27 + $0x180] sm:$0x33]  ;;  %v355_v36 = vld [vmem:[%s1298_s27 + $0x188] sm:$0x33]  ;;  %v1006_v37 = vcombine.low %v346_v27, %v350_v28  ;;  %v1008_v38 = vcombine.low %v347_v29, %v351_v30  ;;  %v332_v5 = vld [vmem:[%s1298_s27 + $0xd0] sm:$0xff] }
  0x42   : > { %652 = vmatpush1.bf16.msra.mxu0 %v982_v15  ;;  %693 = vmatpush1.bf16.msra.mxu1 %v984_v16  ;;  %v1015_v39 = vcombine.high %v354_v35, %v354_v35  ;;  %v1014_v40 = vcombine.low %v354_v35, %v354_v35  ;;  %v1017_v41 = vcombine.high %v355_v36, %v355_v36  ;;  %v1341_v56 = vld [vmem:[%s1394_s0] sm:$0x1]  ;;  %v336_v6 = vld [vmem:[%s1298_s27 + $0xf0] sm:$0xff]  ;;  %v333_v7 = vld [vmem:[%s1298_s27 + $0xd8] sm:$0xff] }
  0x43   : > { %653 = vmatprep.subr.bf16.mxu0 %v991_v17  ;;  %694 = vmatprep.subr.bf16.mxu1 %v993_v18  ;;  %v1016_v42 = vcombine.low %v355_v36, %v355_v36  ;;  %v989_v4 = vcombine.high %v325_v63, %v329_v0  ;;  %v337_v8 = vld [vmem:[%s1298_s27 + $0xf8] sm:$0xff]  ;;  %v988_v10 = vcombine.low %v325_v63, %v329_v0  ;;  %v340_v13 = vld [vmem:[%s1298_s27 + $0x110] sm:$0xff] }
  0x44   : > { %v624_v47 = vsel %vm622_vm0, %v1014_v40, 0  ;;  %v995_v11 = vcombine.high %v332_v5, %v336_v6  ;;  %v997_v12 = vcombine.high %v333_v7, %v337_v8  ;;  %v344_v14 = vld [vmem:[%s1298_s27 + $0x130] sm:$0xff]  ;;  %v341_v15 = vld [vmem:[%s1298_s27 + $0x118] sm:$0xff]  ;;  %v994_v17 = vcombine.low %v332_v5, %v336_v6 }
  0x45   : > { %v630_v49 = vsel %vm622_vm0, %v1016_v42, 0  ;;  %v345_v16 = vld [vmem:[%s1298_s27 + $0x138] sm:$0xff]  ;;  %v1003_v18 = vcombine.high %v340_v13, %v344_v14  ;;  %v348_v20 = vld [vmem:[%s1298_s27 + $0x150] sm:$0xff]  ;;  %v824_v40 = vlaneseq }
  0x46   : > { %654 = vmatpush1.bf16.msra.mxu0 %v990_v23  ;;  %695 = vmatpush1.bf16.msra.mxu1 %v992_v24  ;;  %v1005_v19 = vcombine.high %v341_v15, %v345_v16  ;;  %v352_v21 = vld [vmem:[%s1298_s27 + $0x170] sm:$0xff]  ;;  %v349_v22 = vld [vmem:[%s1298_s27 + $0x158] sm:$0xff]  ;;  %v1002_v24 = vcombine.low %v340_v13, %v344_v14 }
  0x47   : > { %655 = vmatprep.subr.bf16.mxu0 %v999_v25  ;;  %696 = vmatprep.subr.bf16.mxu1 %v1001_v26  ;;  %v353_v23 = vld [vmem:[%s1298_s27 + $0x178] sm:$0xff]  ;;  %v1004_v25 = vcombine.low %v341_v15, %v345_v16  ;;  %v1011_v26 = vcombine.high %v348_v20, %v352_v21  ;;  %v356_v28 = vld [vmem:[%s1298_s27 + $0x190] sm:$0x33]  ;;  %v1010_v30 = vcombine.low %v348_v20, %v352_v21  ;;  %v825_v42 = vshrl.u32 %v824_v40, 7 }
  0x48   : > { %v1013_v27 = vcombine.high %v349_v22, %v353_v23  ;;  %v357_v29 = vld [vmem:[%s1298_s27 + $0x198] sm:$0x33] }
  0x49   : > { %v1020_v35 = vcombine.low %v357_v29, %v357_v29 }
  0x4a   : > { %656 = vmatpush1.bf16.msra.mxu0 %v998_v31  ;;  %697 = vmatpush1.bf16.msra.mxu1 %v1000_v32  ;;  %v1012_v31 = vcombine.low %v349_v22, %v353_v23  ;;  %v1019_v32 = vcombine.high %v356_v28, %v356_v28 }
  0x4b   : > { %657 = vmatprep.subr.bf16.mxu0 %v1007_v33  ;;  %698 = vmatprep.subr.bf16.mxu1 %v1009_v34  ;;  %v1018_v33 = vcombine.low %v356_v28, %v356_v28  ;;  %v1021_v34 = vcombine.high %v357_v29, %v357_v29 }
  0x4d   : > { %v636_v36 = vsel %vm622_vm0, %v1018_v33, 0 }
  0x4e   : > { %658 = vmatpush1.bf16.msra.mxu0 %v1006_v37  ;;  %699 = vmatpush1.bf16.msra.mxu1 %v1008_v38  ;;  %v642_v37 = vsel %vm622_vm0, %v1020_v35, 0  ;;  %v1126_v38 = vmov 1983009808  }
  0x4f   : > { %1022 = vmatprep.subr.msk.bf16.mxu0 %vm622_vm0, %v1015_v39  ;;  %1024 = vmatprep.subr.msk.bf16.mxu1 %vm622_vm0, %v1017_v41  ;;  %v822_v39 = vunpack.c.l.s4 %v1126_v38 }
  0x51   : > { %v823_v41 = vunpack.c.0.s8 %v822_v39 }
  0x52   : > { %660 = vmatpush1.bf16.msra.mxu0 %v624_v47  ;;  %701 = vmatpush1.bf16.msra.mxu1 %v630_v49 }
  0x53   : > { %729 = vmatprep.subr.bf16.mxu0 %v971_v48  ;;  %770 = vmatprep.subr.bf16.mxu1 %v973_v50  ;;  %v826_v44 = vsub.s32 %v823_v41, %v825_v42 }
  0x55   : > { %1023 = vmatmul.mubr.msk.bf16.vlgmr.msra.gmra.mrb[0].mxu0 %vm618_vm1, %v1341_v56  ;;  %1025 = vmatmul.mubr.msk.bf16.vlgmr.msra.gmra.mrb[0].mxu1 %vm618_vm1, %v1341_v56 }
  0x56   : > { %730 = vmatpush1.bf16.msra.mxu0 %v970_v57  ;;  %771 = vmatpush1.bf16.msra.mxu1 %v972_v58 }
  0x57   : > { %731 = vmatprep.subr.bf16.mxu0 %v979_v59  ;;  %772 = vmatprep.subr.bf16.mxu1 %v981_v60 }
  0x58   : > { %761 = vmatprep.mubr.bf16.mxu0 %v1125_v52  ;;  %802 = vmatprep.mubr.bf16.mxu1 %v1125_v52  ;;  %v996_v52 = vcombine.low %v333_v7, %v337_v8 }
  0x5a   : > { %732 = vmatpush1.bf16.msra.mxu0 %v978_v1  ;;  %773 = vmatpush1.bf16.msra.mxu1 %v980_v2 }
  0x5b   : > { %733 = vmatprep.subr.bf16.mxu0 %v987_v3  ;;  %774 = vmatprep.subr.bf16.mxu1 %v989_v4 }
  0x5e   : > { %734 = vmatpush1.bf16.msra.mxu0 %v986_v9  ;;  %775 = vmatpush1.bf16.msra.mxu1 %v988_v10 }
  0x5f   : > { %735 = vmatprep.subr.bf16.mxu0 %v995_v11  ;;  %776 = vmatprep.subr.bf16.mxu1 %v997_v12 }
  0x62   : > { %736 = vmatpush1.bf16.msra.mxu0 %v994_v17  ;;  %777 = vmatpush1.bf16.msra.mxu1 %v996_v52 }
  0x63   : > { %737 = vmatprep.subr.bf16.mxu0 %v1003_v18  ;;  %778 = vmatprep.subr.bf16.mxu1 %v1005_v19 }
  0x66   : > { %738 = vmatpush1.bf16.msra.mxu0 %v1002_v24  ;;  %779 = vmatpush1.bf16.msra.mxu1 %v1004_v25 }
  0x67   : > { %739 = vmatprep.subr.bf16.mxu0 %v1011_v26  ;;  %780 = vmatprep.subr.bf16.mxu1 %v1013_v27 }
  0x6a   : > { %740 = vmatpush1.bf16.msra.mxu0 %v1010_v30  ;;  %781 = vmatpush1.bf16.msra.mxu1 %v1012_v31 }
  0x6b   : > { %1026 = vmatprep.subr.msk.bf16.mxu0 %vm622_vm0, %v1019_v32  ;;  %1028 = vmatprep.subr.msk.bf16.mxu1 %vm622_vm0, %v1021_v34 }
  0x6e   : > { %742 = vmatpush1.bf16.msra.mxu0 %v636_v36  ;;  %783 = vmatpush1.bf16.msra.mxu1 %v642_v37 }
  0x71   : > { %1027 = vmatmul.mubr.msk.bf16.vlgmr.msra.gmra.mrb[4].mxu0 %vm618_vm1, %v1341_v56  ;;  %1029 = vmatmul.mubr.msk.bf16.vlgmr.msra.gmra.mrb[4].mxu1 %vm618_vm1, %v1341_v56 }
 0x128   : > { %v681_v43 = vpop.f32.mrb[0].mxu0  ;;  %v722_v45 = vpop.f32.mrb[0].mxu1 }
 0x129   : > { %v683_v46 = vpop.f32.mrb[1].mxu0  ;;  %v724_v48 = vpop.f32.mrb[1].mxu1 }
 0x12a   : > { %v819_v47 = vcombine.low %v681_v43, %v683_v46  ;;  %v685_v49 = vpop.f32.mrb[2].mxu0  ;;  %v820_v50 = vcombine.low %v722_v45, %v724_v48  ;;  %v726_v51 = vpop.f32.mrb[2].mxu1 }
 0x12b   : > { %v686_v53 = vpop.f32.mrb[3].mxu0  ;;  %v727_v55 = vpop.f32.mrb[3].mxu1 }
 0x12c   : > { %v827_v54 = vrot.slane %v819_v47, %v826_v44  ;;  %v834_v56 = vrot.slane %v820_v50, %v826_v44 }
 0x12e   : > { %v835_v57 = vcombine.low %v827_v54, %v834_v56 }
 0x130   : > { %855 = vst [vmem:[%s302_s6] sm:$0xff] %v835_v57 }
 0x144   : > { %v763_v58 = vpop.f32.mrb[4].mxu0  ;;  %v804_v59 = vpop.f32.mrb[4].mxu1 }
 0x145   : > { %v765_v60 = vpop.f32.mrb[5].mxu0  ;;  %v806_v62 = vpop.f32.mrb[5].mxu1 }
 0x146   : > { %v836_v61 = vcombine.low %v763_v58, %v765_v60  ;;  %v767_v63 = vpop.f32.mrb[6].mxu0  ;;  %v837_v0 = vcombine.low %v804_v59, %v806_v62  ;;  %v808_v1 = vpop.f32.mrb[6].mxu1 }
 0x147   : > { %v768_v2 = vpop.f32.mrb[7].mxu0  ;;  %v809_v4 = vpop.f32.mrb[7].mxu1 }
 0x148   : > { %v844_v3 = vrot.slane %v836_v61, %v826_v44  ;;  %v851_v5 = vrot.slane %v837_v0, %v826_v44 }
 0x14a   : > { %v852_v6 = vcombine.low %v844_v3, %v851_v5 }
 0x14c   : > { %856 = vst [vmem:[%s302_s6 + $0x8] sm:$0xff] %v852_v6 }
 0x14d PF: > { %s12_s13 = sadd.s32 1, %s1123_s13   ;;  %s1397_s9 = smov %s1111_s10 }
 0x14e   : > { %p9_p10 = scmp.ge.s32.totalorder %s12_s13, 4   ;;  %s1398_s10 = smov %s1177_s17 }
 0x14f   : > { %s1399_s11 = smov %s1119_s12  ;;  %s1400_s12 = smov %s1402_s14 }
 0x150   :  { %11 = sbr.rel (!%p9_p10) target bundleno = 3 (0x3), region = 89 }

// kernel: generator_forward.15
= control target key start
LH: loop header
LB: loop body
LE: loop exit
PB: predicated region body
PF: predicated region fallthrough
CT: control target
= control target key end

     0   :  { %v14_v0 = vlaneseq  ;;  %v154_v4 = vmov 1966171168   ;;  %v155_v11 = vmov 0.0   ;;  %s213_s0 = inlined_call_operand.vmem [shape: f32[8,512], index: 0, kind: input, shape index: {}]   ;;  %s214_s1 = inlined_call_operand.vmem [shape: f32[1,512], index: 1, kind: output, shape index: {0}]   ;;  %s215_s2 = inlined_call_operand.vmem [shape: f32[1,512], index: 2, kind: output, shape index: {1}]  }
   0x1   :  { %v20_v1 = vld [vmem:[%s213_s0] sm:$0xff]  ;;  %v21_v2 = vld [vmem:[%s213_s0 + $0x8] sm:$0xff]  ;;  %v22_v3 = vld [vmem:[%s213_s0 + $0x10] sm:$0xff]  ;;  %v56_v5 = vunpack.c.l.s4 %v154_v4 }
   0x2   :  { %vm180_vm0 = vcmp.lt.s32.totalorder %v14_v0, 512  ;;  %v23_v7 = vld [vmem:[%s213_s0 + $0x18] sm:$0xff]  ;;  %v25_v8 = vrot.slane %v20_v1, 4  ;;  %v31_v9 = vrot.slane %v21_v2, 4  ;;  %v37_v10 = vrot.slane %v22_v3, 4 }
   0x3   :  { %18 = vst.msk [vmem:[%s214_s1] sm:$0xf] %vm180_vm0, %v155_v11  ;;  %v43_v12 = vrot.slane %v23_v7, 4  ;;  %v57_v13 = vunpack.c.0.s8 %v56_v5  ;;  %v59_v14 = vshrl.u32 %v14_v0, 7  ;;  %19 = vst.msk [vmem:[%s215_s2] sm:$0xf] %vm180_vm0, %v155_v11  ;;  %v85_v15 = vmul.f32 %v20_v1, %v20_v1 }
   0x4   :  { %v26_v16 = vadd.f32 %v25_v8, %v20_v1  ;;  %v32_v17 = vadd.f32 %v31_v9, %v21_v2  ;;  %v38_v18 = vadd.f32 %v37_v10, %v22_v3  ;;  %v86_v19 = vmul.f32 %v21_v2, %v21_v2 }
   0x5   :  { %v44_v20 = vadd.f32 %v43_v12, %v23_v7  ;;  %v60_v21 = vsub.s32 %v57_v13, %v59_v14  ;;  %v87_v22 = vmul.f32 %v22_v3, %v22_v3  ;;  %v88_v23 = vmul.f32 %v23_v7, %v23_v7 }
   0x6   :  { %v27_v24 = vrot.slane %v26_v16, 2  ;;  %v33_v25 = vrot.slane %v32_v17, 2  ;;  %v39_v26 = vrot.slane %v38_v18, 2  ;;  %v89_v27 = vrot.slane %v85_v15, 4 }
   0x7   :  { %v45_v28 = vrot.slane %v44_v20, 2  ;;  %v95_v29 = vrot.slane %v86_v19, 4  ;;  %v101_v30 = vrot.slane %v87_v22, 4  ;;  %v107_v31 = vrot.slane %v88_v23, 4 }
   0x8   :  { %v28_v32 = vadd.f32 %v27_v24, %v26_v16  ;;  %v34_v33 = vadd.f32 %v33_v25, %v32_v17  ;;  %v40_v34 = vadd.f32 %v39_v26, %v38_v18  ;;  %v90_v35 = vadd.f32 %v89_v27, %v85_v15 }
   0x9   :  { %v46_v36 = vadd.f32 %v45_v28, %v44_v20  ;;  %v96_v37 = vadd.f32 %v95_v29, %v86_v19  ;;  %v102_v38 = vadd.f32 %v101_v30, %v87_v22  ;;  %v108_v39 = vadd.f32 %v107_v31, %v88_v23 }
   0xa   :  { %v29_v40 = vrot.slane %v28_v32, 1  ;;  %v35_v41 = vrot.slane %v34_v33, 1  ;;  %v41_v42 = vrot.slane %v40_v34, 1  ;;  %v91_v43 = vrot.slane %v90_v35, 2  ;;  %v24_v8 = vld [vmem:[%s214_s1] sm:$0xf] }
   0xb   :  { %v47_v44 = vrot.slane %v46_v36, 1  ;;  %v97_v45 = vrot.slane %v96_v37, 2  ;;  %v103_v46 = vrot.slane %v102_v38, 2  ;;  %v109_v47 = vrot.slane %v108_v39, 2  ;;  %v84_v14 = vld [vmem:[%s215_s2] sm:$0xf] }
   0xc   :  { %v30_v48 = vadd.f32 %v29_v40, %v28_v32  ;;  %v36_v49 = vadd.f32 %v35_v41, %v34_v33  ;;  %v42_v50 = vadd.f32 %v41_v42, %v40_v34  ;;  %v92_v51 = vadd.f32 %v91_v43, %v90_v35 }
   0xd   :  { %v48_v52 = vadd.f32 %v47_v44, %v46_v36  ;;  %v98_v53 = vadd.f32 %v97_v45, %v96_v37  ;;  %v104_v54 = vadd.f32 %v103_v46, %v102_v38  ;;  %v110_v55 = vadd.f32 %v109_v47, %v108_v39 }
   0xe   :  { %v53_v56 = vcombine.low %v30_v48, %v36_v49  ;;  %v93_v57 = vrot.slane %v92_v51, 1 }
   0xf   :  { %v54_v58 = vcombine.low %v42_v50, %v48_v52  ;;  %v99_v59 = vrot.slane %v98_v53, 1  ;;  %v105_v60 = vrot.slane %v104_v54, 1  ;;  %v111_v61 = vrot.slane %v110_v55, 1 }
  0x10   :  { %v61_v62 = vrot.slane %v53_v56, %v60_v21  ;;  %v94_v63 = vadd.f32 %v93_v57, %v92_v51 }
  0x11   :  { %v68_v0 = vrot.slane %v54_v58, %v60_v21  ;;  %v100_v1 = vadd.f32 %v99_v59, %v98_v53  ;;  %v106_v2 = vadd.f32 %v105_v60, %v104_v54  ;;  %v112_v3 = vadd.f32 %v111_v61, %v110_v55 }
  0x13   :  { %v69_v4 = vcombine.low %v61_v62, %v68_v0  ;;  %v117_v5 = vcombine.low %v94_v63, %v100_v1  ;;  %v118_v7 = vcombine.low %v106_v2, %v112_v3 }
  0x15   :  { %v76_v9 = vrot.slane %v69_v4, %v60_v21  ;;  %v125_v10 = vrot.slane %v117_v5, %v60_v21  ;;  %v132_v11 = vrot.slane %v118_v7, %v60_v21 }
  0x17   :  { %v78_v12 = vadd.f32 %v76_v9, %v24_v8  ;;  %v133_v13 = vcombine.low %v125_v10, %v132_v11 }
  0x19   :  { %83 = vst.msk [vmem:[%s214_s1] sm:$0xf] %vm180_vm0, %v78_v12  ;;  %v140_v15 = vrot.slane %v133_v13, %v60_v21 }
  0x1b   :  { %v142_v16 = vadd.f32 %v140_v15, %v84_v14 }
  0x1d   :  { %143 = vst.msk [vmem:[%s215_s2] sm:$0xf] %vm180_vm0, %v142_v16 }

// kernel: generator_forward.16
= control target key start
LH: loop header
LB: loop body
LE: loop exit
PB: predicated region body
PF: predicated region fallthrough
CT: control target
= control target key end

     0   :  { %v20_v0 = vlaneseq  ;;  %s144_s1 = inlined_call_operand.vmem [shape: f32[1,512], index: 1, kind: input, shape index: {}]   ;;  %s145_s2 = inlined_call_operand.vmem [shape: f32[1,512], index: 2, kind: input, shape index: {}]   ;;  %s146_s0 = inlined_call_operand.vmem [shape: f32[8,512], index: 0, kind: input, shape index: {}]   ;;  %s147_s3 = inlined_call_operand.vmem [shape: bf16[8,512], index: 3, kind: output, shape index: {}]  }
   0x1   :  { %v18_v2 = vld [vmem:[%s144_s1] sm:$0xf]  ;;  %v15_v9 = vld [vmem:[%s146_s0 + $0x8] sm:$0xff]  ;;  %v16_v14 = vld [vmem:[%s146_s0 + $0x10] sm:$0xff] }
   0x2   :  { %v21_v1 = vshrl.u32 %v20_v0, 7  ;;  %v44_v3 = vld [vmem:[%s145_s2] sm:$0xf]  ;;  %v17_v15 = vld [vmem:[%s146_s0 + $0x18] sm:$0xff] }
   0x3   :  { %v14_v8 = vld [vmem:[%s146_s0] sm:$0xff] }
   0x4   :  { %v22_v4 = vsub.s32 0, %v21_v1  ;;  %v26_v5 = vsub.s32 1, %v21_v1  ;;  %v30_v6 = vsub.s32 2, %v21_v1  ;;  %v34_v7 = vsub.s32 3, %v21_v1 }
   0x6   :  { %v23_v10 = vrot.slane %v18_v2, %v22_v4  ;;  %v27_v11 = vrot.slane %v18_v2, %v26_v5  ;;  %v49_v12 = vrot.slane %v44_v3, %v22_v4  ;;  %v53_v13 = vrot.slane %v44_v3, %v26_v5 }
   0x7   :  { %v31_v16 = vrot.slane %v18_v2, %v30_v6  ;;  %v35_v17 = vrot.slane %v18_v2, %v34_v7  ;;  %v57_v18 = vrot.slane %v44_v3, %v30_v6  ;;  %v61_v19 = vrot.slane %v44_v3, %v34_v7 }
   0x8   :  { %v40_v20 = vmul.f32 %v23_v10, %v14_v8  ;;  %v41_v21 = vmul.f32 %v27_v11, %v15_v9 }
   0x9   :  { %v42_v22 = vmul.f32 %v31_v16, %v16_v14  ;;  %v43_v23 = vmul.f32 %v35_v17, %v17_v15 }
   0xa   :  { %v66_v24 = vadd.f32 %v49_v12, %v40_v20  ;;  %v67_v25 = vadd.f32 %v53_v13, %v41_v21 }
   0xb   :  { %v68_v26 = vadd.f32 %v57_v18, %v42_v22  ;;  %v69_v27 = vadd.f32 %v61_v19, %v43_v23 }
   0xc   :  { %v70_v28 = vmax.f32 %v66_v24, 0.0  ;;  %v71_v29 = vmax.f32 %v67_v25, 0.0 }
   0xd   :  { %v72_v30 = vmax.f32 %v68_v26, 0.0  ;;  %v73_v31 = vmax.f32 %v69_v27, 0.0 }
   0xe   :  { %v98_v32 = vpack.c.bf16 %v71_v29, %v70_v28 }
   0xf   :  { %v99_v33 = vpack.c.bf16 %v73_v31, %v72_v30 }
  0x10   :  { %90 = vst [vmem:[%s147_s3] sm:$0xff] %v98_v32 }
  0x11   :  { %91 = vst [vmem:[%s147_s3 + $0x8] sm:$0xff] %v99_v33 }

// kernel: generator_forward.17
= control target key start
LH: loop header
LB: loop body
LE: loop exit
PB: predicated region body
PF: predicated region fallthrough
CT: control target
= control target key end

     0   :  { %v729_v3 = vmov 0   ;;  %s1059_s1 = inlined_call_operand.vmem [shape: bf16[128,1024], index: 1, kind: input, shape index: {}]   ;;  %s1060_s0 = inlined_call_operand.vmem [shape: bf16[32,128], index: 0, kind: input, shape index: {}]   ;;  %s1061_s2 = inlined_call_operand.vmem [shape: f32[32,1024], index: 2, kind: output, shape index: {}]  }
   0x1   :  { %v16_v0 = vld [vmem:[%s1059_s1] sm:$0xff]  ;;  %v17_v2 = vld [vmem:[%s1059_s1 + $0x8] sm:$0xff]  ;;  %444 = vmatprep.mubr.bf16.mxu0 %v729_v3  ;;  %497 = vmatprep.mubr.bf16.mxu1 %v729_v3  ;;  %v18_v63 = vld [vmem:[%s1059_s1 + $0x10] sm:$0xff] }
   0x2   :  { %v20_v1 = vld [vmem:[%s1059_s1 + $0x20] sm:$0xff]  ;;  %v21_v5 = vld [vmem:[%s1059_s1 + $0x28] sm:$0xff] }
   0x3   :  { %v663_v4 = vcombine.high %v16_v0, %v20_v1  ;;  %v662_v6 = vcombine.low %v16_v0, %v20_v1  ;;  %v24_v7 = vld [vmem:[%s1059_s1 + $0x40] sm:$0xff]  ;;  %v665_v9 = vcombine.high %v17_v2, %v21_v5  ;;  %v664_v10 = vcombine.low %v17_v2, %v21_v5  ;;  %v25_v12 = vld [vmem:[%s1059_s1 + $0x48] sm:$0xff]  ;;  %v22_v0 = vld [vmem:[%s1059_s1 + $0x30] sm:$0xff] }
   0x4   :  { %v28_v8 = vld [vmem:[%s1059_s1 + $0x60] sm:$0xff]  ;;  %v29_v13 = vld [vmem:[%s1059_s1 + $0x68] sm:$0xff]  ;;  %v19_v1 = vld [vmem:[%s1059_s1 + $0x18] sm:$0xff] }
   0x5   :  { %v671_v11 = vcombine.high %v24_v7, %v28_v8  ;;  %v32_v14 = vld [vmem:[%s1059_s1 + $0x80] sm:$0xff]  ;;  %412 = vmatprep.subr.bf16.mxu0 %v663_v4  ;;  %v673_v15 = vcombine.high %v25_v12, %v29_v13  ;;  %v33_v17 = vld [vmem:[%s1059_s1 + $0x88] sm:$0xff]  ;;  %465 = vmatprep.subr.bf16.mxu1 %v665_v9  ;;  %v670_v19 = vcombine.low %v24_v7, %v28_v8  ;;  %v23_v2 = vld [vmem:[%s1059_s1 + $0x38] sm:$0xff] }
   0x6   :  { %v36_v16 = vld [vmem:[%s1059_s1 + $0xa0] sm:$0xff]  ;;  %v37_v18 = vld [vmem:[%s1059_s1 + $0xa8] sm:$0xff]  ;;  %413 = vmatpush1.bf16.msra.mxu0 %v662_v6  ;;  %466 = vmatpush1.bf16.msra.mxu1 %v664_v10  ;;  %v672_v20 = vcombine.low %v25_v12, %v29_v13  ;;  %v667_v6 = vcombine.high %v18_v63, %v22_v0  ;;  %v669_v7 = vcombine.high %v19_v1, %v23_v2  ;;  %v26_v8 = vld [vmem:[%s1059_s1 + $0x50] sm:$0xff] }
   0x7   :  { %414 = vmatprep.subr.bf16.mxu0 %v671_v11  ;;  %v679_v21 = vcombine.high %v32_v14, %v36_v16  ;;  %467 = vmatprep.subr.bf16.mxu1 %v673_v15  ;;  %v681_v22 = vcombine.high %v33_v17, %v37_v18  ;;  %v40_v23 = vld [vmem:[%s1059_s1 + $0xc0] sm:$0xff]  ;;  %v41_v25 = vld [vmem:[%s1059_s1 + $0xc8] sm:$0xff]  ;;  %v678_v27 = vcombine.low %v32_v14, %v36_v16  ;;  %v30_v9 = vld [vmem:[%s1059_s1 + $0x70] sm:$0xff] }
   0x8   :  { %v44_v24 = vld [vmem:[%s1059_s1 + $0xe0] sm:$0xff]  ;;  %v45_v26 = vld [vmem:[%s1059_s1 + $0xe8] sm:$0xff]  ;;  %v680_v28 = vcombine.low %v33_v17, %v37_v18  ;;  %v27_v11 = vld [vmem:[%s1059_s1 + $0x58] sm:$0xff]  ;;  %v666_v13 = vcombine.low %v18_v63, %v22_v0  ;;  %v668_v14 = vcombine.low %v19_v1, %v23_v2  ;;  %v675_v15 = vcombine.high %v26_v8, %v30_v9 }
   0x9   :  { %v687_v29 = vcombine.high %v40_v23, %v44_v24  ;;  %v689_v30 = vcombine.high %v41_v25, %v45_v26  ;;  %v48_v31 = vld [vmem:[%s1059_s1 + $0x100] sm:$0xff]  ;;  %v49_v33 = vld [vmem:[%s1059_s1 + $0x108] sm:$0xff]  ;;  %v686_v35 = vcombine.low %v40_v23, %v44_v24  ;;  %v688_v36 = vcombine.low %v41_v25, %v45_v26  ;;  %v31_v12 = vld [vmem:[%s1059_s1 + $0x78] sm:$0xff] }
   0xa   :  { %415 = vmatpush1.bf16.msra.mxu0 %v670_v19  ;;  %468 = vmatpush1.bf16.msra.mxu1 %v672_v20  ;;  %v52_v32 = vld [vmem:[%s1059_s1 + $0x120] sm:$0xff]  ;;  %v53_v34 = vld [vmem:[%s1059_s1 + $0x128] sm:$0xff]  ;;  %v677_v16 = vcombine.high %v27_v11, %v31_v12  ;;  %v34_v17 = vld [vmem:[%s1059_s1 + $0x90] sm:$0xff] }
   0xb   :  { %416 = vmatprep.subr.bf16.mxu0 %v679_v21  ;;  %469 = vmatprep.subr.bf16.mxu1 %v681_v22  ;;  %v695_v37 = vcombine.high %v48_v31, %v52_v32  ;;  %v697_v38 = vcombine.high %v49_v33, %v53_v34  ;;  %v56_v39 = vld [vmem:[%s1059_s1 + $0x140] sm:$0xff]  ;;  %v57_v41 = vld [vmem:[%s1059_s1 + $0x148] sm:$0xff]  ;;  %v694_v43 = vcombine.low %v48_v31, %v52_v32  ;;  %v38_v18 = vld [vmem:[%s1059_s1 + $0xb0] sm:$0xff] }
   0xc   :  { %v60_v40 = vld [vmem:[%s1059_s1 + $0x160] sm:$0xff]  ;;  %v61_v42 = vld [vmem:[%s1059_s1 + $0x168] sm:$0xff]  ;;  %v696_v44 = vcombine.low %v49_v33, %v53_v34  ;;  %v35_v19 = vld [vmem:[%s1059_s1 + $0x98] sm:$0xff]  ;;  %v674_v21 = vcombine.low %v26_v8, %v30_v9  ;;  %v676_v22 = vcombine.low %v27_v11, %v31_v12  ;;  %v683_v23 = vcombine.high %v34_v17, %v38_v18 }
   0xd   :  { %v703_v45 = vcombine.high %v56_v39, %v60_v40  ;;  %v705_v46 = vcombine.high %v57_v41, %v61_v42  ;;  %v64_v47 = vld [vmem:[%s1059_s1 + $0x180] sm:$0xff]  ;;  %v65_v49 = vld [vmem:[%s1059_s1 + $0x188] sm:$0xff]  ;;  %v702_v51 = vcombine.low %v56_v39, %v60_v40  ;;  %v704_v52 = vcombine.low %v57_v41, %v61_v42  ;;  %v39_v20 = vld [vmem:[%s1059_s1 + $0xb8] sm:$0xff] }
   0xe   :  { %417 = vmatpush1.bf16.msra.mxu0 %v678_v27  ;;  %470 = vmatpush1.bf16.msra.mxu1 %v680_v28  ;;  %v68_v48 = vld [vmem:[%s1059_s1 + $0x1a0] sm:$0xff]  ;;  %v69_v50 = vld [vmem:[%s1059_s1 + $0x1a8] sm:$0xff]  ;;  %v685_v24 = vcombine.high %v35_v19, %v39_v20  ;;  %v42_v25 = vld [vmem:[%s1059_s1 + $0xd0] sm:$0xff]  ;;  %v684_v31 = vcombine.low %v35_v19, %v39_v20 }
   0xf   :  { %418 = vmatprep.subr.bf16.mxu0 %v687_v29  ;;  %471 = vmatprep.subr.bf16.mxu1 %v689_v30  ;;  %v711_v53 = vcombine.high %v64_v47, %v68_v48  ;;  %v713_v54 = vcombine.high %v65_v49, %v69_v50  ;;  %v72_v55 = vld [vmem:[%s1059_s1 + $0x1c0] sm:$0xff]  ;;  %v73_v57 = vld [vmem:[%s1059_s1 + $0x1c8] sm:$0xff]  ;;  %v710_v59 = vcombine.low %v64_v47, %v68_v48  ;;  %v46_v26 = vld [vmem:[%s1059_s1 + $0xf0] sm:$0xff] }
  0x10   :  { %v76_v56 = vld [vmem:[%s1059_s1 + $0x1e0] sm:$0xff]  ;;  %v77_v58 = vld [vmem:[%s1059_s1 + $0x1e8] sm:$0xff]  ;;  %v712_v60 = vcombine.low %v65_v49, %v69_v50  ;;  %v43_v27 = vld [vmem:[%s1059_s1 + $0xd8] sm:$0xff]  ;;  %v682_v30 = vcombine.low %v34_v17, %v38_v18  ;;  %v691_v32 = vcombine.high %v42_v25, %v46_v26 }
  0x11   :  { %v719_v61 = vcombine.high %v72_v55, %v76_v56  ;;  %v721_v62 = vcombine.high %v73_v57, %v77_v58  ;;  %v718_v4 = vcombine.low %v72_v55, %v76_v56  ;;  %v720_v5 = vcombine.low %v73_v57, %v77_v58  ;;  %v864_v10 = vld [vmem:[%s1060_s0] sm:$0xff]   ;;  %v47_v28 = vld [vmem:[%s1059_s1 + $0xf8] sm:$0xff]  ;;  %v903_v29 = vld [vmem:[%s1060_s0 + $0x8] sm:$0xff]  }
  0x12   :  { %419 = vmatpush1.bf16.msra.mxu0 %v686_v35  ;;  %472 = vmatpush1.bf16.msra.mxu1 %v688_v36  ;;  %v693_v33 = vcombine.high %v43_v27, %v47_v28  ;;  %v50_v34 = vld [vmem:[%s1059_s1 + $0x110] sm:$0xff]  ;;  %v51_v36 = vld [vmem:[%s1059_s1 + $0x118] sm:$0xff]  ;;  %v692_v39 = vcombine.low %v43_v27, %v47_v28 }
  0x13   :  { %420 = vmatprep.subr.bf16.mxu0 %v695_v37  ;;  %473 = vmatprep.subr.bf16.mxu1 %v697_v38  ;;  %v54_v35 = vld [vmem:[%s1059_s1 + $0x130] sm:$0xff]  ;;  %v55_v37 = vld [vmem:[%s1059_s1 + $0x138] sm:$0xff]  ;;  %v690_v38 = vcombine.low %v42_v25, %v46_v26 }
  0x14   :  { %v699_v40 = vcombine.high %v50_v34, %v54_v35  ;;  %v701_v41 = vcombine.high %v51_v36, %v55_v37  ;;  %v58_v42 = vld [vmem:[%s1059_s1 + $0x150] sm:$0xff]  ;;  %v700_v47 = vcombine.low %v51_v36, %v55_v37 }
  0x15   :  { %v66_v50 = vld [vmem:[%s1059_s1 + $0x190] sm:$0xff] }
  0x16   :  { %421 = vmatpush1.bf16.msra.mxu0 %v694_v43  ;;  %474 = vmatpush1.bf16.msra.mxu1 %v696_v44  ;;  %v62_v43 = vld [vmem:[%s1059_s1 + $0x170] sm:$0xff]  ;;  %v59_v44 = vld [vmem:[%s1059_s1 + $0x158] sm:$0xff] }
  0x17   :  { %422 = vmatprep.subr.bf16.mxu0 %v703_v45  ;;  %475 = vmatprep.subr.bf16.mxu1 %v705_v46  ;;  %v63_v45 = vld [vmem:[%s1059_s1 + $0x178] sm:$0xff]  ;;  %v698_v46 = vcombine.low %v50_v34, %v54_v35  ;;  %v707_v48 = vcombine.high %v58_v42, %v62_v43  ;;  %v74_v58 = vld [vmem:[%s1059_s1 + $0x1d0] sm:$0xff] }
  0x18   :  { %v709_v49 = vcombine.high %v59_v44, %v63_v45  ;;  %v708_v55 = vcombine.low %v59_v44, %v63_v45 }
  0x1a   :  { %423 = vmatpush1.bf16.msra.mxu0 %v702_v51  ;;  %476 = vmatpush1.bf16.msra.mxu1 %v704_v52  ;;  %v70_v51 = vld [vmem:[%s1059_s1 + $0x1b0] sm:$0xff]  ;;  %v67_v52 = vld [vmem:[%s1059_s1 + $0x198] sm:$0xff] }
  0x1b   :  { %424 = vmatprep.subr.bf16.mxu0 %v711_v53  ;;  %477 = vmatprep.subr.bf16.mxu1 %v713_v54  ;;  %v71_v53 = vld [vmem:[%s1059_s1 + $0x1b8] sm:$0xff]  ;;  %v706_v54 = vcombine.low %v58_v42, %v62_v43  ;;  %v715_v56 = vcombine.high %v66_v50, %v70_v51 }
  0x1c   :  { %v717_v57 = vcombine.high %v67_v52, %v71_v53  ;;  %v716_v63 = vcombine.low %v67_v52, %v71_v53 }
  0x1e   :  { %425 = vmatpush1.bf16.msra.mxu0 %v710_v59  ;;  %478 = vmatpush1.bf16.msra.mxu1 %v712_v60  ;;  %v78_v59 = vld [vmem:[%s1059_s1 + $0x1f0] sm:$0xff]  ;;  %v75_v60 = vld [vmem:[%s1059_s1 + $0x1d8] sm:$0xff] }
  0x1f   :  { %426 = vmatprep.subr.bf16.mxu0 %v719_v61  ;;  %479 = vmatprep.subr.bf16.mxu1 %v721_v62  ;;  %v79_v61 = vld [vmem:[%s1059_s1 + $0x1f8] sm:$0xff]  ;;  %v714_v62 = vcombine.low %v66_v50, %v70_v51  ;;  %v723_v0 = vcombine.high %v74_v58, %v78_v59  ;;  %v722_v2 = vcombine.low %v74_v58, %v78_v59 }
  0x20   :  { %v725_v1 = vcombine.high %v75_v60, %v79_v61 }
  0x22   :  { %427 = vmatpush1.bf16.msra.mxu0 %v718_v4  ;;  %480 = vmatpush1.bf16.msra.mxu1 %v720_v5  ;;  %v724_v4 = vcombine.low %v75_v60, %v79_v61 }
  0x23   :  { %518 = vmatprep.subr.bf16.mxu0 %v667_v6  ;;  %571 = vmatprep.subr.bf16.mxu1 %v669_v7 }
  0x25   :  { %445 = vmatmul.mubr.bf16.vlgmr.msra.gmra.mrb[0].mxu0 %v864_v10  ;;  %498 = vmatmul.mubr.bf16.vlgmr.msra.gmra.mrb[0].mxu1 %v864_v10 }
  0x26   :  { %519 = vmatpush1.bf16.msra.mxu0 %v666_v13  ;;  %572 = vmatpush1.bf16.msra.mxu1 %v668_v14 }
  0x27   :  { %520 = vmatprep.subr.bf16.mxu0 %v675_v15  ;;  %573 = vmatprep.subr.bf16.mxu1 %v677_v16 }
  0x28   :  { %454 = vmatprep.mubr.bf16.mxu0 %v729_v3  ;;  %507 = vmatprep.mubr.bf16.mxu1 %v729_v3 }
  0x2a   :  { %521 = vmatpush1.bf16.msra.mxu0 %v674_v21  ;;  %574 = vmatpush1.bf16.msra.mxu1 %v676_v22 }
  0x2b   :  { %522 = vmatprep.subr.bf16.mxu0 %v683_v23  ;;  %575 = vmatprep.subr.bf16.mxu1 %v685_v24 }
  0x2d   :  { %455 = vmatmul.mubr.bf16.gmra.mrb[4].mxu0 %v903_v29  ;;  %508 = vmatmul.mubr.bf16.gmra.mrb[4].mxu1 %v903_v29 }
  0x2e   :  { %523 = vmatpush1.bf16.msra.mxu0 %v682_v30  ;;  %576 = vmatpush1.bf16.msra.mxu1 %v684_v31 }
  0x2f   :  { %524 = vmatprep.subr.bf16.mxu0 %v691_v32  ;;  %577 = vmatprep.subr.bf16.mxu1 %v693_v33 }
  0x30   :  { %550 = vmatprep.mubr.bf16.mxu0 %v729_v3  ;;  %603 = vmatprep.mubr.bf16.mxu1 %v729_v3 }
  0x32   :  { %525 = vmatpush1.bf16.msra.mxu0 %v690_v38  ;;  %578 = vmatpush1.bf16.msra.mxu1 %v692_v39 }
  0x33   :  { %526 = vmatprep.subr.bf16.mxu0 %v699_v40  ;;  %579 = vmatprep.subr.bf16.mxu1 %v701_v41 }
  0x36   :  { %527 = vmatpush1.bf16.msra.mxu0 %v698_v46  ;;  %580 = vmatpush1.bf16.msra.mxu1 %v700_v47 }
  0x37   :  { %528 = vmatprep.subr.bf16.mxu0 %v707_v48  ;;  %581 = vmatprep.subr.bf16.mxu1 %v709_v49 }
  0x3a   :  { %529 = vmatpush1.bf16.msra.mxu0 %v706_v54  ;;  %582 = vmatpush1.bf16.msra.mxu1 %v708_v55 }
  0x3b   :  { %530 = vmatprep.subr.bf16.mxu0 %v715_v56  ;;  %583 = vmatprep.subr.bf16.mxu1 %v717_v57 }
  0x3e   :  { %531 = vmatpush1.bf16.msra.mxu0 %v714_v62  ;;  %584 = vmatpush1.bf16.msra.mxu1 %v716_v63 }
  0x3f   :  { %532 = vmatprep.subr.bf16.mxu0 %v723_v0  ;;  %585 = vmatprep.subr.bf16.mxu1 %v725_v1 }
  0x42   :  { %533 = vmatpush1.bf16.msra.mxu0 %v722_v2  ;;  %586 = vmatpush1.bf16.msra.mxu1 %v724_v4 }
  0x45   :  { %551 = vmatmul.mubr.bf16.vlgmr.msra.gmra.mrb[8].mxu0 %v864_v10  ;;  %604 = vmatmul.mubr.bf16.vlgmr.msra.gmra.mrb[8].mxu1 %v864_v10 }
  0x46   :  { %560 = vmatprep.mubr.bf16.mxu0 %v729_v3  ;;  %613 = vmatprep.mubr.bf16.mxu1 %v729_v3 }
  0x4d   :  { %561 = vmatmul.mubr.bf16.gmra.mrb[12].mxu0 %v903_v29  ;;  %614 = vmatmul.mubr.bf16.gmra.mrb[12].mxu1 %v903_v29 }
  0xf8   :  { %v446_v5 = vpop.f32.mrb[0].mxu0  ;;  %v499_v6 = vpop.f32.mrb[0].mxu1 }
  0xf9   :  { %624 = vst [vmem:[%s1061_s2] sm:$0xff] %v446_v5  ;;  %v448_v7 = vpop.f32.mrb[1].mxu0  ;;  %626 = vst [vmem:[%s1061_s2 + $0x10] sm:$0xff] %v499_v6  ;;  %v501_v3 = vpop.f32.mrb[1].mxu1 }
  0xfa   :  { %625 = vst [vmem:[%s1061_s2 + $0x8] sm:$0xff] %v448_v7  ;;  %v450_v8 = vpop.f32.mrb[2].mxu0  ;;  %627 = vst [vmem:[%s1061_s2 + $0x18] sm:$0xff] %v501_v3  ;;  %v503_v9 = vpop.f32.mrb[2].mxu1 }
  0xfb   :  { %632 = vst [vmem:[%s1061_s2 + $0x40] sm:$0xff] %v450_v8  ;;  %v452_v10 = vpop.f32.mrb[3].mxu0  ;;  %634 = vst [vmem:[%s1061_s2 + $0x50] sm:$0xff] %v503_v9  ;;  %v505_v11 = vpop.f32.mrb[3].mxu1 }
  0xfc   :  { %633 = vst [vmem:[%s1061_s2 + $0x48] sm:$0xff] %v452_v10  ;;  %635 = vst [vmem:[%s1061_s2 + $0x58] sm:$0xff] %v505_v11 }
 0x100   :  { %v456_v12 = vpop.f32.mrb[4].mxu0  ;;  %v509_v13 = vpop.f32.mrb[4].mxu1 }
 0x101   :  { %640 = vst [vmem:[%s1061_s2 + $0x80] sm:$0xff] %v456_v12  ;;  %v458_v14 = vpop.f32.mrb[5].mxu0  ;;  %642 = vst [vmem:[%s1061_s2 + $0x90] sm:$0xff] %v509_v13  ;;  %v511_v15 = vpop.f32.mrb[5].mxu1 }
 0x102   :  { %641 = vst [vmem:[%s1061_s2 + $0x88] sm:$0xff] %v458_v14  ;;  %v460_v16 = vpop.f32.mrb[6].mxu0  ;;  %643 = vst [vmem:[%s1061_s2 + $0x98] sm:$0xff] %v511_v15  ;;  %v513_v17 = vpop.f32.mrb[6].mxu1 }
 0x103   :  { %648 = vst [vmem:[%s1061_s2 + $0xc0] sm:$0xff] %v460_v16  ;;  %v462_v18 = vpop.f32.mrb[7].mxu0  ;;  %650 = vst [vmem:[%s1061_s2 + $0xd0] sm:$0xff] %v513_v17  ;;  %v515_v19 = vpop.f32.mrb[7].mxu1 }
 0x104   :  { %649 = vst [vmem:[%s1061_s2 + $0xc8] sm:$0xff] %v462_v18  ;;  %651 = vst [vmem:[%s1061_s2 + $0xd8] sm:$0xff] %v515_v19 }
 0x118   :  { %v552_v20 = vpop.f32.mrb[8].mxu0  ;;  %v605_v21 = vpop.f32.mrb[8].mxu1 }
 0x119   :  { %628 = vst [vmem:[%s1061_s2 + $0x20] sm:$0xff] %v552_v20  ;;  %v554_v22 = vpop.f32.mrb[9].mxu0  ;;  %630 = vst [vmem:[%s1061_s2 + $0x30] sm:$0xff] %v605_v21  ;;  %v607_v23 = vpop.f32.mrb[9].mxu1 }
 0x11a   :  { %629 = vst [vmem:[%s1061_s2 + $0x28] sm:$0xff] %v554_v22  ;;  %v556_v24 = vpop.f32.mrb[10].mxu0  ;;  %631 = vst [vmem:[%s1061_s2 + $0x38] sm:$0xff] %v607_v23  ;;  %v609_v25 = vpop.f32.mrb[10].mxu1 }
 0x11b   :  { %636 = vst [vmem:[%s1061_s2 + $0x60] sm:$0xff] %v556_v24  ;;  %v558_v26 = vpop.f32.mrb[11].mxu0  ;;  %638 = vst [vmem:[%s1061_s2 + $0x70] sm:$0xff] %v609_v25  ;;  %v611_v27 = vpop.f32.mrb[11].mxu1 }
 0x11c   :  { %637 = vst [vmem:[%s1061_s2 + $0x68] sm:$0xff] %v558_v26  ;;  %639 = vst [vmem:[%s1061_s2 + $0x78] sm:$0xff] %v611_v27 }
 0x120   :  { %v562_v28 = vpop.f32.mrb[12].mxu0  ;;  %v615_v29 = vpop.f32.mrb[12].mxu1 }
 0x121   :  { %644 = vst [vmem:[%s1061_s2 + $0xa0] sm:$0xff] %v562_v28  ;;  %v564_v30 = vpop.f32.mrb[13].mxu0  ;;  %646 = vst [vmem:[%s1061_s2 + $0xb0] sm:$0xff] %v615_v29  ;;  %v617_v31 = vpop.f32.mrb[13].mxu1 }
 0x122   :  { %645 = vst [vmem:[%s1061_s2 + $0xa8] sm:$0xff] %v564_v30  ;;  %v566_v32 = vpop.f32.mrb[14].mxu0  ;;  %647 = vst [vmem:[%s1061_s2 + $0xb8] sm:$0xff] %v617_v31  ;;  %v619_v33 = vpop.f32.mrb[14].mxu1 }
 0x123   :  { %652 = vst [vmem:[%s1061_s2 + $0xe0] sm:$0xff] %v566_v32  ;;  %v568_v34 = vpop.f32.mrb[15].mxu0  ;;  %654 = vst [vmem:[%s1061_s2 + $0xf0] sm:$0xff] %v619_v33  ;;  %v621_v35 = vpop.f32.mrb[15].mxu1 }
 0x124   :  { %653 = vst [vmem:[%s1061_s2 + $0xe8] sm:$0xff] %v568_v34  ;;  %655 = vst [vmem:[%s1061_s2 + $0xf8] sm:$0xff] %v621_v35 }

// kernel: tile.58
= control target key start
LH: loop header
LB: loop body
LE: loop exit
PB: predicated region body
PF: predicated region fallthrough
CT: control target
= control target key end

     0   :  { %s22_s0 = inlined_call_operand.vmem [shape: f32[64], index: 0, kind: input, shape index: {}]   ;;  %s23_s1 = inlined_call_operand.vmem [shape: f32[8,64], index: 1, kind: output, shape index: {}]  }
   0x1   :  { %v4_v0 = vld [vmem:[%s22_s0] ss:$0 sm:$0xff] }
   0x2   :  { %5 = vst [vmem:[%s23_s1] sm:$0xff] %v4_v0 }

// kernel: tile.59
= control target key start
LH: loop header
LB: loop body
LE: loop exit
PB: predicated region body
PF: predicated region fallthrough
CT: control target
= control target key end

     0   :  { %vm3_vm0 = vcmask 523264   ;;  %s41_s8 = smov 64   ;;  %vm9_vm1 = vcmask 1048064   ;;  %s70_s0 = inlined_call_operand.vmem [shape: f32[8,64], index: 0, kind: input, shape index: {}]   ;;  %s71_s1 = inlined_call_operand.vmem [shape: f32[1,512], index: 1, kind: output, shape index: {}]  }
   0x1   :  { %v36_v0 = vld [vmem:[%s70_s0 + $0x1] ss:$2 sm:$0xf]   ;;  %v2_v1 = vld [vmem:[%s70_s0] ss:$2 sm:$0xf]  }
   0x2   :  { %7 = vrot.lane.b32.xlu0 %v36_v0, %s41_s8  ;;  %4 = vst.msk [vmem:[#allocation0] ss:$8 sm:$0xf] %vm3_vm0, %v2_v1  }
  0x74   :  { %v8_v2 = vpop.permute.xlu0 %7  }
  0x75   :  { %10 = vst.msk [vmem:[#allocation0] ss:$8 sm:$0xf] %vm9_vm1, %v8_v2  }
  0x7c   :  { %v14_v3 = vld [vmem:[#allocation0] sm:$0x1]  ;;  %v18_v4 = vld [vmem:[#allocation0 + $0x8] sm:$0x1]  ;;  %v23_v5 = vld [vmem:[#allocation0 + $0x10] sm:$0x1] }
  0x7d   :  { %16 = vst [vmem:[%s71_s1] sm:$0x1] %v14_v3  ;;  %37 = vst [vmem:[%s71_s1 + $0x1] sm:$0x1] %v18_v4  ;;  %v29_v6 = vld [vmem:[#allocation0 + $0x18] sm:$0x1] }
  0x7e   :  { %38 = vst [vmem:[%s71_s1 + $0x2] sm:$0x1] %v23_v5  ;;  %39 = vst [vmem:[%s71_s1 + $0x3] sm:$0x1] %v29_v6 }

// kernel: generator_forward.18
= control target key start
LH: loop header
LB: loop body
LE: loop exit
PB: predicated region body
PF: predicated region fallthrough
CT: control target
= control target key end

     0   :  { %v14_v0 = vlaneseq  ;;  %v170_v4 = vmov 1966171168   ;;  %v171_v12 = vmov 0.0   ;;  %s241_s0 = inlined_call_operand.vmem [shape: f32[16,512], index: 0, kind: input, shape index: {}]   ;;  %s242_s1 = inlined_call_operand.vmem [shape: f32[1,512], index: 1, kind: output, shape index: {0}]   ;;  %s243_s2 = inlined_call_operand.vmem [shape: f32[1,512], index: 2, kind: output, shape index: {1}]  }
   0x1   :  { %v20_v1 = vld [vmem:[%s241_s0] sm:$0xff]  ;;  %v21_v2 = vld [vmem:[%s241_s0 + $0x8] sm:$0xff]  ;;  %v22_v3 = vld [vmem:[%s241_s0 + $0x10] sm:$0xff]  ;;  %v64_v5 = vunpack.c.l.s4 %v170_v4 }
   0x2   :  { %vm196_vm0 = vcmp.lt.s32.totalorder %v14_v0, 512  ;;  %v23_v7 = vld [vmem:[%s241_s0 + $0x18] sm:$0xff]  ;;  %v24_v8 = vld [vmem:[%s241_s0 + $0x20] sm:$0xff]  ;;  %v25_v9 = vld [vmem:[%s241_s0 + $0x28] sm:$0xff]  ;;  %v67_v10 = vshrl.u32 %v14_v0, 7  ;;  %v93_v11 = vmul.f32 %v20_v1, %v20_v1  ;;  %v94_v17 = vmul.f32 %v21_v2, %v21_v2 }
   0x3   :  { %18 = vst.msk [vmem:[%s242_s1] sm:$0xf] %vm196_vm0, %v171_v12  ;;  %v26_v13 = vld [vmem:[%s241_s0 + $0x30] sm:$0xff]  ;;  %v27_v14 = vld [vmem:[%s241_s0 + $0x38] sm:$0xff]  ;;  %v29_v15 = vadd.f32 %v24_v8, %v20_v1  ;;  %v36_v16 = vadd.f32 %v25_v9, %v21_v2  ;;  %19 = vst.msk [vmem:[%s243_s2] sm:$0xf] %vm196_vm0, %v171_v12  ;;  %v95_v18 = vmul.f32 %v22_v3, %v22_v3  ;;  %v65_v25 = vunpack.c.0.s8 %v64_v5 }
   0x4   :  { %v43_v19 = vadd.f32 %v26_v13, %v22_v3  ;;  %v50_v20 = vadd.f32 %v27_v14, %v23_v7  ;;  %v96_v21 = vmul.f32 %v23_v7, %v23_v7  ;;  %v97_v22 = vmul.f32 %v24_v8, %v24_v8 }
   0x5   :  { %v30_v23 = vrot.slane %v29_v15, 4  ;;  %v37_v24 = vrot.slane %v36_v16, 4  ;;  %v98_v26 = vmul.f32 %v25_v9, %v25_v9  ;;  %v99_v29 = vmul.f32 %v26_v13, %v26_v13 }
   0x6   :  { %v44_v27 = vrot.slane %v43_v19, 4  ;;  %v51_v28 = vrot.slane %v50_v20, 4  ;;  %v100_v30 = vmul.f32 %v27_v14, %v27_v14  ;;  %v101_v33 = vadd.f32 %v97_v22, %v93_v11 }
   0x7   :  { %v31_v31 = vadd.f32 %v30_v23, %v29_v15  ;;  %v38_v32 = vadd.f32 %v37_v24, %v36_v16  ;;  %v108_v34 = vadd.f32 %v98_v26, %v94_v17  ;;  %v115_v37 = vadd.f32 %v99_v29, %v95_v18 }
   0x8   :  { %v45_v35 = vadd.f32 %v44_v27, %v43_v19  ;;  %v52_v36 = vadd.f32 %v51_v28, %v50_v20  ;;  %v122_v38 = vadd.f32 %v100_v30, %v96_v21  ;;  %v102_v41 = vrot.slane %v101_v33, 4 }
   0x9   :  { %v32_v39 = vrot.slane %v31_v31, 2  ;;  %v39_v40 = vrot.slane %v38_v32, 2  ;;  %v109_v42 = vrot.slane %v108_v34, 4  ;;  %v68_v45 = vsub.s32 %v65_v25, %v67_v10 }
   0xa   :  { %v46_v43 = vrot.slane %v45_v35, 2  ;;  %v53_v44 = vrot.slane %v52_v36, 2  ;;  %v103_v48 = vadd.f32 %v102_v41, %v101_v33  ;;  %v116_v52 = vrot.slane %v115_v37, 4  ;;  %v28_v23 = vld [vmem:[%s242_s1] sm:$0xf] }
   0xb   :  { %v33_v46 = vadd.f32 %v32_v39, %v31_v31  ;;  %v40_v47 = vadd.f32 %v39_v40, %v38_v32  ;;  %v110_v49 = vadd.f32 %v109_v42, %v108_v34  ;;  %v123_v53 = vrot.slane %v122_v38, 4  ;;  %v92_v30 = vld [vmem:[%s243_s2] sm:$0xf] }
   0xc   :  { %v47_v50 = vadd.f32 %v46_v43, %v45_v35  ;;  %v54_v51 = vadd.f32 %v53_v44, %v52_v36  ;;  %v104_v56 = vrot.slane %v103_v48, 2  ;;  %v117_v60 = vadd.f32 %v116_v52, %v115_v37 }
   0xd   :  { %v34_v54 = vrot.slane %v33_v46, 1  ;;  %v41_v55 = vrot.slane %v40_v47, 1  ;;  %v111_v57 = vrot.slane %v110_v49, 2  ;;  %v124_v61 = vadd.f32 %v123_v53, %v122_v38 }
   0xe   :  { %v48_v58 = vrot.slane %v47_v50, 1  ;;  %v55_v59 = vrot.slane %v54_v51, 1  ;;  %v105_v0 = vadd.f32 %v104_v56, %v103_v48  ;;  %v118_v4 = vrot.slane %v117_v60, 2 }
   0xf   :  { %v35_v62 = vadd.f32 %v34_v54, %v33_v46  ;;  %v42_v63 = vadd.f32 %v41_v55, %v40_v47  ;;  %v112_v1 = vadd.f32 %v111_v57, %v110_v49  ;;  %v125_v5 = vrot.slane %v124_v61, 2 }
  0x10   :  { %v49_v2 = vadd.f32 %v48_v58, %v47_v50  ;;  %v56_v3 = vadd.f32 %v55_v59, %v54_v51  ;;  %v106_v8 = vrot.slane %v105_v0, 1  ;;  %v119_v11 = vadd.f32 %v118_v4, %v117_v60 }
  0x11   :  { %v61_v7 = vcombine.low %v35_v62, %v42_v63  ;;  %v113_v9 = vrot.slane %v112_v1, 1  ;;  %v126_v12 = vadd.f32 %v125_v5, %v124_v61 }
  0x12   :  { %v62_v10 = vcombine.low %v49_v2, %v56_v3  ;;  %v107_v14 = vadd.f32 %v106_v8, %v105_v0  ;;  %v120_v17 = vrot.slane %v119_v11, 1 }
  0x13   :  { %v69_v13 = vrot.slane %v61_v7, %v68_v45  ;;  %v114_v15 = vadd.f32 %v113_v9, %v112_v1  ;;  %v127_v18 = vrot.slane %v126_v12, 1 }
  0x14   :  { %v76_v16 = vrot.slane %v62_v10, %v68_v45  ;;  %v121_v21 = vadd.f32 %v120_v17, %v119_v11 }
  0x15   :  { %v133_v19 = vcombine.low %v107_v14, %v114_v15  ;;  %v128_v22 = vadd.f32 %v127_v18, %v126_v12 }
  0x16   :  { %v77_v20 = vcombine.low %v69_v13, %v76_v16 }
  0x17   :  { %v134_v25 = vcombine.low %v121_v21, %v128_v22  ;;  %v141_v26 = vrot.slane %v133_v19, %v68_v45 }
  0x18   :  { %v84_v24 = vrot.slane %v77_v20, %v68_v45 }
  0x19   :  { %v148_v28 = vrot.slane %v134_v25, %v68_v45 }
  0x1a   :  { %v86_v27 = vadd.f32 %v84_v24, %v28_v23 }
  0x1b   :  { %v149_v29 = vcombine.low %v141_v26, %v148_v28 }
  0x1c   :  { %91 = vst.msk [vmem:[%s242_s1] sm:$0xf] %vm196_vm0, %v86_v27 }
  0x1d   :  { %v156_v31 = vrot.slane %v149_v29, %v68_v45 }
  0x1f   :  { %v158_v32 = vadd.f32 %v156_v31, %v92_v30 }
  0x21   :  { %159 = vst.msk [vmem:[%s243_s2] sm:$0xf] %vm196_vm0, %v158_v32 }

// kernel: generator_forward.19
= control target key start
LH: loop header
LB: loop body
LE: loop exit
PB: predicated region body
PF: predicated region fallthrough
CT: control target
= control target key end

     0   :  { %v24_v0 = vlaneseq  ;;  %s192_s1 = inlined_call_operand.vmem [shape: f32[1,512], index: 1, kind: input, shape index: {}]   ;;  %s193_s2 = inlined_call_operand.vmem [shape: f32[1,512], index: 2, kind: input, shape index: {}]   ;;  %s194_s0 = inlined_call_operand.vmem [shape: f32[16,512], index: 0, kind: input, shape index: {}]   ;;  %s195_s3 = inlined_call_operand.vmem [shape: bf16[16,512], index: 3, kind: output, shape index: {}]  }
   0x1   :  { %v22_v2 = vld [vmem:[%s192_s1] sm:$0xf]  ;;  %v15_v5 = vld [vmem:[%s194_s0 + $0x8] sm:$0xff]  ;;  %v16_v10 = vld [vmem:[%s194_s0 + $0x10] sm:$0xff] }
   0x2   :  { %v25_v1 = vshrl.u32 %v24_v0, 7  ;;  %v52_v3 = vld [vmem:[%s193_s2] sm:$0xf]  ;;  %v19_v12 = vld [vmem:[%s194_s0 + $0x28] sm:$0xff]  ;;  %v17_v17 = vld [vmem:[%s194_s0 + $0x18] sm:$0xff] }
   0x3   :  { %v14_v4 = vld [vmem:[%s194_s0] sm:$0xff]  ;;  %v20_v18 = vld [vmem:[%s194_s0 + $0x30] sm:$0xff]  ;;  %v21_v19 = vld [vmem:[%s194_s0 + $0x38] sm:$0xff] }
   0x4   :  { %v26_v6 = vsub.s32 0, %v25_v1  ;;  %v30_v7 = vsub.s32 1, %v25_v1  ;;  %v34_v8 = vsub.s32 2, %v25_v1  ;;  %v38_v9 = vsub.s32 3, %v25_v1  ;;  %v18_v11 = vld [vmem:[%s194_s0 + $0x20] sm:$0xff] }
   0x6   :  { %v27_v13 = vrot.slane %v22_v2, %v26_v6  ;;  %v31_v14 = vrot.slane %v22_v2, %v30_v7  ;;  %v57_v15 = vrot.slane %v52_v3, %v26_v6  ;;  %v61_v16 = vrot.slane %v52_v3, %v30_v7 }
   0x7   :  { %v35_v20 = vrot.slane %v22_v2, %v34_v8  ;;  %v39_v21 = vrot.slane %v22_v2, %v38_v9  ;;  %v65_v22 = vrot.slane %v52_v3, %v34_v8  ;;  %v69_v23 = vrot.slane %v52_v3, %v38_v9 }
   0x8   :  { %v44_v24 = vmul.f32 %v27_v13, %v14_v4  ;;  %v45_v25 = vmul.f32 %v31_v14, %v15_v5  ;;  %v48_v26 = vmul.f32 %v27_v13, %v18_v11  ;;  %v49_v27 = vmul.f32 %v31_v14, %v19_v12 }
   0x9   :  { %v46_v28 = vmul.f32 %v35_v20, %v16_v10  ;;  %v47_v29 = vmul.f32 %v39_v21, %v17_v17  ;;  %v50_v30 = vmul.f32 %v35_v20, %v20_v18  ;;  %v51_v31 = vmul.f32 %v39_v21, %v21_v19 }
   0xa   :  { %v74_v32 = vadd.f32 %v57_v15, %v44_v24  ;;  %v75_v33 = vadd.f32 %v61_v16, %v45_v25  ;;  %v78_v34 = vadd.f32 %v57_v15, %v48_v26  ;;  %v79_v35 = vadd.f32 %v61_v16, %v49_v27 }
   0xb   :  { %v76_v36 = vadd.f32 %v65_v22, %v46_v28  ;;  %v77_v37 = vadd.f32 %v69_v23, %v47_v29  ;;  %v80_v38 = vadd.f32 %v65_v22, %v50_v30  ;;  %v81_v39 = vadd.f32 %v69_v23, %v51_v31 }
   0xc   :  { %v82_v40 = vmax.f32 %v74_v32, 0.0  ;;  %v83_v41 = vmax.f32 %v75_v33, 0.0  ;;  %v86_v42 = vmax.f32 %v78_v34, 0.0  ;;  %v87_v43 = vmax.f32 %v79_v35, 0.0 }
   0xd   :  { %v84_v44 = vmax.f32 %v76_v36, 0.0  ;;  %v85_v45 = vmax.f32 %v77_v37, 0.0  ;;  %v88_v46 = vmax.f32 %v80_v38, 0.0  ;;  %v89_v47 = vmax.f32 %v81_v39, 0.0 }
   0xe   :  { %v126_v48 = vpack.c.bf16 %v83_v41, %v82_v40  ;;  %v128_v49 = vpack.c.bf16 %v87_v43, %v86_v42 }
   0xf   :  { %v127_v50 = vpack.c.bf16 %v85_v45, %v84_v44  ;;  %v129_v51 = vpack.c.bf16 %v89_v47, %v88_v46 }
  0x10   :  { %114 = vst [vmem:[%s195_s3] sm:$0xff] %v126_v48  ;;  %116 = vst [vmem:[%s195_s3 + $0x10] sm:$0xff] %v128_v49 }
  0x11   :  { %115 = vst [vmem:[%s195_s3 + $0x8] sm:$0xff] %v127_v50  ;;  %117 = vst [vmem:[%s195_s3 + $0x18] sm:$0xff] %v129_v51 }

// kernel: generator_forward.20
= control target key start
LH: loop header
LB: loop body
LE: loop exit
PB: predicated region body
PF: predicated region fallthrough
CT: control target
= control target key end

     0   :  { %v556_v1 = vmov 0   ;;  %vm164_vm0 = vcmask 523264   ;;  %s868_s1 = inlined_call_operand.vmem [shape: bf16[64,512], index: 1, kind: input, shape index: {}]   ;;  %s869_s0 = inlined_call_operand.vmem [shape: bf16[128,64], index: 0, kind: input, shape index: {}]   ;;  %s870_s2 = inlined_call_operand.vmem [shape: f32[128,512], index: 2, kind: output, shape index: {}]  }
   0x1   :  { %v524_v0 = vld [vmem:[%s868_s1 + $0x4] ss:$16 sps:$4 sm:$0xff]   ;;  %221 = vmatprep.mubr.bf16.mxu0 %v556_v1  ;;  %334 = vmatprep.mubr.bf16.mxu1 %v556_v1  ;;  %v526_v2 = vld [vmem:[%s868_s1 + $0xc] ss:$16 sps:$4 sm:$0xff]   ;;  %v528_v3 = vld [vmem:[%s868_s1] ss:$16 sps:$4 sm:$0xff]  }
   0x2   :  { %189 = vmatprep.subr.bf16.mxu0 %v524_v0  ;;  %v529_v4 = vld [vmem:[%s868_s1 + $0x8] ss:$16 sps:$4 sm:$0xff]   ;;  %302 = vmatprep.subr.bf16.mxu1 %v526_v2  ;;  %v530_v5 = vld [vmem:[%s868_s1 + $0x24] ss:$16 sps:$4 sm:$0xff]   ;;  %v532_v6 = vld [vmem:[%s868_s1 + $0x2c] ss:$16 sps:$4 sm:$0xff]  }
   0x3   :  { %190 = vmatpush1.bf16.msra.mxu0 %v528_v3  ;;  %303 = vmatpush1.bf16.msra.mxu1 %v529_v4  ;;  %v534_v7 = vld [vmem:[%s868_s1 + $0x20] ss:$16 sps:$4 sm:$0xff]   ;;  %v535_v8 = vld [vmem:[%s868_s1 + $0x28] ss:$16 sps:$4 sm:$0xff]   ;;  %v536_v9 = vld [vmem:[%s868_s1 + $0x44] ss:$16 sps:$4 sm:$0xff]  }
   0x4   :  { %191 = vmatprep.subr.bf16.mxu0 %v530_v5  ;;  %304 = vmatprep.subr.bf16.mxu1 %v532_v6  ;;  %v538_v10 = vld [vmem:[%s868_s1 + $0x4c] ss:$16 sps:$4 sm:$0xff]   ;;  %v540_v11 = vld [vmem:[%s868_s1 + $0x40] ss:$16 sps:$4 sm:$0xff]   ;;  %v541_v12 = vld [vmem:[%s868_s1 + $0x48] ss:$16 sps:$4 sm:$0xff]  }
   0x5   :  { %v542_v13 = vld [vmem:[%s868_s1 + $0x64] ss:$16 sps:$4 sm:$0xff]   ;;  %v544_v14 = vld [vmem:[%s868_s1 + $0x6c] ss:$16 sps:$4 sm:$0xff]   ;;  %v546_v15 = vld [vmem:[%s868_s1 + $0x60] ss:$16 sps:$4 sm:$0xff]  }
   0x6   :  { %v547_v16 = vld [vmem:[%s868_s1 + $0x68] ss:$16 sps:$4 sm:$0xff]   ;;  %v548_v17 = vld [vmem:[%s869_s0] sm:$0xff]   ;;  %v550_v19 = vld [vmem:[%s869_s0 + $0x10] sm:$0xff]  }
   0x7   :  { %192 = vmatpush1.bf16.msra.mxu0 %v534_v7  ;;  %305 = vmatpush1.bf16.msra.mxu1 %v535_v8  ;;  %v549_v18 = vld [vmem:[%s869_s0 + $0x8] sm:$0xff]   ;;  %v551_v20 = vld [vmem:[%s869_s0 + $0x18] sm:$0xff]   ;;  %v552_v21 = vld [vmem:[%s869_s0 + $0x20] sm:$0xff]  }
   0x8   :  { %193 = vmatprep.subr.bf16.mxu0 %v536_v9  ;;  %306 = vmatprep.subr.bf16.mxu1 %v538_v10  ;;  %v553_v22 = vld [vmem:[%s869_s0 + $0x28] sm:$0xff]   ;;  %v554_v23 = vld [vmem:[%s869_s0 + $0x30] sm:$0xff]   ;;  %v555_v24 = vld [vmem:[%s869_s0 + $0x38] sm:$0xff]  }
   0xb   :  { %194 = vmatpush1.bf16.msra.mxu0 %v540_v11  ;;  %307 = vmatpush1.bf16.msra.mxu1 %v541_v12 }
   0xc   :  { %195 = vmatprep.subr.bf16.mxu0 %v542_v13  ;;  %308 = vmatprep.subr.bf16.mxu1 %v544_v14 }
   0xf   :  { %196 = vmatpush1.bf16.msra.mxu0 %v546_v15  ;;  %309 = vmatpush1.bf16.msra.mxu1 %v547_v16 }
  0x12   :  { %507 = vmatmul.mubr.msk.bf16.vlgmr.msra.gmra.mrb[0].mxu0 %vm164_vm0, %v548_v17  ;;  %515 = vmatmul.mubr.msk.bf16.vlgmr.msra.gmra.mrb[0].mxu1 %vm164_vm0, %v548_v17 }
  0x13   :  { %231 = vmatprep.mubr.bf16.mxu0 %v556_v1  ;;  %344 = vmatprep.mubr.bf16.mxu1 %v556_v1 }
  0x1a   :  { %508 = vmatmul.mubr.msk.bf16.gmra.mrb[4].mxu0 %vm164_vm0, %v549_v18  ;;  %516 = vmatmul.mubr.msk.bf16.gmra.mrb[4].mxu1 %vm164_vm0, %v549_v18 }
  0x1b   :  { %241 = vmatprep.mubr.bf16.mxu0 %v556_v1  ;;  %354 = vmatprep.mubr.bf16.mxu1 %v556_v1 }
  0x22   :  { %509 = vmatmul.mubr.msk.bf16.gmra.mrb[8].mxu0 %vm164_vm0, %v550_v19  ;;  %517 = vmatmul.mubr.msk.bf16.gmra.mrb[8].mxu1 %vm164_vm0, %v550_v19 }
  0x23   :  { %251 = vmatprep.mubr.bf16.mxu0 %v556_v1  ;;  %364 = vmatprep.mubr.bf16.mxu1 %v556_v1 }
  0x2a   :  { %510 = vmatmul.mubr.msk.bf16.gmra.mrb[12].mxu0 %vm164_vm0, %v551_v20  ;;  %518 = vmatmul.mubr.msk.bf16.gmra.mrb[12].mxu1 %vm164_vm0, %v551_v20 }
  0x2b   :  { %261 = vmatprep.mubr.bf16.mxu0 %v556_v1  ;;  %374 = vmatprep.mubr.bf16.mxu1 %v556_v1 }
  0x32   :  { %511 = vmatmul.mubr.msk.bf16.gmra.mrb[16].mxu0 %vm164_vm0, %v552_v21  ;;  %519 = vmatmul.mubr.msk.bf16.gmra.mrb[16].mxu1 %vm164_vm0, %v552_v21 }
  0x33   :  { %271 = vmatprep.mubr.bf16.mxu0 %v556_v1  ;;  %384 = vmatprep.mubr.bf16.mxu1 %v556_v1 }
  0x3a   :  { %512 = vmatmul.mubr.msk.bf16.gmra.mrb[20].mxu0 %vm164_vm0, %v553_v22  ;;  %520 = vmatmul.mubr.msk.bf16.gmra.mrb[20].mxu1 %vm164_vm0, %v553_v22 }
  0x3b   :  { %281 = vmatprep.mubr.bf16.mxu0 %v556_v1  ;;  %394 = vmatprep.mubr.bf16.mxu1 %v556_v1 }
  0x42   :  { %513 = vmatmul.mubr.msk.bf16.gmra.mrb[24].mxu0 %vm164_vm0, %v554_v23  ;;  %521 = vmatmul.mubr.msk.bf16.gmra.mrb[24].mxu1 %vm164_vm0, %v554_v23 }
  0x43   :  { %291 = vmatprep.mubr.bf16.mxu0 %v556_v1  ;;  %404 = vmatprep.mubr.bf16.mxu1 %v556_v1 }
  0x4a   :  { %514 = vmatmul.mubr.msk.bf16.gmra.mrb[28].mxu0 %vm164_vm0, %v555_v24  ;;  %522 = vmatmul.mubr.msk.bf16.gmra.mrb[28].mxu1 %vm164_vm0, %v555_v24 }
  0xe5   :  { %v223_v25 = vpop.f32.mrb[0].mxu0  ;;  %v336_v26 = vpop.f32.mrb[0].mxu1 }
  0xe6   :  { %415 = vst [vmem:[%s870_s2] sm:$0xff] %v223_v25  ;;  %417 = vst [vmem:[%s870_s2 + $0x10] sm:$0xff] %v336_v26  ;;  %v225_v27 = vpop.f32.mrb[1].mxu0  ;;  %v338_v28 = vpop.f32.mrb[1].mxu1 }
  0xe7   :  { %416 = vst [vmem:[%s870_s2 + $0x8] sm:$0xff] %v225_v27  ;;  %418 = vst [vmem:[%s870_s2 + $0x18] sm:$0xff] %v338_v28  ;;  %v227_v29 = vpop.f32.mrb[2].mxu0  ;;  %v340_v30 = vpop.f32.mrb[2].mxu1 }
  0xe8   :  { %419 = vst [vmem:[%s870_s2 + $0x20] sm:$0xff] %v227_v29  ;;  %421 = vst [vmem:[%s870_s2 + $0x30] sm:$0xff] %v340_v30  ;;  %v229_v31 = vpop.f32.mrb[3].mxu0  ;;  %v342_v32 = vpop.f32.mrb[3].mxu1 }
  0xe9   :  { %420 = vst [vmem:[%s870_s2 + $0x28] sm:$0xff] %v229_v31  ;;  %422 = vst [vmem:[%s870_s2 + $0x38] sm:$0xff] %v342_v32 }
  0xed   :  { %v233_v33 = vpop.f32.mrb[4].mxu0  ;;  %v346_v34 = vpop.f32.mrb[4].mxu1 }
  0xee   :  { %423 = vst [vmem:[%s870_s2 + $0x40] sm:$0xff] %v233_v33  ;;  %425 = vst [vmem:[%s870_s2 + $0x50] sm:$0xff] %v346_v34  ;;  %v235_v35 = vpop.f32.mrb[5].mxu0  ;;  %v348_v36 = vpop.f32.mrb[5].mxu1 }
  0xef   :  { %424 = vst [vmem:[%s870_s2 + $0x48] sm:$0xff] %v235_v35  ;;  %426 = vst [vmem:[%s870_s2 + $0x58] sm:$0xff] %v348_v36  ;;  %v237_v37 = vpop.f32.mrb[6].mxu0  ;;  %v350_v38 = vpop.f32.mrb[6].mxu1 }
  0xf0   :  { %427 = vst [vmem:[%s870_s2 + $0x60] sm:$0xff] %v237_v37  ;;  %429 = vst [vmem:[%s870_s2 + $0x70] sm:$0xff] %v350_v38  ;;  %v239_v39 = vpop.f32.mrb[7].mxu0  ;;  %v352_v40 = vpop.f32.mrb[7].mxu1 }
  0xf1   :  { %428 = vst [vmem:[%s870_s2 + $0x68] sm:$0xff] %v239_v39  ;;  %430 = vst [vmem:[%s870_s2 + $0x78] sm:$0xff] %v352_v40 }
  0xf5   :  { %v243_v41 = vpop.f32.mrb[8].mxu0  ;;  %v356_v42 = vpop.f32.mrb[8].mxu1 }
  0xf6   :  { %431 = vst [vmem:[%s870_s2 + $0x80] sm:$0xff] %v243_v41  ;;  %433 = vst [vmem:[%s870_s2 + $0x90] sm:$0xff] %v356_v42  ;;  %v245_v43 = vpop.f32.mrb[9].mxu0  ;;  %v358_v44 = vpop.f32.mrb[9].mxu1 }
  0xf7   :  { %432 = vst [vmem:[%s870_s2 + $0x88] sm:$0xff] %v245_v43  ;;  %434 = vst [vmem:[%s870_s2 + $0x98] sm:$0xff] %v358_v44  ;;  %v247_v45 = vpop.f32.mrb[10].mxu0  ;;  %v360_v46 = vpop.f32.mrb[10].mxu1 }
  0xf8   :  { %435 = vst [vmem:[%s870_s2 + $0xa0] sm:$0xff] %v247_v45  ;;  %437 = vst [vmem:[%s870_s2 + $0xb0] sm:$0xff] %v360_v46  ;;  %v249_v47 = vpop.f32.mrb[11].mxu0  ;;  %v362_v48 = vpop.f32.mrb[11].mxu1 }
  0xf9   :  { %436 = vst [vmem:[%s870_s2 + $0xa8] sm:$0xff] %v249_v47  ;;  %438 = vst [vmem:[%s870_s2 + $0xb8] sm:$0xff] %v362_v48 }
  0xfd   :  { %v253_v49 = vpop.f32.mrb[12].mxu0  ;;  %v366_v50 = vpop.f32.mrb[12].mxu1 }
  0xfe   :  { %439 = vst [vmem:[%s870_s2 + $0xc0] sm:$0xff] %v253_v49  ;;  %441 = vst [vmem:[%s870_s2 + $0xd0] sm:$0xff] %v366_v50  ;;  %v255_v51 = vpop.f32.mrb[13].mxu0  ;;  %v368_v52 = vpop.f32.mrb[13].mxu1 }
  0xff   :  { %440 = vst [vmem:[%s870_s2 + $0xc8] sm:$0xff] %v255_v51  ;;  %442 = vst [vmem:[%s870_s2 + $0xd8] sm:$0xff] %v368_v52  ;;  %v257_v53 = vpop.f32.mrb[14].mxu0  ;;  %v370_v54 = vpop.f32.mrb[14].mxu1 }
 0x100   :  { %443 = vst [vmem:[%s870_s2 + $0xe0] sm:$0xff] %v257_v53  ;;  %445 = vst [vmem:[%s870_s2 + $0xf0] sm:$0xff] %v370_v54  ;;  %v259_v55 = vpop.f32.mrb[15].mxu0  ;;  %v372_v56 = vpop.f32.mrb[15].mxu1 }
 0x101   :  { %444 = vst [vmem:[%s870_s2 + $0xe8] sm:$0xff] %v259_v55  ;;  %446 = vst [vmem:[%s870_s2 + $0xf8] sm:$0xff] %v372_v56 }
 0x105   :  { %v263_v57 = vpop.f32.mrb[16].mxu0  ;;  %v376_v58 = vpop.f32.mrb[16].mxu1 }
 0x106   :  { %447 = vst [vmem:[%s870_s2 + $0x100] sm:$0xff] %v263_v57  ;;  %449 = vst [vmem:[%s870_s2 + $0x110] sm:$0xff] %v376_v58  ;;  %v265_v59 = vpop.f32.mrb[17].mxu0  ;;  %v378_v60 = vpop.f32.mrb[17].mxu1 }
 0x107   :  { %448 = vst [vmem:[%s870_s2 + $0x108] sm:$0xff] %v265_v59  ;;  %450 = vst [vmem:[%s870_s2 + $0x118] sm:$0xff] %v378_v60  ;;  %v267_v61 = vpop.f32.mrb[18].mxu0  ;;  %v380_v62 = vpop.f32.mrb[18].mxu1 }
 0x108   :  { %451 = vst [vmem:[%s870_s2 + $0x120] sm:$0xff] %v267_v61  ;;  %453 = vst [vmem:[%s870_s2 + $0x130] sm:$0xff] %v380_v62  ;;  %v269_v63 = vpop.f32.mrb[19].mxu0  ;;  %v382_v0 = vpop.f32.mrb[19].mxu1 }
 0x109   :  { %452 = vst [vmem:[%s870_s2 + $0x128] sm:$0xff] %v269_v63  ;;  %454 = vst [vmem:[%s870_s2 + $0x138] sm:$0xff] %v382_v0 }
 0x10d   :  { %v273_v1 = vpop.f32.mrb[20].mxu0  ;;  %v386_v2 = vpop.f32.mrb[20].mxu1 }
 0x10e   :  { %455 = vst [vmem:[%s870_s2 + $0x140] sm:$0xff] %v273_v1  ;;  %457 = vst [vmem:[%s870_s2 + $0x150] sm:$0xff] %v386_v2  ;;  %v275_v3 = vpop.f32.mrb[21].mxu0  ;;  %v388_v4 = vpop.f32.mrb[21].mxu1 }
 0x10f   :  { %456 = vst [vmem:[%s870_s2 + $0x148] sm:$0xff] %v275_v3  ;;  %458 = vst [vmem:[%s870_s2 + $0x158] sm:$0xff] %v388_v4  ;;  %v277_v5 = vpop.f32.mrb[22].mxu0  ;;  %v390_v6 = vpop.f32.mrb[22].mxu1 }
 0x110   :  { %459 = vst [vmem:[%s870_s2 + $0x160] sm:$0xff] %v277_v5  ;;  %461 = vst [vmem:[%s870_s2 + $0x170] sm:$0xff] %v390_v6  ;;  %v279_v7 = vpop.f32.mrb[23].mxu0  ;;  %v392_v8 = vpop.f32.mrb[23].mxu1 }
 0x111   :  { %460 = vst [vmem:[%s870_s2 + $0x168] sm:$0xff] %v279_v7  ;;  %462 = vst [vmem:[%s870_s2 + $0x178] sm:$0xff] %v392_v8 }
 0x115   :  { %v283_v9 = vpop.f32.mrb[24].mxu0  ;;  %v396_v10 = vpop.f32.mrb[24].mxu1 }
 0x116   :  { %463 = vst [vmem:[%s870_s2 + $0x180] sm:$0xff] %v283_v9  ;;  %465 = vst [vmem:[%s870_s2 + $0x190] sm:$0xff] %v396_v10  ;;  %v285_v11 = vpop.f32.mrb[25].mxu0  ;;  %v398_v12 = vpop.f32.mrb[25].mxu1 }
 0x117   :  { %464 = vst [vmem:[%s870_s2 + $0x188] sm:$0xff] %v285_v11  ;;  %466 = vst [vmem:[%s870_s2 + $0x198] sm:$0xff] %v398_v12  ;;  %v287_v13 = vpop.f32.mrb[26].mxu0  ;;  %v400_v14 = vpop.f32.mrb[26].mxu1 }
 0x118   :  { %467 = vst [vmem:[%s870_s2 + $0x1a0] sm:$0xff] %v287_v13  ;;  %469 = vst [vmem:[%s870_s2 + $0x1b0] sm:$0xff] %v400_v14  ;;  %v289_v15 = vpop.f32.mrb[27].mxu0  ;;  %v402_v16 = vpop.f32.mrb[27].mxu1 }
 0x119   :  { %468 = vst [vmem:[%s870_s2 + $0x1a8] sm:$0xff] %v289_v15  ;;  %470 = vst [vmem:[%s870_s2 + $0x1b8] sm:$0xff] %v402_v16 }
 0x11d   :  { %v293_v17 = vpop.f32.mrb[28].mxu0  ;;  %v406_v18 = vpop.f32.mrb[28].mxu1 }
 0x11e   :  { %471 = vst [vmem:[%s870_s2 + $0x1c0] sm:$0xff] %v293_v17  ;;  %473 = vst [vmem:[%s870_s2 + $0x1d0] sm:$0xff] %v406_v18  ;;  %v295_v19 = vpop.f32.mrb[29].mxu0  ;;  %v408_v20 = vpop.f32.mrb[29].mxu1 }
 0x11f   :  { %472 = vst [vmem:[%s870_s2 + $0x1c8] sm:$0xff] %v295_v19  ;;  %474 = vst [vmem:[%s870_s2 + $0x1d8] sm:$0xff] %v408_v20  ;;  %v297_v21 = vpop.f32.mrb[30].mxu0  ;;  %v410_v22 = vpop.f32.mrb[30].mxu1 }
 0x120   :  { %475 = vst [vmem:[%s870_s2 + $0x1e0] sm:$0xff] %v297_v21  ;;  %477 = vst [vmem:[%s870_s2 + $0x1f0] sm:$0xff] %v410_v22  ;;  %v299_v23 = vpop.f32.mrb[31].mxu0  ;;  %v412_v24 = vpop.f32.mrb[31].mxu1 }
 0x121   :  { %476 = vst [vmem:[%s870_s2 + $0x1e8] sm:$0xff] %v299_v23  ;;  %478 = vst [vmem:[%s870_s2 + $0x1f8] sm:$0xff] %v412_v24 }

// kernel: generator_forward.21
= control target key start
LH: loop header
LB: loop body
LE: loop exit
PB: predicated region body
PF: predicated region fallthrough
CT: control target
= control target key end

     0   :  { %v14_v0 = vlaneseq  ;;  %v202_v4 = vmov 1966171168   ;;  %v203_v13 = vmov 0.0   ;;  %s305_s0 = inlined_call_operand.vmem [shape: f32[32,512], index: 0, kind: input, shape index: {}]   ;;  %s306_s1 = inlined_call_operand.vmem [shape: f32[1,512], index: 1, kind: output, shape index: {0}]   ;;  %s307_s2 = inlined_call_operand.vmem [shape: f32[1,512], index: 2, kind: output, shape index: {1}]  }
   0x1   :  { %v20_v1 = vld [vmem:[%s305_s0] sm:$0xff]  ;;  %v21_v2 = vld [vmem:[%s305_s0 + $0x8] sm:$0xff]  ;;  %v22_v3 = vld [vmem:[%s305_s0 + $0x10] sm:$0xff]  ;;  %v80_v5 = vunpack.c.l.s4 %v202_v4 }
   0x2   :  { %vm228_vm0 = vcmp.lt.s32.totalorder %v14_v0, 512  ;;  %v23_v7 = vld [vmem:[%s305_s0 + $0x18] sm:$0xff]  ;;  %v24_v8 = vld [vmem:[%s305_s0 + $0x20] sm:$0xff]  ;;  %v25_v9 = vld [vmem:[%s305_s0 + $0x28] sm:$0xff]  ;;  %v83_v10 = vshrl.u32 %v14_v0, 7  ;;  %v109_v11 = vmul.f32 %v20_v1, %v20_v1  ;;  %v110_v12 = vmul.f32 %v21_v2, %v21_v2 }
   0x3   :  { %18 = vst.msk [vmem:[%s306_s1] sm:$0xf] %vm228_vm0, %v203_v13  ;;  %v26_v14 = vld [vmem:[%s305_s0 + $0x30] sm:$0xff]  ;;  %v27_v15 = vld [vmem:[%s305_s0 + $0x38] sm:$0xff]  ;;  %v37_v16 = vadd.f32 %v24_v8, %v20_v1  ;;  %v46_v17 = vadd.f32 %v25_v9, %v21_v2  ;;  %v81_v18 = vunpack.c.0.s8 %v80_v5  ;;  %19 = vst.msk [vmem:[%s307_s2] sm:$0xf] %vm228_vm0, %v203_v13  ;;  %v111_v19 = vmul.f32 %v22_v3, %v22_v3 }
   0x4   :  { %v28_v20 = vld [vmem:[%s305_s0 + $0x40] sm:$0xff]  ;;  %v29_v21 = vld [vmem:[%s305_s0 + $0x48] sm:$0xff]  ;;  %v55_v22 = vadd.f32 %v26_v14, %v22_v3  ;;  %v64_v23 = vadd.f32 %v27_v15, %v23_v7  ;;  %v112_v24 = vmul.f32 %v23_v7, %v23_v7  ;;  %v113_v25 = vmul.f32 %v24_v8, %v24_v8  ;;  %v30_v26 = vld [vmem:[%s305_s0 + $0x50] sm:$0xff] }
   0x5   :  { %v31_v27 = vld [vmem:[%s305_s0 + $0x58] sm:$0xff]  ;;  %v38_v28 = vadd.f32 %v37_v16, %v28_v20  ;;  %v47_v29 = vadd.f32 %v46_v17, %v29_v21  ;;  %v269_v30 = vsub.s32 %v81_v18, %v83_v10  ;;  %v114_v31 = vmul.f32 %v25_v9, %v25_v9  ;;  %v32_v32 = vld [vmem:[%s305_s0 + $0x60] sm:$0xff]  ;;  %v33_v33 = vld [vmem:[%s305_s0 + $0x68] sm:$0xff] }
   0x6   :  { %v56_v34 = vadd.f32 %v55_v22, %v30_v26  ;;  %v65_v35 = vadd.f32 %v64_v23, %v31_v27  ;;  %v115_v36 = vmul.f32 %v26_v14, %v26_v14  ;;  %v116_v37 = vmul.f32 %v27_v15, %v27_v15  ;;  %v34_v38 = vld [vmem:[%s305_s0 + $0x70] sm:$0xff]  ;;  %v35_v39 = vld [vmem:[%s305_s0 + $0x78] sm:$0xff] }
   0x7   :  { %v39_v40 = vadd.f32 %v38_v28, %v32_v32  ;;  %v48_v41 = vadd.f32 %v47_v29, %v33_v33  ;;  %v117_v42 = vmul.f32 %v28_v20, %v28_v20  ;;  %v118_v43 = vmul.f32 %v29_v21, %v29_v21 }
   0x8   :  { %v57_v44 = vadd.f32 %v56_v34, %v34_v38  ;;  %v66_v45 = vadd.f32 %v65_v35, %v35_v39  ;;  %v119_v46 = vmul.f32 %v30_v26, %v30_v26  ;;  %v120_v47 = vmul.f32 %v31_v27, %v31_v27 }
   0x9   :  { %v40_v48 = vrot.slane %v39_v40, 4  ;;  %v49_v49 = vrot.slane %v48_v41, 4  ;;  %v121_v50 = vmul.f32 %v32_v32, %v32_v32  ;;  %v122_v51 = vmul.f32 %v33_v33, %v33_v33 }
   0xa   :  { %v58_v52 = vrot.slane %v57_v44, 4  ;;  %v67_v53 = vrot.slane %v66_v45, 4  ;;  %v123_v54 = vmul.f32 %v34_v38, %v34_v38  ;;  %v124_v55 = vmul.f32 %v35_v39, %v35_v39 }
   0xb   :  { %v41_v56 = vadd.f32 %v40_v48, %v39_v40  ;;  %v50_v57 = vadd.f32 %v49_v49, %v48_v41  ;;  %v125_v58 = vadd.f32 %v113_v25, %v109_v11  ;;  %v134_v59 = vadd.f32 %v114_v31, %v110_v12 }
   0xc   :  { %v59_v60 = vadd.f32 %v58_v52, %v57_v44  ;;  %v68_v61 = vadd.f32 %v67_v53, %v66_v45  ;;  %v143_v62 = vadd.f32 %v115_v36, %v111_v19  ;;  %v152_v63 = vadd.f32 %v116_v37, %v112_v24 }
   0xd   :  { %v42_v0 = vrot.slane %v41_v56, 2  ;;  %v51_v1 = vrot.slane %v50_v57, 2  ;;  %v126_v2 = vadd.f32 %v125_v58, %v117_v42  ;;  %v135_v3 = vadd.f32 %v134_v59, %v118_v43 }
   0xe   :  { %v60_v4 = vrot.slane %v59_v60, 2  ;;  %v69_v5 = vrot.slane %v68_v61, 2  ;;  %v144_v7 = vadd.f32 %v143_v62, %v119_v46  ;;  %v153_v8 = vadd.f32 %v152_v63, %v120_v47  ;;  %v108_v63 = vld [vmem:[%s307_s2] sm:$0xf] }
   0xf   :  { %v43_v9 = vadd.f32 %v42_v0, %v41_v56  ;;  %v52_v10 = vadd.f32 %v51_v1, %v50_v57  ;;  %v127_v13 = vadd.f32 %v126_v2, %v121_v50  ;;  %v136_v14 = vadd.f32 %v135_v3, %v122_v51  ;;  %v36_v51 = vld [vmem:[%s306_s1] sm:$0xf] }
  0x10   :  { %v61_v15 = vadd.f32 %v60_v4, %v59_v60  ;;  %v70_v16 = vadd.f32 %v69_v5, %v68_v61  ;;  %v145_v11 = vadd.f32 %v144_v7, %v123_v54  ;;  %v154_v12 = vadd.f32 %v153_v8, %v124_v55 }
  0x11   :  { %v44_v17 = vrot.slane %v43_v9, 1  ;;  %v53_v18 = vrot.slane %v52_v10, 1  ;;  %v128_v19 = vrot.slane %v127_v13, 4  ;;  %v137_v20 = vrot.slane %v136_v14, 4 }
  0x12   :  { %v62_v21 = vrot.slane %v61_v15, 1  ;;  %v71_v22 = vrot.slane %v70_v16, 1  ;;  %v146_v23 = vrot.slane %v145_v11, 4  ;;  %v155_v24 = vrot.slane %v154_v12, 4 }
  0x13   :  { %v45_v25 = vadd.f32 %v44_v17, %v43_v9  ;;  %v54_v26 = vadd.f32 %v53_v18, %v52_v10  ;;  %v129_v27 = vadd.f32 %v128_v19, %v127_v13  ;;  %v138_v28 = vadd.f32 %v137_v20, %v136_v14 }
  0x14   :  { %v63_v29 = vadd.f32 %v62_v21, %v61_v15  ;;  %v72_v31 = vadd.f32 %v71_v22, %v70_v16  ;;  %v147_v32 = vadd.f32 %v146_v23, %v145_v11  ;;  %v156_v33 = vadd.f32 %v155_v24, %v154_v12 }
  0x15   :  { %v77_v34 = vcombine.low %v45_v25, %v54_v26  ;;  %v130_v35 = vrot.slane %v129_v27, 2  ;;  %v139_v36 = vrot.slane %v138_v28, 2 }
  0x16   :  { %v78_v37 = vcombine.low %v63_v29, %v72_v31  ;;  %v148_v38 = vrot.slane %v147_v32, 2  ;;  %v157_v39 = vrot.slane %v156_v33, 2 }
  0x17   :  { %v85_v40 = vrot.slane %v77_v34, %v269_v30  ;;  %v131_v41 = vadd.f32 %v130_v35, %v129_v27  ;;  %v140_v42 = vadd.f32 %v139_v36, %v138_v28 }
  0x18   :  { %v92_v43 = vrot.slane %v78_v37, %v269_v30  ;;  %v149_v44 = vadd.f32 %v148_v38, %v147_v32  ;;  %v158_v45 = vadd.f32 %v157_v39, %v156_v33 }
  0x19   :  { %v132_v46 = vrot.slane %v131_v41, 1  ;;  %v141_v47 = vrot.slane %v140_v42, 1 }
  0x1a   :  { %v93_v48 = vcombine.low %v85_v40, %v92_v43  ;;  %v150_v49 = vrot.slane %v149_v44, 1  ;;  %v159_v50 = vrot.slane %v158_v45, 1 }
  0x1b   :  { %v133_v52 = vadd.f32 %v132_v46, %v131_v41  ;;  %v142_v53 = vadd.f32 %v141_v47, %v140_v42 }
  0x1c   :  { %v100_v54 = vrot.slane %v93_v48, %v269_v30  ;;  %v151_v55 = vadd.f32 %v150_v49, %v149_v44  ;;  %v160_v56 = vadd.f32 %v159_v50, %v158_v45 }
  0x1d   :  { %v165_v57 = vcombine.low %v133_v52, %v142_v53 }
  0x1e   :  { %v102_v58 = vadd.f32 %v100_v54, %v36_v51  ;;  %v166_v59 = vcombine.low %v151_v55, %v160_v56 }
  0x1f   :  { %v173_v60 = vrot.slane %v165_v57, %v269_v30 }
  0x20   :  { %107 = vst.msk [vmem:[%s306_s1] sm:$0xf] %vm228_vm0, %v102_v58  ;;  %v180_v61 = vrot.slane %v166_v59, %v269_v30 }
  0x22   :  { %v181_v62 = vcombine.low %v173_v60, %v180_v61 }
  0x24   :  { %v188_v0 = vrot.slane %v181_v62, %v269_v30 }
  0x26   :  { %v190_v1 = vadd.f32 %v188_v0, %v108_v63 }
  0x28   :  { %191 = vst.msk [vmem:[%s307_s2] sm:$0xf] %vm228_vm0, %v190_v1 }

// kernel: tile.68
= control target key start
LH: loop header
LB: loop body
LE: loop exit
PB: predicated region body
PF: predicated region fallthrough
CT: control target
= control target key end

     0   :  { %s28_s0 = inlined_call_operand.vmem [shape: f32[32], index: 0, kind: input, shape index: {}]   ;;  %s29_s1 = inlined_call_operand.vmem [shape: f32[16,32], index: 1, kind: output, shape index: {}]  }
   0x1   :  { %v4_v0 = vld [vmem:[%s28_s0] ss:$0 sm:$0xff] }
   0x2   :  { %5 = vst [vmem:[%s29_s1] sm:$0xff] %v4_v0  ;;  %8 = vst [vmem:[%s29_s1 + $0x8] sm:$0xff] %v4_v0 }

// kernel: tile.69
= control target key start
LH: loop header
LB: loop body
LE: loop exit
PB: predicated region body
PF: predicated region fallthrough
CT: control target
= control target key end

     0   :  { %s57_s8 = smov 96   ;;  %vm3_vm0 = vcmask 261120   ;;  %s59_s15 = smov 64   ;;  %vm9_vm1 = vcmask 1048320   ;;  %vm15_vm2 = vcmask 785920   ;;  %vm21_vm3 = vcmask 523520   ;;  %s94_s0 = inlined_call_operand.vmem [shape: f32[16,32], index: 0, kind: input, shape index: {}]   ;;  %s95_s1 = inlined_call_operand.vmem [shape: f32[1,512], index: 1, kind: output, shape index: {}]  }
   0x1   :  { %v48_v0 = vld [vmem:[%s94_s0 + $0x3] ss:$4 sm:$0xf]   ;;  %v49_v1 = vld [vmem:[%s94_s0 + $0x2] ss:$4 sm:$0xf]  }
   0x2   :  { %7 = vrot.lane.b32.xlu0 %v48_v0, %s57_s8  ;;  %v50_v2 = vld [vmem:[%s94_s0 + $0x1] ss:$4 sm:$0xf]   ;;  %v2_v3 = vld [vmem:[%s94_s0] ss:$4 sm:$0xf]  }
   0x3   :  { %s58_s0 = smov 32   ;;  %4 = vst.msk [vmem:[#allocation0] ss:$8 sm:$0xf] %vm3_vm0, %v2_v3  }
   0x4   :  { %19 = vrot.lane.b32.xlu1 %v50_v2, %s58_s0 }
   0x6   :  { %13 = vrot.lane.b32.xlu0 %v49_v1, %s59_s15 }
  0x74   :  { %v8_v4 = vpop.permute.xlu0 %7  }
  0x75   :  { %10 = vst.msk [vmem:[#allocation0] ss:$8 sm:$0xf] %vm9_vm1, %v8_v4  }
  0x76   :  { %v20_v5 = vpop.permute.xlu1 %19  }
  0x78   :  { %v14_v6 = vpop.permute.xlu0 %13  }
  0x79   :  { %16 = vst.msk [vmem:[#allocation0] ss:$8 sm:$0xf] %vm15_vm2, %v14_v6  }
  0x7a   :  { %22 = vst.msk [vmem:[#allocation0] ss:$8 sm:$0xf] %vm21_vm3, %v20_v5  }
  0x81   :  { %v26_v7 = vld [vmem:[#allocation0] sm:$0x1]  ;;  %v30_v8 = vld [vmem:[#allocation0 + $0x8] sm:$0x1]  ;;  %v35_v9 = vld [vmem:[#allocation0 + $0x10] sm:$0x1] }
  0x82   :  { %28 = vst [vmem:[%s95_s1] sm:$0x1] %v26_v7  ;;  %51 = vst [vmem:[%s95_s1 + $0x1] sm:$0x1] %v30_v8  ;;  %v41_v10 = vld [vmem:[#allocation0 + $0x18] sm:$0x1] }
  0x83   :  { %52 = vst [vmem:[%s95_s1 + $0x2] sm:$0x1] %v35_v9  ;;  %53 = vst [vmem:[%s95_s1 + $0x3] sm:$0x1] %v41_v10 }

// kernel: generator_forward.22
= control target key start
LH: loop header
LB: loop body
LE: loop exit
PB: predicated region body
PF: predicated region fallthrough
CT: control target
= control target key end

     0   :  { %v32_v0 = vlaneseq  ;;  %s308_s1 = inlined_call_operand.vmem [shape: f32[1,512], index: 1, kind: input, shape index: {}]   ;;  %s309_s2 = inlined_call_operand.vmem [shape: f32[1,512], index: 2, kind: input, shape index: {}]   ;;  %s310_s0 = inlined_call_operand.vmem [shape: f32[32,512], index: 0, kind: input, shape index: {}]   ;;  %s311_s3 = inlined_call_operand.vmem [shape: bf16[32,512], index: 3, kind: output, shape index: {}]  }
   0x1   :  { %v30_v2 = vld [vmem:[%s308_s1] sm:$0xf]  ;;  %v15_v5 = vld [vmem:[%s310_s0 + $0x8] sm:$0xff]  ;;  %v16_v10 = vld [vmem:[%s310_s0 + $0x10] sm:$0xff] }
   0x2   :  { %v33_v1 = vshrl.u32 %v32_v0, 7  ;;  %v68_v3 = vld [vmem:[%s309_s2] sm:$0xf]  ;;  %v19_v12 = vld [vmem:[%s310_s0 + $0x28] sm:$0xff]  ;;  %v17_v17 = vld [vmem:[%s310_s0 + $0x18] sm:$0xff] }
   0x3   :  { %v14_v4 = vld [vmem:[%s310_s0] sm:$0xff]  ;;  %v20_v18 = vld [vmem:[%s310_s0 + $0x30] sm:$0xff]  ;;  %v21_v19 = vld [vmem:[%s310_s0 + $0x38] sm:$0xff] }
   0x4   :  { %v34_v6 = vsub.s32 0, %v33_v1  ;;  %v38_v7 = vsub.s32 1, %v33_v1  ;;  %v42_v8 = vsub.s32 2, %v33_v1  ;;  %v46_v9 = vsub.s32 3, %v33_v1  ;;  %v18_v11 = vld [vmem:[%s310_s0 + $0x20] sm:$0xff]  ;;  %v23_v41 = vld [vmem:[%s310_s0 + $0x48] sm:$0xff] }
   0x5   :  { %v22_v40 = vld [vmem:[%s310_s0 + $0x40] sm:$0xff]  ;;  %v24_v46 = vld [vmem:[%s310_s0 + $0x50] sm:$0xff]  ;;  %v25_v47 = vld [vmem:[%s310_s0 + $0x58] sm:$0xff] }
   0x6   :  { %v35_v13 = vrot.slane %v30_v2, %v34_v6  ;;  %v39_v14 = vrot.slane %v30_v2, %v38_v7  ;;  %v239_v15 = vrot.slane %v68_v3, %v34_v6  ;;  %v241_v16 = vrot.slane %v68_v3, %v38_v7  ;;  %v26_v52 = vld [vmem:[%s310_s0 + $0x60] sm:$0xff]  ;;  %v27_v53 = vld [vmem:[%s310_s0 + $0x68] sm:$0xff]  ;;  %v28_v58 = vld [vmem:[%s310_s0 + $0x70] sm:$0xff] }
   0x7   :  { %v43_v20 = vrot.slane %v30_v2, %v42_v8  ;;  %v47_v21 = vrot.slane %v30_v2, %v46_v9  ;;  %v81_v22 = vrot.slane %v68_v3, %v42_v8  ;;  %v85_v23 = vrot.slane %v68_v3, %v46_v9  ;;  %v29_v59 = vld [vmem:[%s310_s0 + $0x78] sm:$0xff] }
   0x8   :  { %v52_v24 = vmul.f32 %v35_v13, %v14_v4  ;;  %v53_v25 = vmul.f32 %v39_v14, %v15_v5  ;;  %v56_v26 = vmul.f32 %v35_v13, %v18_v11  ;;  %v57_v27 = vmul.f32 %v39_v14, %v19_v12 }
   0x9   :  { %v54_v28 = vmul.f32 %v43_v20, %v16_v10  ;;  %v55_v29 = vmul.f32 %v47_v21, %v17_v17  ;;  %v58_v30 = vmul.f32 %v43_v20, %v20_v18  ;;  %v59_v31 = vmul.f32 %v47_v21, %v21_v19 }
   0xa   :  { %v90_v32 = vadd.f32 %v239_v15, %v52_v24  ;;  %v91_v33 = vadd.f32 %v241_v16, %v53_v25  ;;  %v94_v34 = vadd.f32 %v239_v15, %v56_v26  ;;  %v95_v35 = vadd.f32 %v241_v16, %v57_v27 }
   0xb   :  { %v92_v36 = vadd.f32 %v81_v22, %v54_v28  ;;  %v93_v37 = vadd.f32 %v85_v23, %v55_v29  ;;  %v96_v38 = vadd.f32 %v81_v22, %v58_v30  ;;  %v97_v39 = vadd.f32 %v85_v23, %v59_v31 }
   0xc   :  { %v106_v42 = vmax.f32 %v90_v32, 0.0  ;;  %v107_v43 = vmax.f32 %v91_v33, 0.0  ;;  %v110_v44 = vmax.f32 %v94_v34, 0.0  ;;  %v111_v45 = vmax.f32 %v95_v35, 0.0 }
   0xd   :  { %v108_v48 = vmax.f32 %v92_v36, 0.0  ;;  %v109_v49 = vmax.f32 %v93_v37, 0.0  ;;  %v112_v50 = vmax.f32 %v96_v38, 0.0  ;;  %v113_v51 = vmax.f32 %v97_v39, 0.0 }
   0xe   :  { %v190_v54 = vpack.c.bf16 %v107_v43, %v106_v42  ;;  %v192_v55 = vpack.c.bf16 %v111_v45, %v110_v44  ;;  %v60_v56 = vmul.f32 %v35_v13, %v22_v40  ;;  %v61_v57 = vmul.f32 %v39_v14, %v23_v41 }
   0xf   :  { %v191_v60 = vpack.c.bf16 %v109_v49, %v108_v48  ;;  %v193_v61 = vpack.c.bf16 %v113_v51, %v112_v50  ;;  %v62_v62 = vmul.f32 %v43_v20, %v24_v46  ;;  %v63_v63 = vmul.f32 %v47_v21, %v25_v47 }
  0x10   :  { %170 = vst [vmem:[%s311_s3] sm:$0xff] %v190_v54  ;;  %172 = vst [vmem:[%s311_s3 + $0x10] sm:$0xff] %v192_v55  ;;  %v98_v0 = vadd.f32 %v239_v15, %v60_v56  ;;  %v99_v1 = vadd.f32 %v241_v16, %v61_v57  ;;  %v64_v2 = vmul.f32 %v35_v13, %v26_v52 }
  0x11   :  { %v65_v3 = vmul.f32 %v39_v14, %v27_v53  ;;  %171 = vst [vmem:[%s311_s3 + $0x8] sm:$0xff] %v191_v60  ;;  %173 = vst [vmem:[%s311_s3 + $0x18] sm:$0xff] %v193_v61  ;;  %v100_v4 = vadd.f32 %v81_v22, %v62_v62  ;;  %v101_v5 = vadd.f32 %v85_v23, %v63_v63 }
  0x12   :  { %v66_v6 = vmul.f32 %v43_v20, %v28_v58  ;;  %v67_v7 = vmul.f32 %v47_v21, %v29_v59  ;;  %v114_v8 = vmax.f32 %v98_v0, 0.0  ;;  %v115_v9 = vmax.f32 %v99_v1, 0.0 }
  0x13   :  { %v102_v10 = vadd.f32 %v239_v15, %v64_v2  ;;  %v103_v11 = vadd.f32 %v241_v16, %v65_v3  ;;  %v116_v12 = vmax.f32 %v100_v4, 0.0  ;;  %v117_v13 = vmax.f32 %v101_v5, 0.0 }
  0x14   :  { %v104_v14 = vadd.f32 %v81_v22, %v66_v6  ;;  %v105_v17 = vadd.f32 %v85_v23, %v67_v7  ;;  %v194_v18 = vpack.c.bf16 %v115_v9, %v114_v8 }
  0x15   :  { %v118_v19 = vmax.f32 %v102_v10, 0.0  ;;  %v119_v24 = vmax.f32 %v103_v11, 0.0  ;;  %v195_v25 = vpack.c.bf16 %v117_v13, %v116_v12 }
  0x16   :  { %v120_v26 = vmax.f32 %v104_v14, 0.0  ;;  %v121_v27 = vmax.f32 %v105_v17, 0.0  ;;  %174 = vst [vmem:[%s311_s3 + $0x20] sm:$0xff] %v194_v18 }
  0x17   :  { %v196_v20 = vpack.c.bf16 %v119_v24, %v118_v19  ;;  %175 = vst [vmem:[%s311_s3 + $0x28] sm:$0xff] %v195_v25 }
  0x18   :  { %v197_v15 = vpack.c.bf16 %v121_v27, %v120_v26 }
  0x19   :  { %176 = vst [vmem:[%s311_s3 + $0x30] sm:$0xff] %v196_v20 }
  0x1a   :  { %177 = vst [vmem:[%s311_s3 + $0x38] sm:$0xff] %v197_v15 }

// kernel: generator_forward.23
= control target key start
LH: loop header
LB: loop body
LE: loop exit
PB: predicated region body
PF: predicated region fallthrough
CT: control target
= control target key end

     0   :  { %v953_v1 = vmov 0   ;;  %vm260_vm0 = vcmask 261120   ;;  %s1525_s1 = inlined_call_operand.vmem [shape: bf16[32,256], index: 1, kind: input, shape index: {}]   ;;  %s1526_s0 = inlined_call_operand.vmem [shape: bf16[512,32], index: 0, kind: input, shape index: {}]   ;;  %s1527_s2 = inlined_call_operand.vmem [shape: f32[512,256], index: 2, kind: output, shape index: {}]  }
   0x1   :  { %v915_v0 = vld [vmem:[%s1525_s1 + $0x4] ss:$8 sps:$4 sm:$0xff]   ;;  %389 = vmatprep.mubr.bf16.mxu0 %v953_v1  ;;  %549 = vmatprep.mubr.bf16.mxu1 %v953_v1  ;;  %v917_v2 = vld [vmem:[%s1525_s1] ss:$8 sps:$4 sm:$0xff]   ;;  %v918_v3 = vld [vmem:[%s1525_s1 + $0x14] ss:$8 sps:$4 sm:$0xff]  }
   0x2   :  { %357 = vmatprep.subr.bf16.mxu0 %v915_v0  ;;  %910 = vmatprep.subr.bf16.mxu1 %v915_v0  ;;  %v920_v4 = vld [vmem:[%s1525_s1 + $0x10] ss:$8 sps:$4 sm:$0xff]   ;;  %v921_v5 = vld [vmem:[%s1526_s0] sm:$0xff]   ;;  %v923_v7 = vld [vmem:[%s1526_s0 + $0x8] sm:$0xff]  }
   0x3   :  { %358 = vmatpush1.bf16.msra.mxu0 %v917_v2  ;;  %912 = vmatpush1.bf16.msra.mxu1 %v917_v2  ;;  %v922_v6 = vld [vmem:[%s1526_s0 + $0x80] sm:$0xff]   ;;  %v924_v8 = vld [vmem:[%s1526_s0 + $0x88] sm:$0xff]   ;;  %v925_v9 = vld [vmem:[%s1526_s0 + $0x10] sm:$0xff]  }
   0x4   :  { %359 = vmatprep.subr.bf16.mxu0 %v918_v3  ;;  %911 = vmatprep.subr.bf16.mxu1 %v918_v3  ;;  %v926_v10 = vld [vmem:[%s1526_s0 + $0x90] sm:$0xff]   ;;  %v927_v11 = vld [vmem:[%s1526_s0 + $0x18] sm:$0xff]   ;;  %v929_v13 = vld [vmem:[%s1526_s0 + $0x20] sm:$0xff]  }
   0x5   :  { %v928_v12 = vld [vmem:[%s1526_s0 + $0x98] sm:$0xff]   ;;  %v930_v14 = vld [vmem:[%s1526_s0 + $0xa0] sm:$0xff]   ;;  %v931_v15 = vld [vmem:[%s1526_s0 + $0x28] sm:$0xff]  }
   0x6   :  { %v932_v16 = vld [vmem:[%s1526_s0 + $0xa8] sm:$0xff]   ;;  %v933_v17 = vld [vmem:[%s1526_s0 + $0x30] sm:$0xff]   ;;  %v935_v19 = vld [vmem:[%s1526_s0 + $0x38] sm:$0xff]  }
   0x7   :  { %360 = vmatpush1.bf16.msra.mxu0 %v920_v4  ;;  %913 = vmatpush1.bf16.msra.mxu1 %v920_v4  ;;  %v934_v18 = vld [vmem:[%s1526_s0 + $0xb0] sm:$0xff]   ;;  %v936_v20 = vld [vmem:[%s1526_s0 + $0xb8] sm:$0xff]   ;;  %v937_v21 = vld [vmem:[%s1526_s0 + $0x40] sm:$0xff]  }
   0x8   :  { %v938_v22 = vld [vmem:[%s1526_s0 + $0xc0] sm:$0xff]   ;;  %v939_v23 = vld [vmem:[%s1526_s0 + $0x48] sm:$0xff]   ;;  %v941_v25 = vld [vmem:[%s1526_s0 + $0x50] sm:$0xff]  }
   0x9   :  { %v940_v24 = vld [vmem:[%s1526_s0 + $0xc8] sm:$0xff]   ;;  %v942_v26 = vld [vmem:[%s1526_s0 + $0xd0] sm:$0xff]   ;;  %v943_v27 = vld [vmem:[%s1526_s0 + $0x58] sm:$0xff]  }
   0xa   :  { %878 = vmatmul.mubr.msk.bf16.vlgmr.msra.gmra.mrb[0].mxu0 %vm260_vm0, %v921_v5  ;;  %894 = vmatmul.mubr.msk.bf16.vlgmr.msra.gmra.mrb[0].mxu1 %vm260_vm0, %v922_v6  ;;  %v944_v28 = vld [vmem:[%s1526_s0 + $0xd8] sm:$0xff]   ;;  %v945_v29 = vld [vmem:[%s1526_s0 + $0x60] sm:$0xff]   ;;  %v947_v31 = vld [vmem:[%s1526_s0 + $0x68] sm:$0xff]  }
   0xb   :  { %399 = vmatprep.mubr.bf16.mxu0 %v953_v1  ;;  %559 = vmatprep.mubr.bf16.mxu1 %v953_v1  ;;  %v946_v30 = vld [vmem:[%s1526_s0 + $0xe0] sm:$0xff]   ;;  %v948_v32 = vld [vmem:[%s1526_s0 + $0xe8] sm:$0xff]   ;;  %v949_v33 = vld [vmem:[%s1526_s0 + $0x70] sm:$0xff]  }
   0xc   :  { %v950_v34 = vld [vmem:[%s1526_s0 + $0xf0] sm:$0xff]   ;;  %v951_v35 = vld [vmem:[%s1526_s0 + $0x78] sm:$0xff]  }
   0xd   :  { %v952_v36 = vld [vmem:[%s1526_s0 + $0xf8] sm:$0xff]  }
  0x12   :  { %879 = vmatmul.mubr.msk.bf16.gmra.mrb[4].mxu0 %vm260_vm0, %v923_v7  ;;  %895 = vmatmul.mubr.msk.bf16.gmra.mrb[4].mxu1 %vm260_vm0, %v924_v8 }
  0x13   :  { %409 = vmatprep.mubr.bf16.mxu0 %v953_v1  ;;  %569 = vmatprep.mubr.bf16.mxu1 %v953_v1 }
  0x1a   :  { %880 = vmatmul.mubr.msk.bf16.gmra.mrb[8].mxu0 %vm260_vm0, %v925_v9  ;;  %896 = vmatmul.mubr.msk.bf16.gmra.mrb[8].mxu1 %vm260_vm0, %v926_v10 }
  0x1b   :  { %419 = vmatprep.mubr.bf16.mxu0 %v953_v1  ;;  %579 = vmatprep.mubr.bf16.mxu1 %v953_v1 }
  0x22   :  { %881 = vmatmul.mubr.msk.bf16.gmra.mrb[12].mxu0 %vm260_vm0, %v927_v11  ;;  %897 = vmatmul.mubr.msk.bf16.gmra.mrb[12].mxu1 %vm260_vm0, %v928_v12 }
  0x23   :  { %429 = vmatprep.mubr.bf16.mxu0 %v953_v1  ;;  %589 = vmatprep.mubr.bf16.mxu1 %v953_v1 }
  0x2a   :  { %882 = vmatmul.mubr.msk.bf16.gmra.mrb[16].mxu0 %vm260_vm0, %v929_v13  ;;  %898 = vmatmul.mubr.msk.bf16.gmra.mrb[16].mxu1 %vm260_vm0, %v930_v14 }
  0x2b   :  { %439 = vmatprep.mubr.bf16.mxu0 %v953_v1  ;;  %599 = vmatprep.mubr.bf16.mxu1 %v953_v1 }
  0x32   :  { %883 = vmatmul.mubr.msk.bf16.gmra.mrb[20].mxu0 %vm260_vm0, %v931_v15  ;;  %899 = vmatmul.mubr.msk.bf16.gmra.mrb[20].mxu1 %vm260_vm0, %v932_v16 }
  0x33   :  { %449 = vmatprep.mubr.bf16.mxu0 %v953_v1  ;;  %609 = vmatprep.mubr.bf16.mxu1 %v953_v1 }
  0x3a   :  { %884 = vmatmul.mubr.msk.bf16.gmra.mrb[24].mxu0 %vm260_vm0, %v933_v17  ;;  %900 = vmatmul.mubr.msk.bf16.gmra.mrb[24].mxu1 %vm260_vm0, %v934_v18 }
  0x3b   :  { %459 = vmatprep.mubr.bf16.mxu0 %v953_v1  ;;  %619 = vmatprep.mubr.bf16.mxu1 %v953_v1 }
  0x42   :  { %885 = vmatmul.mubr.msk.bf16.gmra.mrb[28].mxu0 %vm260_vm0, %v935_v19  ;;  %901 = vmatmul.mubr.msk.bf16.gmra.mrb[28].mxu1 %vm260_vm0, %v936_v20 }
  0x43   :  { %469 = vmatprep.mubr.bf16.mxu0 %v953_v1  ;;  %629 = vmatprep.mubr.bf16.mxu1 %v953_v1 }
  0x4a   :  { %886 = vmatmul.mubr.msk.bf16.gmra.mrb[32].mxu0 %vm260_vm0, %v937_v21  ;;  %902 = vmatmul.mubr.msk.bf16.gmra.mrb[32].mxu1 %vm260_vm0, %v938_v22 }
  0x4b   :  { %479 = vmatprep.mubr.bf16.mxu0 %v953_v1  ;;  %639 = vmatprep.mubr.bf16.mxu1 %v953_v1 }
  0x52   :  { %887 = vmatmul.mubr.msk.bf16.gmra.mrb[36].mxu0 %vm260_vm0, %v939_v23  ;;  %903 = vmatmul.mubr.msk.bf16.gmra.mrb[36].mxu1 %vm260_vm0, %v940_v24 }
  0x53   :  { %489 = vmatprep.mubr.bf16.mxu0 %v953_v1  ;;  %649 = vmatprep.mubr.bf16.mxu1 %v953_v1 }
  0x5a   :  { %888 = vmatmul.mubr.msk.bf16.gmra.mrb[40].mxu0 %vm260_vm0, %v941_v25  ;;  %904 = vmatmul.mubr.msk.bf16.gmra.mrb[40].mxu1 %vm260_vm0, %v942_v26 }
  0x5b   :  { %499 = vmatprep.mubr.bf16.mxu0 %v953_v1  ;;  %659 = vmatprep.mubr.bf16.mxu1 %v953_v1 }
  0x62   :  { %889 = vmatmul.mubr.msk.bf16.gmra.mrb[44].mxu0 %vm260_vm0, %v943_v27  ;;  %905 = vmatmul.mubr.msk.bf16.gmra.mrb[44].mxu1 %vm260_vm0, %v944_v28 }
  0x63   :  { %509 = vmatprep.mubr.bf16.mxu0 %v953_v1  ;;  %669 = vmatprep.mubr.bf16.mxu1 %v953_v1 }
  0x6a   :  { %890 = vmatmul.mubr.msk.bf16.gmra.mrb[48].mxu0 %vm260_vm0, %v945_v29  ;;  %906 = vmatmul.mubr.msk.bf16.gmra.mrb[48].mxu1 %vm260_vm0, %v946_v30 }
  0x6b   :  { %519 = vmatprep.mubr.bf16.mxu0 %v953_v1  ;;  %679 = vmatprep.mubr.bf16.mxu1 %v953_v1 }
  0x72   :  { %891 = vmatmul.mubr.msk.bf16.gmra.mrb[52].mxu0 %vm260_vm0, %v947_v31  ;;  %907 = vmatmul.mubr.msk.bf16.gmra.mrb[52].mxu1 %vm260_vm0, %v948_v32 }
  0x73   :  { %529 = vmatprep.mubr.bf16.mxu0 %v953_v1  ;;  %689 = vmatprep.mubr.bf16.mxu1 %v953_v1 }
  0x7a   :  { %892 = vmatmul.mubr.msk.bf16.gmra.mrb[56].mxu0 %vm260_vm0, %v949_v33  ;;  %908 = vmatmul.mubr.msk.bf16.gmra.mrb[56].mxu1 %vm260_vm0, %v950_v34 }
  0x7b   :  { %539 = vmatprep.mubr.bf16.mxu0 %v953_v1  ;;  %699 = vmatprep.mubr.bf16.mxu1 %v953_v1 }
  0x82   :  { %893 = vmatmul.mubr.msk.bf16.gmra.mrb[60].mxu0 %vm260_vm0, %v951_v35  ;;  %909 = vmatmul.mubr.msk.bf16.gmra.mrb[60].mxu1 %vm260_vm0, %v952_v36 }
  0xdd   :  { %v391_v37 = vpop.f32.mrb[0].mxu0  ;;  %v551_v38 = vpop.f32.mrb[0].mxu1 }
  0xde   :  { %710 = vst [vmem:[%s1527_s2] sm:$0xff] %v391_v37  ;;  %774 = vst [vmem:[%s1527_s2 + $0x200] sm:$0xff] %v551_v38  ;;  %v393_v39 = vpop.f32.mrb[1].mxu0  ;;  %v553_v40 = vpop.f32.mrb[1].mxu1 }
  0xdf   :  { %711 = vst [vmem:[%s1527_s2 + $0x8] sm:$0xff] %v393_v39  ;;  %775 = vst [vmem:[%s1527_s2 + $0x208] sm:$0xff] %v553_v40  ;;  %v395_v41 = vpop.f32.mrb[2].mxu0  ;;  %v555_v42 = vpop.f32.mrb[2].mxu1 }
  0xe0   :  { %712 = vst [vmem:[%s1527_s2 + $0x10] sm:$0xff] %v395_v41  ;;  %776 = vst [vmem:[%s1527_s2 + $0x210] sm:$0xff] %v555_v42  ;;  %v397_v43 = vpop.f32.mrb[3].mxu0  ;;  %v557_v44 = vpop.f32.mrb[3].mxu1 }
  0xe1   :  { %713 = vst [vmem:[%s1527_s2 + $0x18] sm:$0xff] %v397_v43  ;;  %777 = vst [vmem:[%s1527_s2 + $0x218] sm:$0xff] %v557_v44 }
  0xe5   :  { %v401_v45 = vpop.f32.mrb[4].mxu0  ;;  %v561_v46 = vpop.f32.mrb[4].mxu1 }
  0xe6   :  { %714 = vst [vmem:[%s1527_s2 + $0x20] sm:$0xff] %v401_v45  ;;  %778 = vst [vmem:[%s1527_s2 + $0x220] sm:$0xff] %v561_v46  ;;  %v403_v47 = vpop.f32.mrb[5].mxu0  ;;  %v563_v48 = vpop.f32.mrb[5].mxu1 }
  0xe7   :  { %715 = vst [vmem:[%s1527_s2 + $0x28] sm:$0xff] %v403_v47  ;;  %779 = vst [vmem:[%s1527_s2 + $0x228] sm:$0xff] %v563_v48  ;;  %v405_v49 = vpop.f32.mrb[6].mxu0  ;;  %v565_v50 = vpop.f32.mrb[6].mxu1 }
  0xe8   :  { %716 = vst [vmem:[%s1527_s2 + $0x30] sm:$0xff] %v405_v49  ;;  %780 = vst [vmem:[%s1527_s2 + $0x230] sm:$0xff] %v565_v50  ;;  %v407_v51 = vpop.f32.mrb[7].mxu0  ;;  %v567_v52 = vpop.f32.mrb[7].mxu1 }
  0xe9   :  { %717 = vst [vmem:[%s1527_s2 + $0x38] sm:$0xff] %v407_v51  ;;  %781 = vst [vmem:[%s1527_s2 + $0x238] sm:$0xff] %v567_v52 }
  0xed   :  { %v411_v53 = vpop.f32.mrb[8].mxu0  ;;  %v571_v54 = vpop.f32.mrb[8].mxu1 }
  0xee   :  { %718 = vst [vmem:[%s1527_s2 + $0x40] sm:$0xff] %v411_v53  ;;  %782 = vst [vmem:[%s1527_s2 + $0x240] sm:$0xff] %v571_v54  ;;  %v413_v55 = vpop.f32.mrb[9].mxu0  ;;  %v573_v56 = vpop.f32.mrb[9].mxu1 }
  0xef   :  { %719 = vst [vmem:[%s1527_s2 + $0x48] sm:$0xff] %v413_v55  ;;  %783 = vst [vmem:[%s1527_s2 + $0x248] sm:$0xff] %v573_v56  ;;  %v415_v57 = vpop.f32.mrb[10].mxu0  ;;  %v575_v58 = vpop.f32.mrb[10].mxu1 }
  0xf0   :  { %720 = vst [vmem:[%s1527_s2 + $0x50] sm:$0xff] %v415_v57  ;;  %784 = vst [vmem:[%s1527_s2 + $0x250] sm:$0xff] %v575_v58  ;;  %v417_v59 = vpop.f32.mrb[11].mxu0  ;;  %v577_v60 = vpop.f32.mrb[11].mxu1 }
  0xf1   :  { %721 = vst [vmem:[%s1527_s2 + $0x58] sm:$0xff] %v417_v59  ;;  %785 = vst [vmem:[%s1527_s2 + $0x258] sm:$0xff] %v577_v60 }
  0xf5   :  { %v421_v61 = vpop.f32.mrb[12].mxu0  ;;  %v581_v62 = vpop.f32.mrb[12].mxu1 }
  0xf6   :  { %722 = vst [vmem:[%s1527_s2 + $0x60] sm:$0xff] %v421_v61  ;;  %786 = vst [vmem:[%s1527_s2 + $0x260] sm:$0xff] %v581_v62  ;;  %v423_v63 = vpop.f32.mrb[13].mxu0  ;;  %v583_v0 = vpop.f32.mrb[13].mxu1 }
  0xf7   :  { %723 = vst [vmem:[%s1527_s2 + $0x68] sm:$0xff] %v423_v63  ;;  %787 = vst [vmem:[%s1527_s2 + $0x268] sm:$0xff] %v583_v0  ;;  %v425_v1 = vpop.f32.mrb[14].mxu0  ;;  %v585_v2 = vpop.f32.mrb[14].mxu1 }
  0xf8   :  { %724 = vst [vmem:[%s1527_s2 + $0x70] sm:$0xff] %v425_v1  ;;  %788 = vst [vmem:[%s1527_s2 + $0x270] sm:$0xff] %v585_v2  ;;  %v427_v3 = vpop.f32.mrb[15].mxu0  ;;  %v587_v4 = vpop.f32.mrb[15].mxu1 }
  0xf9   :  { %725 = vst [vmem:[%s1527_s2 + $0x78] sm:$0xff] %v427_v3  ;;  %789 = vst [vmem:[%s1527_s2 + $0x278] sm:$0xff] %v587_v4 }
  0xfd   :  { %v431_v5 = vpop.f32.mrb[16].mxu0  ;;  %v591_v6 = vpop.f32.mrb[16].mxu1 }
  0xfe   :  { %726 = vst [vmem:[%s1527_s2 + $0x80] sm:$0xff] %v431_v5  ;;  %790 = vst [vmem:[%s1527_s2 + $0x280] sm:$0xff] %v591_v6  ;;  %v433_v7 = vpop.f32.mrb[17].mxu0  ;;  %v593_v8 = vpop.f32.mrb[17].mxu1 }
  0xff   :  { %727 = vst [vmem:[%s1527_s2 + $0x88] sm:$0xff] %v433_v7  ;;  %791 = vst [vmem:[%s1527_s2 + $0x288] sm:$0xff] %v593_v8  ;;  %v435_v9 = vpop.f32.mrb[18].mxu0  ;;  %v595_v10 = vpop.f32.mrb[18].mxu1 }
 0x100   :  { %728 = vst [vmem:[%s1527_s2 + $0x90] sm:$0xff] %v435_v9  ;;  %792 = vst [vmem:[%s1527_s2 + $0x290] sm:$0xff] %v595_v10  ;;  %v437_v11 = vpop.f32.mrb[19].mxu0  ;;  %v597_v12 = vpop.f32.mrb[19].mxu1 }
 0x101   :  { %729 = vst [vmem:[%s1527_s2 + $0x98] sm:$0xff] %v437_v11  ;;  %793 = vst [vmem:[%s1527_s2 + $0x298] sm:$0xff] %v597_v12 }
 0x105   :  { %v441_v13 = vpop.f32.mrb[20].mxu0  ;;  %v601_v14 = vpop.f32.mrb[20].mxu1 }
 0x106   :  { %730 = vst [vmem:[%s1527_s2 + $0xa0] sm:$0xff] %v441_v13  ;;  %794 = vst [vmem:[%s1527_s2 + $0x2a0] sm:$0xff] %v601_v14  ;;  %v443_v15 = vpop.f32.mrb[21].mxu0  ;;  %v603_v16 = vpop.f32.mrb[21].mxu1 }
 0x107   :  { %731 = vst [vmem:[%s1527_s2 + $0xa8] sm:$0xff] %v443_v15  ;;  %795 = vst [vmem:[%s1527_s2 + $0x2a8] sm:$0xff] %v603_v16  ;;  %v445_v17 = vpop.f32.mrb[22].mxu0  ;;  %v605_v18 = vpop.f32.mrb[22].mxu1 }
 0x108   :  { %732 = vst [vmem:[%s1527_s2 + $0xb0] sm:$0xff] %v445_v17  ;;  %796 = vst [vmem:[%s1527_s2 + $0x2b0] sm:$0xff] %v605_v18  ;;  %v447_v19 = vpop.f32.mrb[23].mxu0  ;;  %v607_v20 = vpop.f32.mrb[23].mxu1 }
 0x109   :  { %733 = vst [vmem:[%s1527_s2 + $0xb8] sm:$0xff] %v447_v19  ;;  %797 = vst [vmem:[%s1527_s2 + $0x2b8] sm:$0xff] %v607_v20 }
 0x10d   :  { %v451_v21 = vpop.f32.mrb[24].mxu0  ;;  %v611_v22 = vpop.f32.mrb[24].mxu1 }
 0x10e   :  { %734 = vst [vmem:[%s1527_s2 + $0xc0] sm:$0xff] %v451_v21  ;;  %798 = vst [vmem:[%s1527_s2 + $0x2c0] sm:$0xff] %v611_v22  ;;  %v453_v23 = vpop.f32.mrb[25].mxu0  ;;  %v613_v24 = vpop.f32.mrb[25].mxu1 }
 0x10f   :  { %735 = vst [vmem:[%s1527_s2 + $0xc8] sm:$0xff] %v453_v23  ;;  %799 = vst [vmem:[%s1527_s2 + $0x2c8] sm:$0xff] %v613_v24  ;;  %v455_v25 = vpop.f32.mrb[26].mxu0  ;;  %v615_v26 = vpop.f32.mrb[26].mxu1 }
 0x110   :  { %736 = vst [vmem:[%s1527_s2 + $0xd0] sm:$0xff] %v455_v25  ;;  %800 = vst [vmem:[%s1527_s2 + $0x2d0] sm:$0xff] %v615_v26  ;;  %v457_v27 = vpop.f32.mrb[27].mxu0  ;;  %v617_v28 = vpop.f32.mrb[27].mxu1 }
 0x111   :  { %737 = vst [vmem:[%s1527_s2 + $0xd8] sm:$0xff] %v457_v27  ;;  %801 = vst [vmem:[%s1527_s2 + $0x2d8] sm:$0xff] %v617_v28 }
 0x115   :  { %v461_v29 = vpop.f32.mrb[28].mxu0  ;;  %v621_v30 = vpop.f32.mrb[28].mxu1 }
 0x116   :  { %738 = vst [vmem:[%s1527_s2 + $0xe0] sm:$0xff] %v461_v29  ;;  %802 = vst [vmem:[%s1527_s2 + $0x2e0] sm:$0xff] %v621_v30  ;;  %v463_v31 = vpop.f32.mrb[29].mxu0  ;;  %v623_v32 = vpop.f32.mrb[29].mxu1 }
 0x117   :  { %739 = vst [vmem:[%s1527_s2 + $0xe8] sm:$0xff] %v463_v31  ;;  %803 = vst [vmem:[%s1527_s2 + $0x2e8] sm:$0xff] %v623_v32  ;;  %v465_v33 = vpop.f32.mrb[30].mxu0  ;;  %v625_v34 = vpop.f32.mrb[30].mxu1 }
 0x118   :  { %740 = vst [vmem:[%s1527_s2 + $0xf0] sm:$0xff] %v465_v33  ;;  %804 = vst [vmem:[%s1527_s2 + $0x2f0] sm:$0xff] %v625_v34  ;;  %v467_v35 = vpop.f32.mrb[31].mxu0  ;;  %v627_v36 = vpop.f32.mrb[31].mxu1 }
 0x119   :  { %741 = vst [vmem:[%s1527_s2 + $0xf8] sm:$0xff] %v467_v35  ;;  %805 = vst [vmem:[%s1527_s2 + $0x2f8] sm:$0xff] %v627_v36 }
 0x11d   :  { %v471_v37 = vpop.f32.mrb[32].mxu0  ;;  %v631_v38 = vpop.f32.mrb[32].mxu1 }
 0x11e   :  { %742 = vst [vmem:[%s1527_s2 + $0x100] sm:$0xff] %v471_v37  ;;  %806 = vst [vmem:[%s1527_s2 + $0x300] sm:$0xff] %v631_v38  ;;  %v473_v39 = vpop.f32.mrb[33].mxu0  ;;  %v633_v40 = vpop.f32.mrb[33].mxu1 }
 0x11f   :  { %743 = vst [vmem:[%s1527_s2 + $0x108] sm:$0xff] %v473_v39  ;;  %807 = vst [vmem:[%s1527_s2 + $0x308] sm:$0xff] %v633_v40  ;;  %v475_v41 = vpop.f32.mrb[34].mxu0  ;;  %v635_v42 = vpop.f32.mrb[34].mxu1 }
 0x120   :  { %744 = vst [vmem:[%s1527_s2 + $0x110] sm:$0xff] %v475_v41  ;;  %808 = vst [vmem:[%s1527_s2 + $0x310] sm:$0xff] %v635_v42  ;;  %v477_v43 = vpop.f32.mrb[35].mxu0  ;;  %v637_v44 = vpop.f32.mrb[35].mxu1 }
 0x121   :  { %745 = vst [vmem:[%s1527_s2 + $0x118] sm:$0xff] %v477_v43  ;;  %809 = vst [vmem:[%s1527_s2 + $0x318] sm:$0xff] %v637_v44 }
 0x125   :  { %v481_v45 = vpop.f32.mrb[36].mxu0  ;;  %v641_v46 = vpop.f32.mrb[36].mxu1 }
 0x126   :  { %746 = vst [vmem:[%s1527_s2 + $0x120] sm:$0xff] %v481_v45  ;;  %810 = vst [vmem:[%s1527_s2 + $0x320] sm:$0xff] %v641_v46  ;;  %v483_v47 = vpop.f32.mrb[37].mxu0  ;;  %v643_v48 = vpop.f32.mrb[37].mxu1 }
 0x127   :  { %747 = vst [vmem:[%s1527_s2 + $0x128] sm:$0xff] %v483_v47  ;;  %811 = vst [vmem:[%s1527_s2 + $0x328] sm:$0xff] %v643_v48  ;;  %v485_v49 = vpop.f32.mrb[38].mxu0  ;;  %v645_v50 = vpop.f32.mrb[38].mxu1 }
 0x128   :  { %748 = vst [vmem:[%s1527_s2 + $0x130] sm:$0xff] %v485_v49  ;;  %812 = vst [vmem:[%s1527_s2 + $0x330] sm:$0xff] %v645_v50  ;;  %v487_v51 = vpop.f32.mrb[39].mxu0  ;;  %v647_v52 = vpop.f32.mrb[39].mxu1 }
 0x129   :  { %749 = vst [vmem:[%s1527_s2 + $0x138] sm:$0xff] %v487_v51  ;;  %813 = vst [vmem:[%s1527_s2 + $0x338] sm:$0xff] %v647_v52 }
 0x12d   :  { %v491_v53 = vpop.f32.mrb[40].mxu0  ;;  %v651_v54 = vpop.f32.mrb[40].mxu1 }
 0x12e   :  { %750 = vst [vmem:[%s1527_s2 + $0x140] sm:$0xff] %v491_v53  ;;  %814 = vst [vmem:[%s1527_s2 + $0x340] sm:$0xff] %v651_v54  ;;  %v493_v55 = vpop.f32.mrb[41].mxu0  ;;  %v653_v56 = vpop.f32.mrb[41].mxu1 }
 0x12f   :  { %751 = vst [vmem:[%s1527_s2 + $0x148] sm:$0xff] %v493_v55  ;;  %815 = vst [vmem:[%s1527_s2 + $0x348] sm:$0xff] %v653_v56  ;;  %v495_v57 = vpop.f32.mrb[42].mxu0  ;;  %v655_v58 = vpop.f32.mrb[42].mxu1 }
 0x130   :  { %752 = vst [vmem:[%s1527_s2 + $0x150] sm:$0xff] %v495_v57  ;;  %816 = vst [vmem:[%s1527_s2 + $0x350] sm:$0xff] %v655_v58  ;;  %v497_v59 = vpop.f32.mrb[43].mxu0  ;;  %v657_v60 = vpop.f32.mrb[43].mxu1 }
 0x131   :  { %753 = vst [vmem:[%s1527_s2 + $0x158] sm:$0xff] %v497_v59  ;;  %817 = vst [vmem:[%s1527_s2 + $0x358] sm:$0xff] %v657_v60 }
 0x135   :  { %v501_v61 = vpop.f32.mrb[44].mxu0  ;;  %v661_v62 = vpop.f32.mrb[44].mxu1 }
 0x136   :  { %754 = vst [vmem:[%s1527_s2 + $0x160] sm:$0xff] %v501_v61  ;;  %818 = vst [vmem:[%s1527_s2 + $0x360] sm:$0xff] %v661_v62  ;;  %v503_v63 = vpop.f32.mrb[45].mxu0  ;;  %v663_v0 = vpop.f32.mrb[45].mxu1 }
 0x137   :  { %755 = vst [vmem:[%s1527_s2 + $0x168] sm:$0xff] %v503_v63  ;;  %819 = vst [vmem:[%s1527_s2 + $0x368] sm:$0xff] %v663_v0  ;;  %v505_v1 = vpop.f32.mrb[46].mxu0  ;;  %v665_v2 = vpop.f32.mrb[46].mxu1 }
 0x138   :  { %756 = vst [vmem:[%s1527_s2 + $0x170] sm:$0xff] %v505_v1  ;;  %820 = vst [vmem:[%s1527_s2 + $0x370] sm:$0xff] %v665_v2  ;;  %v507_v3 = vpop.f32.mrb[47].mxu0  ;;  %v667_v4 = vpop.f32.mrb[47].mxu1 }
 0x139   :  { %757 = vst [vmem:[%s1527_s2 + $0x178] sm:$0xff] %v507_v3  ;;  %821 = vst [vmem:[%s1527_s2 + $0x378] sm:$0xff] %v667_v4 }
 0x13d   :  { %v511_v5 = vpop.f32.mrb[48].mxu0  ;;  %v671_v6 = vpop.f32.mrb[48].mxu1 }
 0x13e   :  { %758 = vst [vmem:[%s1527_s2 + $0x180] sm:$0xff] %v511_v5  ;;  %822 = vst [vmem:[%s1527_s2 + $0x380] sm:$0xff] %v671_v6  ;;  %v513_v7 = vpop.f32.mrb[49].mxu0  ;;  %v673_v8 = vpop.f32.mrb[49].mxu1 }
 0x13f   :  { %759 = vst [vmem:[%s1527_s2 + $0x188] sm:$0xff] %v513_v7  ;;  %823 = vst [vmem:[%s1527_s2 + $0x388] sm:$0xff] %v673_v8  ;;  %v515_v9 = vpop.f32.mrb[50].mxu0  ;;  %v675_v10 = vpop.f32.mrb[50].mxu1 }
 0x140   :  { %760 = vst [vmem:[%s1527_s2 + $0x190] sm:$0xff] %v515_v9  ;;  %824 = vst [vmem:[%s1527_s2 + $0x390] sm:$0xff] %v675_v10  ;;  %v517_v11 = vpop.f32.mrb[51].mxu0  ;;  %v677_v12 = vpop.f32.mrb[51].mxu1 }
 0x141   :  { %761 = vst [vmem:[%s1527_s2 + $0x198] sm:$0xff] %v517_v11  ;;  %825 = vst [vmem:[%s1527_s2 + $0x398] sm:$0xff] %v677_v12 }
 0x145   :  { %v521_v13 = vpop.f32.mrb[52].mxu0  ;;  %v681_v14 = vpop.f32.mrb[52].mxu1 }
 0x146   :  { %762 = vst [vmem:[%s1527_s2 + $0x1a0] sm:$0xff] %v521_v13  ;;  %826 = vst [vmem:[%s1527_s2 + $0x3a0] sm:$0xff] %v681_v14  ;;  %v523_v15 = vpop.f32.mrb[53].mxu0  ;;  %v683_v16 = vpop.f32.mrb[53].mxu1 }
 0x147   :  { %763 = vst [vmem:[%s1527_s2 + $0x1a8] sm:$0xff] %v523_v15  ;;  %827 = vst [vmem:[%s1527_s2 + $0x3a8] sm:$0xff] %v683_v16  ;;  %v525_v17 = vpop.f32.mrb[54].mxu0  ;;  %v685_v18 = vpop.f32.mrb[54].mxu1 }
 0x148   :  { %764 = vst [vmem:[%s1527_s2 + $0x1b0] sm:$0xff] %v525_v17  ;;  %828 = vst [vmem:[%s1527_s2 + $0x3b0] sm:$0xff] %v685_v18  ;;  %v527_v19 = vpop.f32.mrb[55].mxu0  ;;  %v687_v20 = vpop.f32.mrb[55].mxu1 }
 0x149   :  { %765 = vst [vmem:[%s1527_s2 + $0x1b8] sm:$0xff] %v527_v19  ;;  %829 = vst [vmem:[%s1527_s2 + $0x3b8] sm:$0xff] %v687_v20 }
 0x14d   :  { %v531_v21 = vpop.f32.mrb[56].mxu0  ;;  %v691_v22 = vpop.f32.mrb[56].mxu1 }
 0x14e   :  { %766 = vst [vmem:[%s1527_s2 + $0x1c0] sm:$0xff] %v531_v21  ;;  %830 = vst [vmem:[%s1527_s2 + $0x3c0] sm:$0xff] %v691_v22  ;;  %v533_v23 = vpop.f32.mrb[57].mxu0  ;;  %v693_v24 = vpop.f32.mrb[57].mxu1 }
 0x14f   :  { %767 = vst [vmem:[%s1527_s2 + $0x1c8] sm:$0xff] %v533_v23  ;;  %831 = vst [vmem:[%s1527_s2 + $0x3c8] sm:$0xff] %v693_v24  ;;  %v535_v25 = vpop.f32.mrb[58].mxu0  ;;  %v695_v26 = vpop.f32.mrb[58].mxu1 }
 0x150   :  { %768 = vst [vmem:[%s1527_s2 + $0x1d0] sm:$0xff] %v535_v25  ;;  %832 = vst [vmem:[%s1527_s2 + $0x3d0] sm:$0xff] %v695_v26  ;;  %v537_v27 = vpop.f32.mrb[59].mxu0  ;;  %v697_v28 = vpop.f32.mrb[59].mxu1 }
 0x151   :  { %769 = vst [vmem:[%s1527_s2 + $0x1d8] sm:$0xff] %v537_v27  ;;  %833 = vst [vmem:[%s1527_s2 + $0x3d8] sm:$0xff] %v697_v28 }
 0x155   :  { %v541_v29 = vpop.f32.mrb[60].mxu0  ;;  %v701_v30 = vpop.f32.mrb[60].mxu1 }
 0x156   :  { %770 = vst [vmem:[%s1527_s2 + $0x1e0] sm:$0xff] %v541_v29  ;;  %834 = vst [vmem:[%s1527_s2 + $0x3e0] sm:$0xff] %v701_v30  ;;  %v543_v31 = vpop.f32.mrb[61].mxu0  ;;  %v703_v32 = vpop.f32.mrb[61].mxu1 }
 0x157   :  { %771 = vst [vmem:[%s1527_s2 + $0x1e8] sm:$0xff] %v543_v31  ;;  %835 = vst [vmem:[%s1527_s2 + $0x3e8] sm:$0xff] %v703_v32  ;;  %v545_v33 = vpop.f32.mrb[62].mxu0  ;;  %v705_v34 = vpop.f32.mrb[62].mxu1 }
 0x158   :  { %772 = vst [vmem:[%s1527_s2 + $0x1f0] sm:$0xff] %v545_v33  ;;  %836 = vst [vmem:[%s1527_s2 + $0x3f0] sm:$0xff] %v705_v34  ;;  %v547_v35 = vpop.f32.mrb[63].mxu0  ;;  %v707_v36 = vpop.f32.mrb[63].mxu1 }
 0x159   :  { %773 = vst [vmem:[%s1527_s2 + $0x1f8] sm:$0xff] %v547_v35  ;;  %837 = vst [vmem:[%s1527_s2 + $0x3f8] sm:$0xff] %v707_v36 }

// kernel: generator_forward.24
= control target key start
LH: loop header
LB: loop body
LE: loop exit
PB: predicated region body
PF: predicated region fallthrough
CT: control target
= control target key end

     0   :  { %v14_v0 = vlaneseq  ;;  %v266_v4 = vmov 1966171168   ;;  %v267_v13 = vmov 0.0   ;;  %s471_s0 = inlined_call_operand.vmem [shape: f32[64,512], index: 0, kind: input, shape index: {}]   ;;  %s472_s1 = inlined_call_operand.vmem [shape: f32[1,512], index: 1, kind: output, shape index: {0}]   ;;  %s473_s2 = inlined_call_operand.vmem [shape: f32[1,512], index: 2, kind: output, shape index: {1}]  }
   0x1   :  { %v20_v1 = vld [vmem:[%s471_s0] sm:$0xff]  ;;  %v21_v2 = vld [vmem:[%s471_s0 + $0x8] sm:$0xff]  ;;  %v22_v3 = vld [vmem:[%s471_s0 + $0x10] sm:$0xff]  ;;  %v112_v5 = vunpack.c.l.s4 %v266_v4 }
   0x2   :  { %vm292_vm0 = vcmp.lt.s32.totalorder %v14_v0, 512  ;;  %v23_v7 = vld [vmem:[%s471_s0 + $0x18] sm:$0xff]  ;;  %v24_v8 = vld [vmem:[%s471_s0 + $0x20] sm:$0xff]  ;;  %v25_v9 = vld [vmem:[%s471_s0 + $0x28] sm:$0xff]  ;;  %v115_v10 = vshrl.u32 %v14_v0, 7  ;;  %v305_v11 = vmul.f32 %v20_v1, %v20_v1  ;;  %v307_v12 = vmul.f32 %v21_v2, %v21_v2 }
   0x3   :  { %18 = vst.msk [vmem:[%s472_s1] sm:$0xf] %vm292_vm0, %v267_v13  ;;  %v26_v14 = vld [vmem:[%s471_s0 + $0x30] sm:$0xff]  ;;  %v27_v15 = vld [vmem:[%s471_s0 + $0x38] sm:$0xff]  ;;  %v53_v16 = vadd.f32 %v24_v8, %v20_v1  ;;  %v66_v17 = vadd.f32 %v25_v9, %v21_v2  ;;  %v113_v18 = vunpack.c.0.s8 %v112_v5  ;;  %19 = vst.msk [vmem:[%s473_s2] sm:$0xf] %vm292_vm0, %v267_v13  ;;  %v325_v19 = vmul.f32 %v22_v3, %v22_v3 }
   0x4   :  { %v28_v20 = vld [vmem:[%s471_s0 + $0x40] sm:$0xff]  ;;  %v29_v21 = vld [vmem:[%s471_s0 + $0x48] sm:$0xff]  ;;  %v79_v22 = vadd.f32 %v26_v14, %v22_v3  ;;  %v92_v23 = vadd.f32 %v27_v15, %v23_v7  ;;  %v333_v24 = vmul.f32 %v23_v7, %v23_v7  ;;  %v335_v25 = vmul.f32 %v24_v8, %v24_v8  ;;  %v30_v26 = vld [vmem:[%s471_s0 + $0x50] sm:$0xff] }
   0x5   :  { %v31_v27 = vld [vmem:[%s471_s0 + $0x58] sm:$0xff]  ;;  %v54_v28 = vadd.f32 %v53_v16, %v28_v20  ;;  %v67_v29 = vadd.f32 %v66_v17, %v29_v21  ;;  %v343_v30 = vsub.s32 %v113_v18, %v115_v10  ;;  %v345_v31 = vmul.f32 %v25_v9, %v25_v9  ;;  %v32_v32 = vld [vmem:[%s471_s0 + $0x60] sm:$0xff]  ;;  %v33_v33 = vld [vmem:[%s471_s0 + $0x68] sm:$0xff] }
   0x6   :  { %v80_v34 = vadd.f32 %v79_v22, %v30_v26  ;;  %v93_v35 = vadd.f32 %v92_v23, %v31_v27  ;;  %v353_v36 = vmul.f32 %v26_v14, %v26_v14  ;;  %v355_v37 = vmul.f32 %v27_v15, %v27_v15  ;;  %v34_v38 = vld [vmem:[%s471_s0 + $0x70] sm:$0xff]  ;;  %v35_v39 = vld [vmem:[%s471_s0 + $0x78] sm:$0xff]  ;;  %v36_v44 = vld [vmem:[%s471_s0 + $0x80] sm:$0xff] }
   0x7   :  { %v55_v40 = vadd.f32 %v54_v28, %v32_v32  ;;  %v68_v41 = vadd.f32 %v67_v29, %v33_v33  ;;  %v363_v42 = vmul.f32 %v28_v20, %v28_v20  ;;  %v365_v43 = vmul.f32 %v29_v21, %v29_v21  ;;  %v37_v45 = vld [vmem:[%s471_s0 + $0x88] sm:$0xff]  ;;  %v38_v50 = vld [vmem:[%s471_s0 + $0x90] sm:$0xff]  ;;  %v39_v51 = vld [vmem:[%s471_s0 + $0x98] sm:$0xff] }
   0x8   :  { %v81_v46 = vadd.f32 %v80_v34, %v34_v38  ;;  %v94_v47 = vadd.f32 %v93_v35, %v35_v39  ;;  %v373_v48 = vmul.f32 %v30_v26, %v30_v26  ;;  %v375_v49 = vmul.f32 %v31_v27, %v31_v27  ;;  %v40_v56 = vld [vmem:[%s471_s0 + $0xa0] sm:$0xff]  ;;  %v41_v57 = vld [vmem:[%s471_s0 + $0xa8] sm:$0xff]  ;;  %v42_v62 = vld [vmem:[%s471_s0 + $0xb0] sm:$0xff] }
   0x9   :  { %v56_v52 = vadd.f32 %v55_v40, %v36_v44  ;;  %v69_v53 = vadd.f32 %v68_v41, %v37_v45  ;;  %v383_v54 = vmul.f32 %v32_v32, %v32_v32  ;;  %v385_v55 = vmul.f32 %v33_v33, %v33_v33  ;;  %v43_v63 = vld [vmem:[%s471_s0 + $0xb8] sm:$0xff]  ;;  %v44_v4 = vld [vmem:[%s471_s0 + $0xc0] sm:$0xff]  ;;  %v45_v5 = vld [vmem:[%s471_s0 + $0xc8] sm:$0xff] }
   0xa   :  { %v82_v58 = vadd.f32 %v81_v46, %v38_v50  ;;  %v95_v59 = vadd.f32 %v94_v47, %v39_v51  ;;  %v393_v60 = vmul.f32 %v34_v38, %v34_v38  ;;  %v395_v61 = vmul.f32 %v35_v39, %v35_v39  ;;  %v46_v13 = vld [vmem:[%s471_s0 + $0xd0] sm:$0xff]  ;;  %v47_v14 = vld [vmem:[%s471_s0 + $0xd8] sm:$0xff]  ;;  %v48_v20 = vld [vmem:[%s471_s0 + $0xe0] sm:$0xff] }
   0xb   :  { %v57_v0 = vadd.f32 %v56_v52, %v40_v56  ;;  %v70_v1 = vadd.f32 %v69_v53, %v41_v57  ;;  %v403_v2 = vmul.f32 %v36_v44, %v36_v44  ;;  %v405_v3 = vmul.f32 %v37_v45, %v37_v45  ;;  %v49_v21 = vld [vmem:[%s471_s0 + $0xe8] sm:$0xff]  ;;  %v50_v28 = vld [vmem:[%s471_s0 + $0xf0] sm:$0xff]  ;;  %v51_v29 = vld [vmem:[%s471_s0 + $0xf8] sm:$0xff] }
   0xc   :  { %v83_v7 = vadd.f32 %v82_v58, %v42_v62  ;;  %v96_v8 = vadd.f32 %v95_v59, %v43_v63  ;;  %v159_v9 = vmul.f32 %v38_v50, %v38_v50  ;;  %v160_v10 = vmul.f32 %v39_v51, %v39_v51 }
   0xd   :  { %v58_v15 = vadd.f32 %v57_v0, %v44_v4  ;;  %v71_v16 = vadd.f32 %v70_v1, %v45_v5  ;;  %v161_v17 = vmul.f32 %v40_v56, %v40_v56  ;;  %v162_v18 = vmul.f32 %v41_v57, %v41_v57 }
   0xe   :  { %v84_v22 = vadd.f32 %v83_v7, %v46_v13  ;;  %v97_v23 = vadd.f32 %v96_v8, %v47_v14  ;;  %v163_v26 = vmul.f32 %v42_v62, %v42_v62  ;;  %v164_v27 = vmul.f32 %v43_v63, %v43_v63 }
   0xf   :  { %v59_v32 = vadd.f32 %v58_v15, %v48_v20  ;;  %v72_v33 = vadd.f32 %v71_v16, %v49_v21  ;;  %v165_v34 = vmul.f32 %v44_v4, %v44_v4  ;;  %v166_v35 = vmul.f32 %v45_v5, %v45_v5 }
  0x10   :  { %v85_v38 = vadd.f32 %v84_v22, %v50_v28  ;;  %v98_v39 = vadd.f32 %v97_v23, %v51_v29  ;;  %v167_v40 = vmul.f32 %v46_v13, %v46_v13  ;;  %v168_v41 = vmul.f32 %v47_v14, %v47_v14 }
  0x11   :  { %v60_v44 = vrot.slane %v59_v32, 4  ;;  %v73_v45 = vrot.slane %v72_v33, 4  ;;  %v169_v46 = vmul.f32 %v48_v20, %v48_v20  ;;  %v170_v47 = vmul.f32 %v49_v21, %v49_v21 }
  0x12   :  { %v86_v50 = vrot.slane %v85_v38, 4  ;;  %v99_v51 = vrot.slane %v98_v39, 4  ;;  %v171_v52 = vmul.f32 %v50_v28, %v50_v28  ;;  %v172_v53 = vmul.f32 %v51_v29, %v51_v29 }
  0x13   :  { %v61_v56 = vadd.f32 %v60_v44, %v59_v32  ;;  %v74_v57 = vadd.f32 %v73_v45, %v72_v33  ;;  %v173_v58 = vadd.f32 %v335_v25, %v305_v11  ;;  %v186_v59 = vadd.f32 %v345_v31, %v307_v12 }
  0x14   :  { %v87_v62 = vadd.f32 %v86_v50, %v85_v38  ;;  %v100_v63 = vadd.f32 %v99_v51, %v98_v39  ;;  %v199_v0 = vadd.f32 %v353_v36, %v325_v19  ;;  %v212_v1 = vadd.f32 %v355_v37, %v333_v24 }
  0x15   :  { %v62_v4 = vrot.slane %v61_v56, 2  ;;  %v75_v5 = vrot.slane %v74_v57, 2  ;;  %v174_v7 = vadd.f32 %v173_v58, %v363_v42  ;;  %v187_v8 = vadd.f32 %v186_v59, %v365_v43 }
  0x16   :  { %v88_v13 = vrot.slane %v87_v62, 2  ;;  %v101_v14 = vrot.slane %v100_v63, 2  ;;  %v200_v11 = vadd.f32 %v199_v0, %v373_v48  ;;  %v213_v12 = vadd.f32 %v212_v1, %v375_v49 }
  0x17   :  { %v63_v25 = vadd.f32 %v62_v4, %v61_v56  ;;  %v76_v31 = vadd.f32 %v75_v5, %v74_v57  ;;  %v175_v15 = vadd.f32 %v174_v7, %v383_v54  ;;  %v188_v19 = vadd.f32 %v187_v8, %v385_v55 }
  0x18   :  { %v89_v36 = vadd.f32 %v88_v13, %v87_v62  ;;  %v102_v24 = vadd.f32 %v101_v14, %v100_v63  ;;  %v201_v37 = vadd.f32 %v200_v11, %v393_v60  ;;  %v214_v42 = vadd.f32 %v213_v12, %v395_v61 }
  0x19   :  { %v64_v16 = vrot.slane %v63_v25, 1  ;;  %v77_v43 = vrot.slane %v76_v31, 1  ;;  %v176_v20 = vadd.f32 %v175_v15, %v403_v2  ;;  %v189_v48 = vadd.f32 %v188_v19, %v405_v3 }
  0x1a   :  { %v90_v21 = vrot.slane %v89_v36, 1  ;;  %v103_v49 = vrot.slane %v102_v24, 1  ;;  %v202_v22 = vadd.f32 %v201_v37, %v159_v9  ;;  %v215_v23 = vadd.f32 %v214_v42, %v160_v10  ;;  %v140_v42 = vld [vmem:[%s473_s2] sm:$0xf] }
  0x1b   :  { %v65_v28 = vadd.f32 %v64_v16, %v63_v25  ;;  %v78_v54 = vadd.f32 %v77_v43, %v76_v31  ;;  %v177_v29 = vadd.f32 %v176_v20, %v161_v17  ;;  %v190_v55 = vadd.f32 %v189_v48, %v162_v18 }
  0x1c   :  { %v91_v32 = vadd.f32 %v90_v21, %v89_v36  ;;  %v104_v33 = vadd.f32 %v103_v49, %v102_v24  ;;  %v203_v38 = vadd.f32 %v202_v22, %v163_v26  ;;  %v216_v60 = vadd.f32 %v215_v23, %v164_v27  ;;  %v52_v27 = vld [vmem:[%s472_s1] sm:$0xf] }
  0x1d   :  { %v109_v39 = vcombine.low %v65_v28, %v78_v54  ;;  %v178_v61 = vadd.f32 %v177_v29, %v165_v34  ;;  %v191_v44 = vadd.f32 %v190_v55, %v166_v35 }
  0x1e   :  { %v110_v45 = vcombine.low %v91_v32, %v104_v33  ;;  %v204_v50 = vadd.f32 %v203_v38, %v167_v40  ;;  %v217_v2 = vadd.f32 %v216_v60, %v168_v41 }
  0x1f   :  { %v117_v3 = vrot.slane %v109_v39, %v343_v30  ;;  %v179_v51 = vadd.f32 %v178_v61, %v169_v46  ;;  %v192_v56 = vadd.f32 %v191_v44, %v170_v47 }
  0x20   :  { %v124_v9 = vrot.slane %v110_v45, %v343_v30  ;;  %v205_v10 = vadd.f32 %v204_v50, %v171_v52  ;;  %v218_v57 = vadd.f32 %v217_v2, %v172_v53 }
  0x21   :  { %v180_v17 = vrot.slane %v179_v51, 4  ;;  %v193_v18 = vrot.slane %v192_v56, 4 }
  0x22   :  { %v125_v58 = vcombine.low %v117_v3, %v124_v9  ;;  %v206_v59 = vrot.slane %v205_v10, 4  ;;  %v219_v26 = vrot.slane %v218_v57, 4 }
  0x23   :  { %v181_v34 = vadd.f32 %v180_v17, %v179_v51  ;;  %v194_v35 = vadd.f32 %v193_v18, %v192_v56 }
  0x24   :  { %v132_v40 = vrot.slane %v125_v58, %v343_v30  ;;  %v207_v41 = vadd.f32 %v206_v59, %v205_v10  ;;  %v220_v46 = vadd.f32 %v219_v26, %v218_v57 }
  0x25   :  { %v182_v47 = vrot.slane %v181_v34, 2  ;;  %v195_v62 = vrot.slane %v194_v35, 2 }
  0x26   :  { %v134_v63 = vadd.f32 %v132_v40, %v52_v27  ;;  %v208_v52 = vrot.slane %v207_v41, 2  ;;  %v221_v53 = vrot.slane %v220_v46, 2 }
  0x27   :  { %v183_v0 = vadd.f32 %v182_v47, %v181_v34  ;;  %v196_v1 = vadd.f32 %v195_v62, %v194_v35 }
  0x28   :  { %139 = vst.msk [vmem:[%s472_s1] sm:$0xf] %vm292_vm0, %v134_v63  ;;  %v209_v4 = vadd.f32 %v208_v52, %v207_v41  ;;  %v222_v5 = vadd.f32 %v221_v53, %v220_v46 }
  0x29   :  { %v184_v7 = vrot.slane %v183_v0, 1  ;;  %v197_v8 = vrot.slane %v196_v1, 1 }
  0x2a   :  { %v210_v13 = vrot.slane %v209_v4, 1  ;;  %v223_v14 = vrot.slane %v222_v5, 1 }
  0x2b   :  { %v185_v11 = vadd.f32 %v184_v7, %v183_v0  ;;  %v198_v12 = vadd.f32 %v197_v8, %v196_v1 }
  0x2c   :  { %v211_v25 = vadd.f32 %v210_v13, %v209_v4  ;;  %v224_v31 = vadd.f32 %v223_v14, %v222_v5 }
  0x2d   :  { %v229_v15 = vcombine.low %v185_v11, %v198_v12 }
  0x2e   :  { %v230_v19 = vcombine.low %v211_v25, %v224_v31 }
  0x2f   :  { %v237_v36 = vrot.slane %v229_v15, %v343_v30 }
  0x30   :  { %v244_v24 = vrot.slane %v230_v19, %v343_v30 }
  0x32   :  { %v245_v37 = vcombine.low %v237_v36, %v244_v24 }
  0x34   :  { %v252_v16 = vrot.slane %v245_v37, %v343_v30 }
  0x36   :  { %v254_v43 = vadd.f32 %v252_v16, %v140_v42 }
  0x38   :  { %255 = vst.msk [vmem:[%s473_s2] sm:$0xf] %vm292_vm0, %v254_v43 }

// kernel: tile.78
= control target key start
LH: loop header
LB: loop body
LE: loop exit
PB: predicated region body
PF: predicated region fallthrough
CT: control target
= control target key end

     0   :  { %s40_s0 = inlined_call_operand.vmem [shape: f32[16], index: 0, kind: input, shape index: {}]   ;;  %s41_s1 = inlined_call_operand.vmem [shape: f32[32,16], index: 1, kind: output, shape index: {}]  }
   0x1   :  { %v4_v0 = vld [vmem:[%s40_s0] ss:$0 sm:$0xff] }
   0x2   :  { %5 = vst [vmem:[%s41_s1] sm:$0xff] %v4_v0  ;;  %12 = vst [vmem:[%s41_s1 + $0x8] sm:$0xff] %v4_v0 }
   0x3   :  { %13 = vst [vmem:[%s41_s1 + $0x10] sm:$0xff] %v4_v0  ;;  %14 = vst [vmem:[%s41_s1 + $0x18] sm:$0xff] %v4_v0 }

// kernel: tile.79
= control target key start
LH: loop header
LB: loop body
LE: loop exit
PB: predicated region body
PF: predicated region fallthrough
CT: control target
= control target key end

     0   :  { %s89_s8 = smov 112   ;;  %s90_s11 = smov 80   ;;  %vm3_vm0 = vcmask 130048   ;;  %vm9_vm1 = vcmask 1048448   ;;  %vm15_vm2 = vcmask 917248   ;;  %vm21_vm3 = vcmask 786048   ;;  %s142_s0 = inlined_call_operand.vmem [shape: f32[32,16], index: 0, kind: input, shape index: {}]   ;;  %s143_s1 = inlined_call_operand.vmem [shape: f32[1,512], index: 1, kind: output, shape index: {}]  }
   0x1   :  { %v72_v0 = vld [vmem:[%s142_s0 + $0x7] ss:$8 sm:$0xf]   ;;  %v74_v1 = vld [vmem:[%s142_s0 + $0x5] ss:$8 sm:$0xf]  }
   0x2   :  { %7 = vrot.lane.b32.xlu0 %v72_v0, %s89_s8  ;;  %19 = vrot.lane.b32.xlu1 %v74_v1, %s90_s11  ;;  %v73_v2 = vld [vmem:[%s142_s0 + $0x6] ss:$8 sm:$0xf]   ;;  %v75_v3 = vld [vmem:[%s142_s0 + $0x4] ss:$8 sm:$0xf]  }
   0x3   :  { %s91_s16 = smov 96   ;;  %v2_v4 = vld [vmem:[%s142_s0] ss:$8 sm:$0xf]   ;;  %s92_s19 = smov 64   ;;  %vm27_vm4 = vcmask 654848  }
   0x4   :  { %v76_v5 = vld [vmem:[%s142_s0 + $0x3] ss:$8 sm:$0xf]   ;;  %4 = vst.msk [vmem:[#allocation0] ss:$8 sm:$0xf] %vm3_vm0, %v2_v4  }
   0x5   :  { %v77_v6 = vld [vmem:[%s142_s0 + $0x2] ss:$8 sm:$0xf]   ;;  %s93_s24 = smov 48   ;;  %s94_s25 = smov 32   ;;  %vm33_vm5 = vcmask 523648  }
   0x6   :  { %13 = vrot.lane.b32.xlu0 %v73_v2, %s91_s16  ;;  %25 = vrot.lane.b32.xlu1 %v75_v3, %s92_s19  ;;  %v78_v7 = vld [vmem:[%s142_s0 + $0x1] ss:$8 sm:$0xf]   ;;  %s95_s0 = smov 16   ;;  %vm39_vm6 = vcmask 392448   ;;  %vm45_vm7 = vcmask 261248  }
   0xa   :  { %31 = vrot.lane.b32.xlu0 %v76_v5, %s93_s24  ;;  %37 = vrot.lane.b32.xlu1 %v77_v6, %s94_s25 }
   0xe   :  { %43 = vrot.lane.b32.xlu0 %v78_v7, %s95_s0 }
  0x74   :  { %v8_v8 = vpop.permute.xlu0 %7   ;;  %v20_v9 = vpop.permute.xlu1 %19  }
  0x75   :  { %10 = vst.msk [vmem:[#allocation0] ss:$8 sm:$0xf] %vm9_vm1, %v8_v8  }
  0x78   :  { %v14_v10 = vpop.permute.xlu0 %13   ;;  %v26_v11 = vpop.permute.xlu1 %25  }
  0x79   :  { %16 = vst.msk [vmem:[#allocation0] ss:$8 sm:$0xf] %vm15_vm2, %v14_v10  }
  0x7a   :  { %22 = vst.msk [vmem:[#allocation0] ss:$8 sm:$0xf] %vm21_vm3, %v20_v9  }
  0x7b   :  { %28 = vst.msk [vmem:[#allocation0] ss:$8 sm:$0xf] %vm27_vm4, %v26_v11  }
  0x7c   :  { %v32_v12 = vpop.permute.xlu0 %31   ;;  %v38_v13 = vpop.permute.xlu1 %37  }
  0x7d   :  { %34 = vst.msk [vmem:[#allocation0] ss:$8 sm:$0xf] %vm33_vm5, %v32_v12  }
  0x7e   :  { %40 = vst.msk [vmem:[#allocation0] ss:$8 sm:$0xf] %vm39_vm6, %v38_v13  }
  0x80   :  { %v44_v14 = vpop.permute.xlu0 %43  }
  0x81   :  { %46 = vst.msk [vmem:[#allocation0] ss:$8 sm:$0xf] %vm45_vm7, %v44_v14  }
  0x88   :  { %v50_v15 = vld [vmem:[#allocation0] sm:$0x1]  ;;  %v54_v16 = vld [vmem:[#allocation0 + $0x8] sm:$0x1]  ;;  %v59_v17 = vld [vmem:[#allocation0 + $0x10] sm:$0x1] }
  0x89   :  { %52 = vst [vmem:[%s143_s1] sm:$0x1] %v50_v15  ;;  %79 = vst [vmem:[%s143_s1 + $0x1] sm:$0x1] %v54_v16  ;;  %v65_v18 = vld [vmem:[#allocation0 + $0x18] sm:$0x1] }
  0x8a   :  { %80 = vst [vmem:[%s143_s1 + $0x2] sm:$0x1] %v59_v17  ;;  %81 = vst [vmem:[%s143_s1 + $0x3] sm:$0x1] %v65_v18 }

// kernel: generator_forward.25
= control target key start
LH: loop header
LB: loop body
LE: loop exit
PB: predicated region body
PF: predicated region fallthrough
CT: control target
= control target key end

     0   :  { %v48_v0 = vlaneseq  ;;  %s584_s1 = inlined_call_operand.vmem [shape: f32[1,512], index: 1, kind: input, shape index: {}]   ;;  %s585_s2 = inlined_call_operand.vmem [shape: f32[1,512], index: 2, kind: input, shape index: {}]   ;;  %s586_s0 = inlined_call_operand.vmem [shape: f32[64,512], index: 0, kind: input, shape index: {}]   ;;  %s587_s3 = inlined_call_operand.vmem [shape: bf16[64,512], index: 3, kind: output, shape index: {}]  }
   0x1   :  { %v46_v2 = vld [vmem:[%s584_s1] sm:$0xf]  ;;  %v15_v5 = vld [vmem:[%s586_s0 + $0x8] sm:$0xff]  ;;  %v16_v10 = vld [vmem:[%s586_s0 + $0x10] sm:$0xff] }
   0x2   :  { %v49_v1 = vshrl.u32 %v48_v0, 7  ;;  %v100_v3 = vld [vmem:[%s585_s2] sm:$0xf]  ;;  %v19_v12 = vld [vmem:[%s586_s0 + $0x28] sm:$0xff]  ;;  %v17_v17 = vld [vmem:[%s586_s0 + $0x18] sm:$0xff] }
   0x3   :  { %v14_v4 = vld [vmem:[%s586_s0] sm:$0xff]  ;;  %v20_v18 = vld [vmem:[%s586_s0 + $0x30] sm:$0xff]  ;;  %v21_v19 = vld [vmem:[%s586_s0 + $0x38] sm:$0xff] }
   0x4   :  { %v50_v6 = vsub.s32 0, %v49_v1  ;;  %v54_v7 = vsub.s32 1, %v49_v1  ;;  %v58_v8 = vsub.s32 2, %v49_v1  ;;  %v62_v9 = vsub.s32 3, %v49_v1  ;;  %v18_v11 = vld [vmem:[%s586_s0 + $0x20] sm:$0xff]  ;;  %v23_v41 = vld [vmem:[%s586_s0 + $0x48] sm:$0xff] }
   0x5   :  { %v22_v40 = vld [vmem:[%s586_s0 + $0x40] sm:$0xff]  ;;  %v24_v46 = vld [vmem:[%s586_s0 + $0x50] sm:$0xff]  ;;  %v25_v47 = vld [vmem:[%s586_s0 + $0x58] sm:$0xff] }
   0x6   :  { %v375_v13 = vrot.slane %v46_v2, %v50_v6  ;;  %v377_v14 = vrot.slane %v46_v2, %v54_v7  ;;  %v379_v15 = vrot.slane %v100_v3, %v50_v6  ;;  %v381_v16 = vrot.slane %v100_v3, %v54_v7  ;;  %v26_v52 = vld [vmem:[%s586_s0 + $0x60] sm:$0xff]  ;;  %v27_v53 = vld [vmem:[%s586_s0 + $0x68] sm:$0xff]  ;;  %v28_v58 = vld [vmem:[%s586_s0 + $0x70] sm:$0xff] }
   0x7   :  { %v392_v20 = vrot.slane %v46_v2, %v58_v8  ;;  %v394_v21 = vrot.slane %v46_v2, %v62_v9  ;;  %v396_v22 = vrot.slane %v100_v3, %v58_v8  ;;  %v398_v23 = vrot.slane %v100_v3, %v62_v9  ;;  %v29_v59 = vld [vmem:[%s586_s0 + $0x78] sm:$0xff]  ;;  %v30_v8 = vld [vmem:[%s586_s0 + $0x80] sm:$0xff] }
   0x8   :  { %v68_v24 = vmul.f32 %v375_v13, %v14_v4  ;;  %v69_v25 = vmul.f32 %v377_v14, %v15_v5  ;;  %v72_v26 = vmul.f32 %v375_v13, %v18_v11  ;;  %v73_v27 = vmul.f32 %v377_v14, %v19_v12 }
   0x9   :  { %v70_v28 = vmul.f32 %v392_v20, %v16_v10  ;;  %v71_v29 = vmul.f32 %v394_v21, %v17_v17  ;;  %v74_v30 = vmul.f32 %v392_v20, %v20_v18  ;;  %v75_v31 = vmul.f32 %v394_v21, %v21_v19  ;;  %v31_v17 = vld [vmem:[%s586_s0 + $0x88] sm:$0xff] }
   0xa   :  { %v122_v32 = vadd.f32 %v379_v15, %v68_v24  ;;  %v123_v33 = vadd.f32 %v381_v16, %v69_v25  ;;  %v126_v34 = vadd.f32 %v379_v15, %v72_v26  ;;  %v127_v35 = vadd.f32 %v381_v16, %v73_v27  ;;  %v32_v26 = vld [vmem:[%s586_s0 + $0x90] sm:$0xff]  ;;  %v33_v27 = vld [vmem:[%s586_s0 + $0x98] sm:$0xff] }
   0xb   :  { %v124_v36 = vadd.f32 %v396_v22, %v70_v28  ;;  %v125_v37 = vadd.f32 %v398_v23, %v71_v29  ;;  %v128_v38 = vadd.f32 %v396_v22, %v74_v30  ;;  %v129_v39 = vadd.f32 %v398_v23, %v75_v31 }
   0xc   :  { %v154_v42 = vmax.f32 %v122_v32, 0.0  ;;  %v155_v43 = vmax.f32 %v123_v33, 0.0  ;;  %v158_v44 = vmax.f32 %v126_v34, 0.0  ;;  %v159_v45 = vmax.f32 %v127_v35, 0.0  ;;  %v34_v32 = vld [vmem:[%s586_s0 + $0xa0] sm:$0xff]  ;;  %v35_v33 = vld [vmem:[%s586_s0 + $0xa8] sm:$0xff] }
   0xd   :  { %v156_v48 = vmax.f32 %v124_v36, 0.0  ;;  %v157_v49 = vmax.f32 %v125_v37, 0.0  ;;  %v160_v50 = vmax.f32 %v128_v38, 0.0  ;;  %v161_v51 = vmax.f32 %v129_v39, 0.0  ;;  %v36_v38 = vld [vmem:[%s586_s0 + $0xb0] sm:$0xff] }
   0xe   :  { %v318_v54 = vpack.c.bf16 %v155_v43, %v154_v42  ;;  %v320_v55 = vpack.c.bf16 %v159_v45, %v158_v44  ;;  %v76_v56 = vmul.f32 %v375_v13, %v22_v40  ;;  %v77_v57 = vmul.f32 %v377_v14, %v23_v41  ;;  %v37_v43 = vld [vmem:[%s586_s0 + $0xb8] sm:$0xff] }
   0xf   :  { %v319_v60 = vpack.c.bf16 %v157_v49, %v156_v48  ;;  %v321_v61 = vpack.c.bf16 %v161_v51, %v160_v50  ;;  %v78_v62 = vmul.f32 %v392_v20, %v24_v46  ;;  %v79_v63 = vmul.f32 %v394_v21, %v25_v47  ;;  %v38_v48 = vld [vmem:[%s586_s0 + $0xc0] sm:$0xff] }
  0x10   :  { %282 = vst [vmem:[%s587_s3] sm:$0xff] %v318_v54  ;;  %284 = vst [vmem:[%s587_s3 + $0x10] sm:$0xff] %v320_v55  ;;  %v130_v0 = vadd.f32 %v379_v15, %v76_v56  ;;  %v131_v1 = vadd.f32 %v381_v16, %v77_v57  ;;  %v80_v2 = vmul.f32 %v375_v13, %v26_v52  ;;  %v39_v57 = vld [vmem:[%s586_s0 + $0xc8] sm:$0xff] }
  0x11   :  { %v81_v3 = vmul.f32 %v377_v14, %v27_v53  ;;  %283 = vst [vmem:[%s587_s3 + $0x8] sm:$0xff] %v319_v60  ;;  %285 = vst [vmem:[%s587_s3 + $0x18] sm:$0xff] %v321_v61  ;;  %v132_v4 = vadd.f32 %v396_v22, %v78_v62  ;;  %v133_v5 = vadd.f32 %v398_v23, %v79_v63  ;;  %v40_v62 = vld [vmem:[%s586_s0 + $0xd0] sm:$0xff]  ;;  %v41_v63 = vld [vmem:[%s586_s0 + $0xd8] sm:$0xff] }
  0x12   :  { %v82_v6 = vmul.f32 %v392_v20, %v28_v58  ;;  %v83_v7 = vmul.f32 %v394_v21, %v29_v59  ;;  %v162_v9 = vmax.f32 %v130_v0, 0.0  ;;  %v163_v10 = vmax.f32 %v131_v1, 0.0 }
  0x13   :  { %v134_v11 = vadd.f32 %v379_v15, %v80_v2  ;;  %v135_v12 = vadd.f32 %v381_v16, %v81_v3  ;;  %v164_v18 = vmax.f32 %v132_v4, 0.0  ;;  %v165_v19 = vmax.f32 %v133_v5, 0.0  ;;  %v42_v4 = vld [vmem:[%s586_s0 + $0xe0] sm:$0xff]  ;;  %v43_v5 = vld [vmem:[%s586_s0 + $0xe8] sm:$0xff] }
  0x14   :  { %v136_v24 = vadd.f32 %v396_v22, %v82_v6  ;;  %v137_v25 = vadd.f32 %v398_v23, %v83_v7  ;;  %v322_v28 = vpack.c.bf16 %v163_v10, %v162_v9  ;;  %v84_v31 = vmul.f32 %v375_v13, %v30_v8  ;;  %v44_v10 = vld [vmem:[%s586_s0 + $0xf0] sm:$0xff] }
  0x15   :  { %v166_v29 = vmax.f32 %v134_v11, 0.0  ;;  %v167_v30 = vmax.f32 %v135_v12, 0.0  ;;  %v323_v34 = vpack.c.bf16 %v165_v19, %v164_v18  ;;  %v85_v37 = vmul.f32 %v377_v14, %v31_v17  ;;  %v45_v19 = vld [vmem:[%s586_s0 + $0xf8] sm:$0xff] }
  0x16   :  { %v168_v35 = vmax.f32 %v136_v24, 0.0  ;;  %v169_v36 = vmax.f32 %v137_v25, 0.0  ;;  %286 = vst [vmem:[%s587_s3 + $0x20] sm:$0xff] %v322_v28  ;;  %v138_v40 = vadd.f32 %v379_v15, %v84_v31  ;;  %v86_v41 = vmul.f32 %v392_v20, %v32_v26 }
  0x17   :  { %v324_v39 = vpack.c.bf16 %v167_v30, %v166_v29  ;;  %v87_v42 = vmul.f32 %v394_v21, %v33_v27  ;;  %287 = vst [vmem:[%s587_s3 + $0x28] sm:$0xff] %v323_v34  ;;  %v139_v45 = vadd.f32 %v381_v16, %v85_v37  ;;  %v88_v46 = vmul.f32 %v375_v13, %v34_v32 }
  0x18   :  { %v325_v44 = vpack.c.bf16 %v169_v36, %v168_v35  ;;  %v89_v47 = vmul.f32 %v377_v14, %v35_v33  ;;  %v170_v49 = vmax.f32 %v138_v40, 0.0  ;;  %v140_v50 = vadd.f32 %v396_v22, %v86_v41 }
  0x19   :  { %288 = vst [vmem:[%s587_s3 + $0x30] sm:$0xff] %v324_v39  ;;  %v141_v51 = vadd.f32 %v398_v23, %v87_v42  ;;  %v90_v52 = vmul.f32 %v392_v20, %v36_v38  ;;  %v171_v53 = vmax.f32 %v139_v45, 0.0  ;;  %v142_v54 = vadd.f32 %v379_v15, %v88_v46 }
  0x1a   :  { %289 = vst [vmem:[%s587_s3 + $0x38] sm:$0xff] %v325_v44  ;;  %v143_v55 = vadd.f32 %v381_v16, %v89_v47  ;;  %v91_v56 = vmul.f32 %v394_v21, %v37_v43  ;;  %v172_v58 = vmax.f32 %v140_v50, 0.0  ;;  %v92_v61 = vmul.f32 %v375_v13, %v38_v48 }
  0x1b   :  { %v173_v59 = vmax.f32 %v141_v51, 0.0  ;;  %v144_v60 = vadd.f32 %v396_v22, %v90_v52  ;;  %v326_v0 = vpack.c.bf16 %v171_v53, %v170_v49  ;;  %v174_v1 = vmax.f32 %v142_v54, 0.0 }
  0x1c   :  { %v175_v2 = vmax.f32 %v143_v55, 0.0  ;;  %v145_v3 = vadd.f32 %v398_v23, %v91_v56  ;;  %v93_v8 = vmul.f32 %v377_v14, %v39_v57  ;;  %v146_v9 = vadd.f32 %v379_v15, %v92_v61 }
  0x1d   :  { %v327_v6 = vpack.c.bf16 %v173_v59, %v172_v58  ;;  %v176_v7 = vmax.f32 %v144_v60, 0.0  ;;  %290 = vst [vmem:[%s587_s3 + $0x40] sm:$0xff] %v326_v0  ;;  %v94_v17 = vmul.f32 %v392_v20, %v40_v62  ;;  %v95_v18 = vmul.f32 %v394_v21, %v41_v63 }
  0x1e   :  { %v328_v11 = vpack.c.bf16 %v175_v2, %v174_v1  ;;  %v177_v12 = vmax.f32 %v145_v3, 0.0  ;;  %v147_v24 = vadd.f32 %v381_v16, %v93_v8  ;;  %v178_v25 = vmax.f32 %v146_v9, 0.0 }
  0x1f   :  { %291 = vst [vmem:[%s587_s3 + $0x48] sm:$0xff] %v327_v6  ;;  %v96_v26 = vmul.f32 %v375_v13, %v42_v4  ;;  %v97_v27 = vmul.f32 %v377_v14, %v43_v5  ;;  %v148_v29 = vadd.f32 %v396_v22, %v94_v17  ;;  %v149_v30 = vadd.f32 %v398_v23, %v95_v18 }
  0x20   :  { %292 = vst [vmem:[%s587_s3 + $0x50] sm:$0xff] %v328_v11  ;;  %v329_v28 = vpack.c.bf16 %v177_v12, %v176_v7  ;;  %v98_v31 = vmul.f32 %v392_v20, %v44_v10  ;;  %v179_v32 = vmax.f32 %v147_v24, 0.0  ;;  %v99_v13 = vmul.f32 %v394_v21, %v45_v19 }
  0x21   :  { %v150_v33 = vadd.f32 %v379_v15, %v96_v26  ;;  %v151_v34 = vadd.f32 %v381_v16, %v97_v27  ;;  %v180_v14 = vmax.f32 %v148_v29, 0.0  ;;  %v181_v35 = vmax.f32 %v149_v30, 0.0 }
  0x22   :  { %293 = vst [vmem:[%s587_s3 + $0x58] sm:$0xff] %v329_v28  ;;  %v152_v36 = vadd.f32 %v396_v22, %v98_v31  ;;  %v330_v37 = vpack.c.bf16 %v179_v32, %v178_v25  ;;  %v153_v20 = vadd.f32 %v398_v23, %v99_v13 }
  0x23   :  { %v182_v38 = vmax.f32 %v150_v33, 0.0  ;;  %v183_v39 = vmax.f32 %v151_v34, 0.0  ;;  %v331_v40 = vpack.c.bf16 %v181_v35, %v180_v14 }
  0x24   :  { %v184_v41 = vmax.f32 %v152_v36, 0.0  ;;  %294 = vst [vmem:[%s587_s3 + $0x60] sm:$0xff] %v330_v37  ;;  %v185_v16 = vmax.f32 %v153_v20, 0.0 }
  0x25   :  { %v332_v15 = vpack.c.bf16 %v183_v39, %v182_v38  ;;  %295 = vst [vmem:[%s587_s3 + $0x68] sm:$0xff] %v331_v40 }
  0x26   :  { %v333_v21 = vpack.c.bf16 %v185_v16, %v184_v41 }
  0x27   :  { %296 = vst [vmem:[%s587_s3 + $0x70] sm:$0xff] %v332_v15 }
  0x28   :  { %297 = vst [vmem:[%s587_s3 + $0x78] sm:$0xff] %v333_v21 }

// kernel: generator_forward.26
= control target key start
LH: loop header
LB: loop body
LE: loop exit
PB: predicated region body
PF: predicated region fallthrough
CT: control target
= control target key end

     0   :  { %s1231_s9 = smov 0   ;;  %s1233_s10 = smov 0   ;;  %s1403_s0 = inlined_call_operand.vmem [shape: bf16[2048,16], index: 0, kind: input, shape index: {}]   ;;  %s1404_s1 = inlined_call_operand.vmem [shape: bf16[16,128], index: 1, kind: input, shape index: {}]   ;;  %s1405_s2 = inlined_call_operand.vmem [shape: f32[2048,128], index: 2, kind: output, shape index: {}]  }
   0x1   :  { %s1235_s11 = smov 0  }
   0x2 LB: > { %s24_s12 = sadd.s32 1, %s1210_s10  ;;  %p962_p0 = scmp.ge.s32.totalorder %s1214_s11, 1  ;;  %s1214_s11 = sphi %s1235_s11, %s12_s11   ;;  %s1210_s10 = sphi %s1233_s10, %s1407_s10   ;;  %s1206_s9 = sphi %s1231_s9, %s1406_s9  }
   0x3   : > { %p26_p1 = scmp.ge.s32.totalorder %s24_s12, 4  ;;  %p136_p2 = scmp.lt.s32.totalorder %s1214_s11, 5 }
   0x5   : > { %s1409_s12 = smov (%p26_p1, %s24_s12), 0  ;;  %p137_p3 = pnand %p962_p0, %p136_p2 }
   0x6   : > { %v1159_v0 = vld [vmem:[%s1404_s1] sm:$0xff] (!%p137_p3)   ;;  %s963_s15 = sshll.u32 (!%p137_p3), %s1206_s9, 6  ;;  %vm417_vm0 = vcmask (!%p137_p3), 130048  }
   0x7   : > { %140 = sbr.rel (%p137_p3) target bundleno = 292 (0x124), region = 28  ;;  %p166_p4 = scmp.lt.s32.totalorder (!%p137_p3), %s963_s15, 255  ;;  %1067 = vmatprep.subr.bf16.mxu0 (!%p137_p3), %v1159_v0  ;;  %1133 = vmatprep.subr.bf16.mxu1 (!%p137_p3), %v1159_v0 }
   0x8   : > { %1068 = vmatpush3.bf16.msra.mxu0 (!%p137_p3), %v1159_v0  ;;  %1134 = vmatpush3.bf16.msra.mxu1 (!%p137_p3), %v1159_v0 }
   0xe   : > { %s1411_s15 = smov (!%p166_p4, %s963_s15), 255 }
   0xf   : > { %s964_s16 = sshll.u32 %s1411_s15, 2  ;;  %s966_s20 = sshll.u32 %s1411_s15, 3 }
  0x10   : > { %s1258_s19 = scalar_lea.vmem %s1403_s0, %s964_s16  ;;  %s1328_s23 = scalar_lea.vmem %s1405_s2, %s966_s20 }
  0x11   : > { %v1160_v1 = vld [vmem:[%s1258_s19] sm:$0xff]   ;;  %v1162_v3 = vld [vmem:[%s1258_s19 + $0x8] sm:$0xff]   ;;  %v1164_v5 = vld [vmem:[%s1258_s19 + $0x10] sm:$0xff]  }
  0x12   : > { %v1161_v2 = vld [vmem:[%s1258_s19 + $0x80] sm:$0xff]   ;;  %1069 = vmatprep.mubr.msk.bf16.mxu0 %vm417_vm0, %v1160_v1  ;;  %v1163_v4 = vld [vmem:[%s1258_s19 + $0x88] sm:$0xff]   ;;  %v1165_v6 = vld [vmem:[%s1258_s19 + $0x90] sm:$0xff]  }
  0x13   : > { %1101 = vmatprep.mubr.msk.bf16.mxu1 %vm417_vm0, %v1161_v2  ;;  %1070 = vmatmul.mubr.msk.bf16.vlgmr.msra.gmra.mrb[0].mxu0 %vm417_vm0, %v1162_v3  ;;  %v1166_v7 = vld [vmem:[%s1258_s19 + $0x18] sm:$0xff]   ;;  %v1168_v9 = vld [vmem:[%s1258_s19 + $0x20] sm:$0xff]   ;;  %v1170_v11 = vld [vmem:[%s1258_s19 + $0x28] sm:$0xff]  }
  0x14   : > { %1102 = vmatmul.mubr.msk.bf16.vlgmr.msra.gmra.mrb[0].mxu1 %vm417_vm0, %v1163_v4  ;;  %1073 = vmatprep.mubr.msk.bf16.mxu0 %vm417_vm0, %v1164_v5  ;;  %v1167_v8 = vld [vmem:[%s1258_s19 + $0x98] sm:$0xff]   ;;  %v1169_v10 = vld [vmem:[%s1258_s19 + $0xa0] sm:$0xff]   ;;  %v1171_v12 = vld [vmem:[%s1258_s19 + $0xa8] sm:$0xff]  }
  0x15   : > { %1105 = vmatprep.mubr.msk.bf16.mxu1 %vm417_vm0, %v1165_v6  ;;  %v1172_v13 = vld [vmem:[%s1258_s19 + $0x30] sm:$0xff]   ;;  %v1174_v15 = vld [vmem:[%s1258_s19 + $0x38] sm:$0xff]   ;;  %v1176_v17 = vld [vmem:[%s1258_s19 + $0x40] sm:$0xff]  }
  0x16   : > { %v1173_v14 = vld [vmem:[%s1258_s19 + $0xb0] sm:$0xff]   ;;  %v1175_v16 = vld [vmem:[%s1258_s19 + $0xb8] sm:$0xff]   ;;  %v1177_v18 = vld [vmem:[%s1258_s19 + $0xc0] sm:$0xff]  }
  0x17   : > { %v1178_v19 = vld [vmem:[%s1258_s19 + $0x48] sm:$0xff]   ;;  %v1180_v21 = vld [vmem:[%s1258_s19 + $0x50] sm:$0xff]   ;;  %v1182_v23 = vld [vmem:[%s1258_s19 + $0x58] sm:$0xff]  }
  0x18   : > { %v1179_v20 = vld [vmem:[%s1258_s19 + $0xc8] sm:$0xff]   ;;  %v1181_v22 = vld [vmem:[%s1258_s19 + $0xd0] sm:$0xff]   ;;  %v1183_v24 = vld [vmem:[%s1258_s19 + $0xd8] sm:$0xff]  }
  0x19   : > { %v1184_v25 = vld [vmem:[%s1258_s19 + $0x60] sm:$0xff]   ;;  %v1186_v27 = vld [vmem:[%s1258_s19 + $0x68] sm:$0xff]   ;;  %v1188_v29 = vld [vmem:[%s1258_s19 + $0x70] sm:$0xff]  }
  0x1a   : > { %v1185_v26 = vld [vmem:[%s1258_s19 + $0xe0] sm:$0xff]   ;;  %v1187_v28 = vld [vmem:[%s1258_s19 + $0xe8] sm:$0xff]   ;;  %v1189_v30 = vld [vmem:[%s1258_s19 + $0xf0] sm:$0xff]  }
  0x1b   : > { %1074 = vmatmul.mubr.msk.bf16.gmra.mrb[4].mxu0 %vm417_vm0, %v1166_v7  ;;  %v1190_v31 = vld [vmem:[%s1258_s19 + $0x78] sm:$0xff]  }
  0x1c   : > { %1106 = vmatmul.mubr.msk.bf16.gmra.mrb[4].mxu1 %vm417_vm0, %v1167_v8  ;;  %1077 = vmatprep.mubr.msk.bf16.mxu0 %vm417_vm0, %v1168_v9  ;;  %v1191_v32 = vld [vmem:[%s1258_s19 + $0xf8] sm:$0xff]  }
  0x1d   : > { %1109 = vmatprep.mubr.msk.bf16.mxu1 %vm417_vm0, %v1169_v10 }
  0x23   : > { %1078 = vmatmul.mubr.msk.bf16.gmra.mrb[8].mxu0 %vm417_vm0, %v1170_v11 }
  0x24   : > { %1110 = vmatmul.mubr.msk.bf16.gmra.mrb[8].mxu1 %vm417_vm0, %v1171_v12  ;;  %1081 = vmatprep.mubr.msk.bf16.mxu0 %vm417_vm0, %v1172_v13 }
  0x25   : > { %1113 = vmatprep.mubr.msk.bf16.mxu1 %vm417_vm0, %v1173_v14 }
  0x2b   : > { %1082 = vmatmul.mubr.msk.bf16.gmra.mrb[12].mxu0 %vm417_vm0, %v1174_v15 }
  0x2c   : > { %1114 = vmatmul.mubr.msk.bf16.gmra.mrb[12].mxu1 %vm417_vm0, %v1175_v16  ;;  %1085 = vmatprep.mubr.msk.bf16.mxu0 %vm417_vm0, %v1176_v17 }
  0x2d   : > { %1117 = vmatprep.mubr.msk.bf16.mxu1 %vm417_vm0, %v1177_v18 }
  0x33   : > { %1086 = vmatmul.mubr.msk.bf16.gmra.mrb[16].mxu0 %vm417_vm0, %v1178_v19 }
  0x34   : > { %1118 = vmatmul.mubr.msk.bf16.gmra.mrb[16].mxu1 %vm417_vm0, %v1179_v20  ;;  %1089 = vmatprep.mubr.msk.bf16.mxu0 %vm417_vm0, %v1180_v21 }
  0x35   : > { %1121 = vmatprep.mubr.msk.bf16.mxu1 %vm417_vm0, %v1181_v22 }
  0x3b   : > { %1090 = vmatmul.mubr.msk.bf16.gmra.mrb[20].mxu0 %vm417_vm0, %v1182_v23 }
  0x3c   : > { %1122 = vmatmul.mubr.msk.bf16.gmra.mrb[20].mxu1 %vm417_vm0, %v1183_v24  ;;  %1093 = vmatprep.mubr.msk.bf16.mxu0 %vm417_vm0, %v1184_v25 }
  0x3d   : > { %1125 = vmatprep.mubr.msk.bf16.mxu1 %vm417_vm0, %v1185_v26 }
  0x43   : > { %1094 = vmatmul.mubr.msk.bf16.gmra.mrb[24].mxu0 %vm417_vm0, %v1186_v27 }
  0x44   : > { %1126 = vmatmul.mubr.msk.bf16.gmra.mrb[24].mxu1 %vm417_vm0, %v1187_v28  ;;  %1097 = vmatprep.mubr.msk.bf16.mxu0 %vm417_vm0, %v1188_v29 }
  0x45   : > { %1129 = vmatprep.mubr.msk.bf16.mxu1 %vm417_vm0, %v1189_v30 }
  0x4b   : > { %1098 = vmatmul.mubr.msk.bf16.gmra.mrb[28].mxu0 %vm417_vm0, %v1190_v31 }
  0x4c   : > { %1130 = vmatmul.mubr.msk.bf16.gmra.mrb[28].mxu1 %vm417_vm0, %v1191_v32 }
  0xe6   : > { %v1071_v33 = vpop.f32.mrb[0].mxu0 }
  0xe7   : > { %805 = vst [vmem:[%s1328_s23 + $0x10] sm:$0xff] %v1071_v33  ;;  %v1103_v34 = vpop.f32.mrb[0].mxu1  ;;  %v548_v35 = vpop.f32.mrb[1].mxu0 }
  0xe8   : > { %837 = vst [vmem:[%s1328_s23 + $0x110] sm:$0xff] %v1103_v34  ;;  %803 = vst [vmem:[%s1328_s23] sm:$0xff] %v548_v35  ;;  %v676_v36 = vpop.f32.mrb[1].mxu1  ;;  %v1072_v37 = vpop.f32.mrb[2].mxu0 }
  0xe9   : > { %835 = vst [vmem:[%s1328_s23 + $0x100] sm:$0xff] %v676_v36  ;;  %806 = vst [vmem:[%s1328_s23 + $0x18] sm:$0xff] %v1072_v37  ;;  %v1104_v38 = vpop.f32.mrb[2].mxu1  ;;  %v551_v39 = vpop.f32.mrb[3].mxu0 }
  0xea   : > { %838 = vst [vmem:[%s1328_s23 + $0x118] sm:$0xff] %v1104_v38  ;;  %804 = vst [vmem:[%s1328_s23 + $0x8] sm:$0xff] %v551_v39  ;;  %v679_v40 = vpop.f32.mrb[3].mxu1 }
  0xeb   : > { %836 = vst [vmem:[%s1328_s23 + $0x108] sm:$0xff] %v679_v40 }
  0xee   : > { %v1075_v41 = vpop.f32.mrb[4].mxu0 }
  0xef   : > { %809 = vst [vmem:[%s1328_s23 + $0x30] sm:$0xff] %v1075_v41  ;;  %v1107_v42 = vpop.f32.mrb[4].mxu1  ;;  %v564_v43 = vpop.f32.mrb[5].mxu0 }
  0xf0   : > { %841 = vst [vmem:[%s1328_s23 + $0x130] sm:$0xff] %v1107_v42  ;;  %807 = vst [vmem:[%s1328_s23 + $0x20] sm:$0xff] %v564_v43  ;;  %v692_v44 = vpop.f32.mrb[5].mxu1  ;;  %v1076_v45 = vpop.f32.mrb[6].mxu0 }
  0xf1   : > { %839 = vst [vmem:[%s1328_s23 + $0x120] sm:$0xff] %v692_v44  ;;  %810 = vst [vmem:[%s1328_s23 + $0x38] sm:$0xff] %v1076_v45  ;;  %v1108_v46 = vpop.f32.mrb[6].mxu1  ;;  %v567_v47 = vpop.f32.mrb[7].mxu0 }
  0xf2   : > { %842 = vst [vmem:[%s1328_s23 + $0x138] sm:$0xff] %v1108_v46  ;;  %808 = vst [vmem:[%s1328_s23 + $0x28] sm:$0xff] %v567_v47  ;;  %v695_v48 = vpop.f32.mrb[7].mxu1 }
  0xf3   : > { %840 = vst [vmem:[%s1328_s23 + $0x128] sm:$0xff] %v695_v48 }
  0xf6   : > { %v1079_v49 = vpop.f32.mrb[8].mxu0 }
  0xf7   : > { %813 = vst [vmem:[%s1328_s23 + $0x50] sm:$0xff] %v1079_v49  ;;  %v1111_v50 = vpop.f32.mrb[8].mxu1  ;;  %v580_v51 = vpop.f32.mrb[9].mxu0 }
  0xf8   : > { %845 = vst [vmem:[%s1328_s23 + $0x150] sm:$0xff] %v1111_v50  ;;  %811 = vst [vmem:[%s1328_s23 + $0x40] sm:$0xff] %v580_v51  ;;  %v708_v52 = vpop.f32.mrb[9].mxu1  ;;  %v1080_v53 = vpop.f32.mrb[10].mxu0 }
  0xf9   : > { %843 = vst [vmem:[%s1328_s23 + $0x140] sm:$0xff] %v708_v52  ;;  %814 = vst [vmem:[%s1328_s23 + $0x58] sm:$0xff] %v1080_v53  ;;  %v1112_v54 = vpop.f32.mrb[10].mxu1  ;;  %v583_v55 = vpop.f32.mrb[11].mxu0 }
  0xfa   : > { %846 = vst [vmem:[%s1328_s23 + $0x158] sm:$0xff] %v1112_v54  ;;  %812 = vst [vmem:[%s1328_s23 + $0x48] sm:$0xff] %v583_v55  ;;  %v711_v56 = vpop.f32.mrb[11].mxu1 }
  0xfb   : > { %844 = vst [vmem:[%s1328_s23 + $0x148] sm:$0xff] %v711_v56 }
  0xfe   : > { %v1083_v57 = vpop.f32.mrb[12].mxu0 }
  0xff   : > { %817 = vst [vmem:[%s1328_s23 + $0x70] sm:$0xff] %v1083_v57  ;;  %v1115_v58 = vpop.f32.mrb[12].mxu1  ;;  %v596_v59 = vpop.f32.mrb[13].mxu0 }
 0x100   : > { %849 = vst [vmem:[%s1328_s23 + $0x170] sm:$0xff] %v1115_v58  ;;  %815 = vst [vmem:[%s1328_s23 + $0x60] sm:$0xff] %v596_v59  ;;  %v724_v60 = vpop.f32.mrb[13].mxu1  ;;  %v1084_v61 = vpop.f32.mrb[14].mxu0 }
 0x101   : > { %847 = vst [vmem:[%s1328_s23 + $0x160] sm:$0xff] %v724_v60  ;;  %818 = vst [vmem:[%s1328_s23 + $0x78] sm:$0xff] %v1084_v61  ;;  %v1116_v62 = vpop.f32.mrb[14].mxu1  ;;  %v599_v63 = vpop.f32.mrb[15].mxu0 }
 0x102   : > { %850 = vst [vmem:[%s1328_s23 + $0x178] sm:$0xff] %v1116_v62  ;;  %816 = vst [vmem:[%s1328_s23 + $0x68] sm:$0xff] %v599_v63  ;;  %v727_v0 = vpop.f32.mrb[15].mxu1 }
 0x103   : > { %848 = vst [vmem:[%s1328_s23 + $0x168] sm:$0xff] %v727_v0 }
 0x106   : > { %v1087_v1 = vpop.f32.mrb[16].mxu0 }
 0x107   : > { %821 = vst [vmem:[%s1328_s23 + $0x90] sm:$0xff] %v1087_v1  ;;  %v1119_v2 = vpop.f32.mrb[16].mxu1  ;;  %v612_v3 = vpop.f32.mrb[17].mxu0 }
 0x108   : > { %853 = vst [vmem:[%s1328_s23 + $0x190] sm:$0xff] %v1119_v2  ;;  %819 = vst [vmem:[%s1328_s23 + $0x80] sm:$0xff] %v612_v3  ;;  %v740_v4 = vpop.f32.mrb[17].mxu1  ;;  %v1088_v5 = vpop.f32.mrb[18].mxu0 }
 0x109   : > { %851 = vst [vmem:[%s1328_s23 + $0x180] sm:$0xff] %v740_v4  ;;  %822 = vst [vmem:[%s1328_s23 + $0x98] sm:$0xff] %v1088_v5  ;;  %v1120_v6 = vpop.f32.mrb[18].mxu1  ;;  %v615_v7 = vpop.f32.mrb[19].mxu0 }
 0x10a   : > { %854 = vst [vmem:[%s1328_s23 + $0x198] sm:$0xff] %v1120_v6  ;;  %820 = vst [vmem:[%s1328_s23 + $0x88] sm:$0xff] %v615_v7  ;;  %v743_v8 = vpop.f32.mrb[19].mxu1 }
 0x10b   : > { %852 = vst [vmem:[%s1328_s23 + $0x188] sm:$0xff] %v743_v8 }
 0x10e   : > { %v1091_v9 = vpop.f32.mrb[20].mxu0 }
 0x10f   : > { %825 = vst [vmem:[%s1328_s23 + $0xb0] sm:$0xff] %v1091_v9  ;;  %v1123_v10 = vpop.f32.mrb[20].mxu1  ;;  %v628_v11 = vpop.f32.mrb[21].mxu0 }
 0x110   : > { %857 = vst [vmem:[%s1328_s23 + $0x1b0] sm:$0xff] %v1123_v10  ;;  %823 = vst [vmem:[%s1328_s23 + $0xa0] sm:$0xff] %v628_v11  ;;  %v756_v12 = vpop.f32.mrb[21].mxu1  ;;  %v1092_v13 = vpop.f32.mrb[22].mxu0 }
 0x111   : > { %855 = vst [vmem:[%s1328_s23 + $0x1a0] sm:$0xff] %v756_v12  ;;  %826 = vst [vmem:[%s1328_s23 + $0xb8] sm:$0xff] %v1092_v13  ;;  %v1124_v14 = vpop.f32.mrb[22].mxu1  ;;  %v631_v15 = vpop.f32.mrb[23].mxu0 }
 0x112   : > { %858 = vst [vmem:[%s1328_s23 + $0x1b8] sm:$0xff] %v1124_v14  ;;  %824 = vst [vmem:[%s1328_s23 + $0xa8] sm:$0xff] %v631_v15  ;;  %v759_v16 = vpop.f32.mrb[23].mxu1 }
 0x113   : > { %856 = vst [vmem:[%s1328_s23 + $0x1a8] sm:$0xff] %v759_v16 }
 0x116   : > { %v1095_v17 = vpop.f32.mrb[24].mxu0 }
 0x117   : > { %829 = vst [vmem:[%s1328_s23 + $0xd0] sm:$0xff] %v1095_v17  ;;  %v1127_v18 = vpop.f32.mrb[24].mxu1  ;;  %v644_v19 = vpop.f32.mrb[25].mxu0 }
 0x118   : > { %861 = vst [vmem:[%s1328_s23 + $0x1d0] sm:$0xff] %v1127_v18  ;;  %827 = vst [vmem:[%s1328_s23 + $0xc0] sm:$0xff] %v644_v19  ;;  %v772_v20 = vpop.f32.mrb[25].mxu1  ;;  %v1096_v21 = vpop.f32.mrb[26].mxu0 }
 0x119   : > { %859 = vst [vmem:[%s1328_s23 + $0x1c0] sm:$0xff] %v772_v20  ;;  %830 = vst [vmem:[%s1328_s23 + $0xd8] sm:$0xff] %v1096_v21  ;;  %v1128_v22 = vpop.f32.mrb[26].mxu1  ;;  %v647_v23 = vpop.f32.mrb[27].mxu0 }
 0x11a   : > { %862 = vst [vmem:[%s1328_s23 + $0x1d8] sm:$0xff] %v1128_v22  ;;  %828 = vst [vmem:[%s1328_s23 + $0xc8] sm:$0xff] %v647_v23  ;;  %v775_v24 = vpop.f32.mrb[27].mxu1 }
 0x11b   : > { %860 = vst [vmem:[%s1328_s23 + $0x1c8] sm:$0xff] %v775_v24 }
 0x11e   : > { %v1099_v25 = vpop.f32.mrb[28].mxu0 }
 0x11f   : > { %833 = vst [vmem:[%s1328_s23 + $0xf0] sm:$0xff] %v1099_v25  ;;  %v1131_v26 = vpop.f32.mrb[28].mxu1  ;;  %v660_v27 = vpop.f32.mrb[29].mxu0 }
 0x120   : > { %865 = vst [vmem:[%s1328_s23 + $0x1f0] sm:$0xff] %v1131_v26  ;;  %831 = vst [vmem:[%s1328_s23 + $0xe0] sm:$0xff] %v660_v27  ;;  %v788_v28 = vpop.f32.mrb[29].mxu1  ;;  %v1100_v29 = vpop.f32.mrb[30].mxu0 }
 0x121   : > { %863 = vst [vmem:[%s1328_s23 + $0x1e0] sm:$0xff] %v788_v28  ;;  %834 = vst [vmem:[%s1328_s23 + $0xf8] sm:$0xff] %v1100_v29  ;;  %v1132_v30 = vpop.f32.mrb[30].mxu1  ;;  %v663_v31 = vpop.f32.mrb[31].mxu0 }
 0x122   : > { %866 = vst [vmem:[%s1328_s23 + $0x1f8] sm:$0xff] %v1132_v30  ;;  %832 = vst [vmem:[%s1328_s23 + $0xe8] sm:$0xff] %v663_v31  ;;  %v791_v32 = vpop.f32.mrb[31].mxu1 }
 0x123   : > { %864 = vst [vmem:[%s1328_s23 + $0x1e8] sm:$0xff] %v791_v32 }
 0x124 PF: > { %s12_s11 = sadd.s32 1, %s1214_s11   ;;  %s1406_s9 = smov %s1210_s10 }
 0x125   : > { %p9_p5 = scmp.ge.s32.totalorder %s12_s11, 6   ;;  %s1407_s10 = smov %s1409_s12 }
 0x127   :  { %11 = sbr.rel (!%p9_p5) target bundleno = 2 (0x2), region = 61 }

// kernel: tile.88
= control target key start
LH: loop header
LB: loop body
LE: loop exit
PB: predicated region body
PF: predicated region fallthrough
CT: control target
= control target key end

     0   :  { %s64_s0 = inlined_call_operand.vmem [shape: f32[8], index: 0, kind: input, shape index: {}]   ;;  %s65_s1 = inlined_call_operand.vmem [shape: f32[64,8], index: 1, kind: output, shape index: {}]  }
   0x1   :  { %v4_v0 = vld [vmem:[%s64_s0] ss:$0 sm:$0xff] }
   0x2   :  { %5 = vst [vmem:[%s65_s1] sm:$0xff] %v4_v0  ;;  %20 = vst [vmem:[%s65_s1 + $0x8] sm:$0xff] %v4_v0 }
   0x3   :  { %21 = vst [vmem:[%s65_s1 + $0x10] sm:$0xff] %v4_v0  ;;  %22 = vst [vmem:[%s65_s1 + $0x18] sm:$0xff] %v4_v0 }
   0x4   :  { %23 = vst [vmem:[%s65_s1 + $0x20] sm:$0xff] %v4_v0  ;;  %24 = vst [vmem:[%s65_s1 + $0x28] sm:$0xff] %v4_v0 }
   0x5   :  { %25 = vst [vmem:[%s65_s1 + $0x30] sm:$0xff] %v4_v0  ;;  %26 = vst [vmem:[%s65_s1 + $0x38] sm:$0xff] %v4_v0 }

// kernel: tile.89
= control target key start
LH: loop header
LB: loop body
LE: loop exit
PB: predicated region body
PF: predicated region fallthrough
CT: control target
= control target key end

     0   :  { %vm6_vm0 = vcmask 1043458   ;;  %s11_s6 = smov 3  ;;  %s14_s7 = smov 12  ;;  %vm8_vm1 = vcmask 64512   ;;  %vm20_vm2 = vcmask 1048512   ;;  %vm32_vm3 = vcmask 982912   ;;  %s412_s0 = inlined_call_operand.vmem [shape: f32[64,8], index: 0, kind: input, shape index: {}]   ;;  %s413_s1 = inlined_call_operand.vmem [shape: f32[1,512], index: 1, kind: output, shape index: {}]  }
   0x1   :  { %v215_v0 = vld [vmem:[%s412_s0 + $0xf] ss:$16 sm:%s11_s6]   ;;  %s35_s12 = smov 3  ;;  %s38_s15 = smov 12  ;;  %vm44_vm4 = vcmask 917312   ;;  %vm56_vm5 = vcmask 851712  }
   0x2   :  { %v216_v1 = vld [vmem:[%s412_s0 + $0xf] ss:$16 sm:%s14_s7]   ;;  %v219_v3 = vld [vmem:[%s412_s0 + $0xd] ss:$16 sm:%s35_s12]   ;;  %s263_s16 = smov 120   ;;  %s23_s19 = smov 3 }
   0x3   :  { %v17_v2 = vsel %vm6_vm0, %v216_v1, %v215_v0  ;;  %v220_v4 = vld [vmem:[%s412_s0 + $0xd] ss:$16 sm:%s38_s15]   ;;  %s26_s20 = smov 12  ;;  %v217_v6 = vld [vmem:[%s412_s0 + $0xe] ss:$16 sm:%s23_s19]   ;;  %s47_s25 = smov 3 }
   0x4   :  { %18 = vrot.lane.b32.xlu0 %v17_v2, %s263_s16  ;;  %v41_v5 = vsel %vm6_vm0, %v220_v4, %v219_v3  ;;  %v218_v7 = vld [vmem:[%s412_s0 + $0xe] ss:$16 sm:%s26_s20]   ;;  %s264_s26 = smov 104   ;;  %s50_s29 = smov 12  ;;  %vm68_vm6 = vcmask 786112   ;;  %vm80_vm7 = vcmask 720512  }
   0x5   :  { %42 = vrot.lane.b32.xlu1 %v41_v5, %s264_s26  ;;  %v29_v8 = vsel %vm6_vm0, %v218_v7, %v217_v6  ;;  %v221_v9 = vld [vmem:[%s412_s0 + $0xc] ss:$16 sm:%s47_s25]   ;;  %s59_s3 = smov 3  ;;  %s62_s4 = smov 12  ;;  %vm92_vm8 = vcmask 654912   ;;  %vm104_vm9 = vcmask 589312  }
   0x6   :  { %v222_v10 = vld [vmem:[%s412_s0 + $0xc] ss:$16 sm:%s50_s29]   ;;  %s265_s5 = smov 112   ;;  %v223_v12 = vld [vmem:[%s412_s0 + $0xb] ss:$16 sm:%s59_s3]   ;;  %s71_s8 = smov 3 }
   0x7   :  { %v53_v11 = vsel %vm6_vm0, %v222_v10, %v221_v9  ;;  %v224_v13 = vld [vmem:[%s412_s0 + $0xb] ss:$16 sm:%s62_s4]   ;;  %v225_v14 = vld [vmem:[%s412_s0 + $0xa] ss:$16 sm:%s71_s8]   ;;  %s74_s13 = smov 12  ;;  %s266_s14 = smov 96  }
   0x8   :  { %30 = vrot.lane.b32.xlu0 %v29_v8, %s265_s5  ;;  %v65_v15 = vsel %vm6_vm0, %v224_v13, %v223_v12  ;;  %v226_v16 = vld [vmem:[%s412_s0 + $0xa] ss:$16 sm:%s74_s13]   ;;  %s83_s17 = smov 3  ;;  %s86_s18 = smov 12  ;;  %vm116_vm10 = vcmask 523712   ;;  %vm128_vm11 = vcmask 458112  }
   0x9   :  { %54 = vrot.lane.b32.xlu1 %v53_v11, %s266_s14  ;;  %v77_v17 = vsel %vm6_vm0, %v226_v16, %v225_v14  ;;  %v227_v18 = vld [vmem:[%s412_s0 + $0x9] ss:$16 sm:%s83_s17]   ;;  %s95_s23 = smov 3  ;;  %s267_s24 = smov 88   ;;  %vm140_vm12 = vcmask 392512   ;;  %vm152_vm13 = vcmask 326912  }
   0xa   :  { %v228_v19 = vld [vmem:[%s412_s0 + $0x9] ss:$16 sm:%s86_s18]   ;;  %v229_v20 = vld [vmem:[%s412_s0 + $0x8] ss:$16 sm:%s95_s23]   ;;  %s98_s27 = smov 12  ;;  %s107_s30 = smov 3 }
   0xb   :  { %v89_v21 = vsel %vm6_vm0, %v228_v19, %v227_v18  ;;  %v230_v22 = vld [vmem:[%s412_s0 + $0x8] ss:$16 sm:%s98_s27]   ;;  %s110_s2 = smov 12  ;;  %s268_s3 = smov 80   ;;  %v231_v23 = vld [vmem:[%s412_s0 + $0x7] ss:$16 sm:%s107_s30]  }
   0xc   :  { %66 = vrot.lane.b32.xlu0 %v65_v15, %s267_s24  ;;  %s119_s6 = smov 3  ;;  %v101_v24 = vsel %vm6_vm0, %v230_v22, %v229_v20  ;;  %v232_v25 = vld [vmem:[%s412_s0 + $0x7] ss:$16 sm:%s110_s2]   ;;  %s122_s11 = smov 12  ;;  %vm164_vm14 = vcmask 261312   ;;  %vm176_vm15 = vcmask 195712  }
   0xd   :  { %78 = vrot.lane.b32.xlu1 %v77_v17, %s268_s3  ;;  %v233_v26 = vld [vmem:[%s412_s0 + $0x6] ss:$16 sm:%s119_s6]   ;;  %s269_s12 = smov 72   ;;  %s131_s15 = smov 3  ;;  %v113_v28 = vsel %vm6_vm0, %v232_v25, %v231_v23 }
   0xe   :  { %v234_v27 = vld [vmem:[%s412_s0 + $0x6] ss:$16 sm:%s122_s11]   ;;  %s134_s16 = smov 12  ;;  %v235_v29 = vld [vmem:[%s412_s0 + $0x5] ss:$16 sm:%s131_s15]   ;;  %s143_s19 = smov 3 }
   0xf   :  { %s270_s20 = smov 64   ;;  %v236_v30 = vld [vmem:[%s412_s0 + $0x5] ss:$16 sm:%s134_s16]   ;;  %s146_s23 = smov 12  ;;  %v125_v31 = vsel %vm6_vm0, %v234_v27, %v233_v26  ;;  %v237_v32 = vld [vmem:[%s412_s0 + $0x4] ss:$16 sm:%s143_s19]  }
  0x10   :  { %90 = vrot.lane.b32.xlu0 %v89_v21, %s269_s12  ;;  %s155_s26 = smov 3  ;;  %s158_s27 = smov 12  ;;  %v238_v33 = vld [vmem:[%s412_s0 + $0x4] ss:$16 sm:%s146_s23]   ;;  %v137_v34 = vsel %vm6_vm0, %v236_v30, %v235_v29 }
  0x11   :  { %102 = vrot.lane.b32.xlu1 %v101_v24, %s270_s20  ;;  %s271_s28 = smov 56   ;;  %s167_s2 = smov 3  ;;  %v239_v35 = vld [vmem:[%s412_s0 + $0x3] ss:$16 sm:%s155_s26]   ;;  %v149_v37 = vsel %vm6_vm0, %v238_v33, %v237_v32 }
  0x12   :  { %s170_s5 = smov 12  ;;  %s272_s6 = smov 48   ;;  %v240_v36 = vld [vmem:[%s412_s0 + $0x3] ss:$16 sm:%s158_s27]   ;;  %v241_v38 = vld [vmem:[%s412_s0 + $0x2] ss:$16 sm:%s167_s2]  }
  0x13   :  { %s179_s9 = smov 3  ;;  %v242_v39 = vld [vmem:[%s412_s0 + $0x2] ss:$16 sm:%s170_s5]   ;;  %s182_s14 = smov 12  ;;  %v161_v41 = vsel %vm6_vm0, %v240_v36, %v239_v35 }
  0x14   :  { %114 = vrot.lane.b32.xlu0 %v113_v28, %s271_s28  ;;  %s2_s15 = smov 3  ;;  %s273_s16 = smov 40   ;;  %v243_v42 = vld [vmem:[%s412_s0 + $0x1] ss:$16 sm:%s179_s9]   ;;  %v173_v46 = vsel %vm6_vm0, %v242_v39, %v241_v38 }
  0x15   :  { %126 = vrot.lane.b32.xlu1 %v125_v31, %s272_s6  ;;  %v3_v40 = vld [vmem:[%s412_s0] ss:$16 sm:%s2_s15]   ;;  %s4_s19 = smov 12  ;;  %s274_s24 = smov 32  }
  0x16   :  { %v5_v43 = vld [vmem:[%s412_s0] ss:$16 sm:%s4_s19]   ;;  %v244_v44 = vld [vmem:[%s412_s0 + $0x1] ss:$16 sm:%s182_s14]   ;;  %s275_s0 = smov 24   ;;  %s276_s27 = smov 16  }
  0x17   :  { %v7_v45 = vsel %vm6_vm0, %v5_v43, %v3_v40  ;;  %v185_v47 = vsel %vm6_vm0, %v244_v44, %v243_v42  ;;  %s277_s28 = smov 8   ;;  %vm188_vm0 = vcmask 130112  }
  0x18   :  { %138 = vrot.lane.b32.xlu0 %v137_v34, %s273_s16  ;;  %9 = vst.msk [vmem:[#allocation0] ss:$8 sm:$0xf] %vm8_vm1, %v7_v45  }
  0x19   :  { %150 = vrot.lane.b32.xlu1 %v149_v37, %s274_s24 }
  0x1c   :  { %162 = vrot.lane.b32.xlu0 %v161_v41, %s275_s0 }
  0x1d   :  { %174 = vrot.lane.b32.xlu1 %v173_v46, %s276_s27 }
  0x20   :  { %186 = vrot.lane.b32.xlu0 %v185_v47, %s277_s28 }
  0x76   :  { %v19_v48 = vpop.permute.xlu0 %18  }
  0x77   :  { %21 = vst.msk [vmem:[#allocation0] ss:$8 sm:$0xf] %vm20_vm2, %v19_v48   ;;  %v43_v49 = vpop.permute.xlu1 %42  }
  0x7a   :  { %v31_v50 = vpop.permute.xlu0 %30  }
  0x7b   :  { %33 = vst.msk [vmem:[#allocation0] ss:$8 sm:$0xf] %vm32_vm3, %v31_v50   ;;  %v55_v51 = vpop.permute.xlu1 %54  }
  0x7c   :  { %45 = vst.msk [vmem:[#allocation0] ss:$8 sm:$0xf] %vm44_vm4, %v43_v49  }
  0x7d   :  { %57 = vst.msk [vmem:[#allocation0] ss:$8 sm:$0xf] %vm56_vm5, %v55_v51  }
  0x7e   :  { %v67_v52 = vpop.permute.xlu0 %66  }
  0x7f   :  { %69 = vst.msk [vmem:[#allocation0] ss:$8 sm:$0xf] %vm68_vm6, %v67_v52   ;;  %v79_v53 = vpop.permute.xlu1 %78  }
  0x80   :  { %81 = vst.msk [vmem:[#allocation0] ss:$8 sm:$0xf] %vm80_vm7, %v79_v53  }
  0x82   :  { %v91_v54 = vpop.permute.xlu0 %90  }
  0x83   :  { %93 = vst.msk [vmem:[#allocation0] ss:$8 sm:$0xf] %vm92_vm8, %v91_v54   ;;  %v103_v55 = vpop.permute.xlu1 %102  }
  0x84   :  { %105 = vst.msk [vmem:[#allocation0] ss:$8 sm:$0xf] %vm104_vm9, %v103_v55  }
  0x86   :  { %v115_v56 = vpop.permute.xlu0 %114  }
  0x87   :  { %117 = vst.msk [vmem:[#allocation0] ss:$8 sm:$0xf] %vm116_vm10, %v115_v56   ;;  %v127_v57 = vpop.permute.xlu1 %126  }
  0x88   :  { %129 = vst.msk [vmem:[#allocation0] ss:$8 sm:$0xf] %vm128_vm11, %v127_v57  }
  0x8a   :  { %v139_v58 = vpop.permute.xlu0 %138  }
  0x8b   :  { %141 = vst.msk [vmem:[#allocation0] ss:$8 sm:$0xf] %vm140_vm12, %v139_v58   ;;  %v151_v59 = vpop.permute.xlu1 %150  }
  0x8c   :  { %153 = vst.msk [vmem:[#allocation0] ss:$8 sm:$0xf] %vm152_vm13, %v151_v59  }
  0x8e   :  { %v163_v60 = vpop.permute.xlu0 %162  }
  0x8f   :  { %165 = vst.msk [vmem:[#allocation0] ss:$8 sm:$0xf] %vm164_vm14, %v163_v60   ;;  %v175_v61 = vpop.permute.xlu1 %174  }
  0x90   :  { %177 = vst.msk [vmem:[#allocation0] ss:$8 sm:$0xf] %vm176_vm15, %v175_v61  }
  0x92   :  { %v187_v62 = vpop.permute.xlu0 %186  }
  0x93   :  { %189 = vst.msk [vmem:[#allocation0] ss:$8 sm:$0xf] %vm188_vm0, %v187_v62  }
  0x9a   :  { %v193_v63 = vld [vmem:[#allocation0] sm:$0x1]  ;;  %v197_v0 = vld [vmem:[#allocation0 + $0x8] sm:$0x1]  ;;  %v202_v1 = vld [vmem:[#allocation0 + $0x10] sm:$0x1] }
  0x9b   :  { %195 = vst [vmem:[%s413_s1] sm:$0x1] %v193_v63  ;;  %245 = vst [vmem:[%s413_s1 + $0x1] sm:$0x1] %v197_v0  ;;  %v208_v2 = vld [vmem:[#allocation0 + $0x18] sm:$0x1] }
  0x9c   :  { %246 = vst [vmem:[%s413_s1 + $0x2] sm:$0x1] %v202_v1  ;;  %247 = vst [vmem:[%s413_s1 + $0x3] sm:$0x1] %v208_v2 }

// kernel: generator_forward.27
= control target key start
LH: loop header
LB: loop body
LE: loop exit
PB: predicated region body
PF: predicated region fallthrough
CT: control target
= control target key end

     0   :  { %v80_v0 = vlaneseq  ;;  %s1064_s1 = inlined_call_operand.vmem [shape: f32[1,512], index: 1, kind: input, shape index: {}]   ;;  %s1065_s2 = inlined_call_operand.vmem [shape: f32[1,512], index: 2, kind: input, shape index: {}]   ;;  %s1066_s0 = inlined_call_operand.vmem [shape: f32[128,512], index: 0, kind: input, shape index: {}]   ;;  %s1067_s3 = inlined_call_operand.vmem [shape: f32[128,512], index: 3, kind: output, shape index: {}]  }
   0x1   :  { %v78_v2 = vld [vmem:[%s1064_s1] sm:$0xf]  ;;  %v15_v9 = vld [vmem:[%s1066_s0 + $0x8] sm:$0xff]  ;;  %v16_v15 = vld [vmem:[%s1066_s0 + $0x10] sm:$0xff] }
   0x2   :  { %v81_v1 = vshrl.u32 %v80_v0, 7  ;;  %v164_v3 = vld [vmem:[%s1065_s2] sm:$0xf]  ;;  %v17_v16 = vld [vmem:[%s1066_s0 + $0x18] sm:$0xff]  ;;  %v19_v17 = vld [vmem:[%s1066_s0 + $0x28] sm:$0xff] }
   0x3   :  { %v14_v8 = vld [vmem:[%s1066_s0] sm:$0xff]  ;;  %v20_v22 = vld [vmem:[%s1066_s0 + $0x30] sm:$0xff]  ;;  %v21_v26 = vld [vmem:[%s1066_s0 + $0x38] sm:$0xff] }
   0x4   :  { %v82_v4 = vsub.s32 0, %v81_v1  ;;  %v86_v5 = vsub.s32 1, %v81_v1  ;;  %v90_v6 = vsub.s32 2, %v81_v1  ;;  %v94_v7 = vsub.s32 3, %v81_v1  ;;  %v18_v10 = vld [vmem:[%s1066_s0 + $0x20] sm:$0xff]  ;;  %v23_v34 = vld [vmem:[%s1066_s0 + $0x48] sm:$0xff] }
   0x5   :  { %v22_v30 = vld [vmem:[%s1066_s0 + $0x40] sm:$0xff]  ;;  %v24_v38 = vld [vmem:[%s1066_s0 + $0x50] sm:$0xff]  ;;  %v25_v41 = vld [vmem:[%s1066_s0 + $0x58] sm:$0xff] }
   0x6   :  { %v545_v11 = vrot.slane %v78_v2, %v82_v4  ;;  %v547_v12 = vrot.slane %v164_v3, %v82_v4  ;;  %v549_v13 = vrot.slane %v78_v2, %v86_v5  ;;  %v551_v14 = vrot.slane %v164_v3, %v86_v5  ;;  %v26_v44 = vld [vmem:[%s1066_s0 + $0x60] sm:$0xff]  ;;  %v27_v47 = vld [vmem:[%s1066_s0 + $0x68] sm:$0xff]  ;;  %v28_v50 = vld [vmem:[%s1066_s0 + $0x70] sm:$0xff] }
   0x7   :  { %v562_v18 = vrot.slane %v78_v2, %v90_v6  ;;  %v564_v19 = vrot.slane %v164_v3, %v90_v6  ;;  %v566_v20 = vrot.slane %v78_v2, %v94_v7  ;;  %v568_v21 = vrot.slane %v164_v3, %v94_v7  ;;  %v29_v53 = vld [vmem:[%s1066_s0 + $0x78] sm:$0xff]  ;;  %v30_v56 = vld [vmem:[%s1066_s0 + $0x80] sm:$0xff]  ;;  %v31_v59 = vld [vmem:[%s1066_s0 + $0x88] sm:$0xff] }
   0x8   :  { %v100_v23 = vmul.f32 %v545_v11, %v14_v8  ;;  %v101_v24 = vmul.f32 %v549_v13, %v15_v9  ;;  %v104_v25 = vmul.f32 %v545_v11, %v18_v10  ;;  %v105_v29 = vmul.f32 %v549_v13, %v19_v17  ;;  %v32_v62 = vld [vmem:[%s1066_s0 + $0x90] sm:$0xff]  ;;  %v33_v1 = vld [vmem:[%s1066_s0 + $0x98] sm:$0xff]  ;;  %v34_v4 = vld [vmem:[%s1066_s0 + $0xa0] sm:$0xff] }
   0x9   :  { %v102_v27 = vmul.f32 %v562_v18, %v16_v15  ;;  %v103_v28 = vmul.f32 %v566_v20, %v17_v16  ;;  %v106_v33 = vmul.f32 %v562_v18, %v20_v22  ;;  %v107_v37 = vmul.f32 %v566_v20, %v21_v26  ;;  %v35_v8 = vld [vmem:[%s1066_s0 + $0xa8] sm:$0xff]  ;;  %v36_v16 = vld [vmem:[%s1066_s0 + $0xb0] sm:$0xff] }
   0xa   :  { %v186_v31 = vadd.f32 %v547_v12, %v100_v23  ;;  %v187_v32 = vadd.f32 %v551_v14, %v101_v24  ;;  %v190_v39 = vadd.f32 %v547_v12, %v104_v25  ;;  %v108_v40 = vmul.f32 %v545_v11, %v22_v30  ;;  %v37_v24 = vld [vmem:[%s1066_s0 + $0xb8] sm:$0xff] }
   0xb   :  { %v188_v35 = vadd.f32 %v564_v19, %v102_v27  ;;  %v189_v36 = vadd.f32 %v568_v21, %v103_v28  ;;  %v191_v42 = vadd.f32 %v551_v14, %v105_v29  ;;  %v109_v43 = vmul.f32 %v549_v13, %v23_v34  ;;  %v38_v28 = vld [vmem:[%s1066_s0 + $0xc0] sm:$0xff] }
   0xc   :  { %382 = vtanh.f32 %v186_v31  ;;  %v192_v45 = vadd.f32 %v564_v19, %v106_v33  ;;  %v110_v46 = vmul.f32 %v562_v18, %v24_v38  ;;  %v193_v48 = vadd.f32 %v568_v21, %v107_v37 }
   0xd   :  { %384 = vtanh.f32 %v187_v32  ;;  %v111_v49 = vmul.f32 %v566_v20, %v25_v41  ;;  %v194_v51 = vadd.f32 %v547_v12, %v108_v40  ;;  %v112_v52 = vmul.f32 %v545_v11, %v26_v44  ;;  %v39_v32 = vld [vmem:[%s1066_s0 + $0xc8] sm:$0xff]  ;;  %v41_v40 = vld [vmem:[%s1066_s0 + $0xd8] sm:$0xff]  ;;  %v42_v44 = vld [vmem:[%s1066_s0 + $0xe0] sm:$0xff] }
   0xe   :  { %386 = vtanh.f32 %v188_v35  ;;  %v195_v54 = vadd.f32 %v551_v14, %v109_v43  ;;  %v113_v55 = vmul.f32 %v549_v13, %v27_v47  ;;  %v196_v57 = vadd.f32 %v564_v19, %v110_v46 }
   0xf   :  { %388 = vtanh.f32 %v189_v36  ;;  %v114_v58 = vmul.f32 %v562_v18, %v28_v50  ;;  %v197_v60 = vadd.f32 %v568_v21, %v111_v49  ;;  %v115_v61 = vmul.f32 %v566_v20, %v29_v53  ;;  %v40_v36 = vld [vmem:[%s1066_s0 + $0xd0] sm:$0xff] }
  0x10   :  { %390 = vtanh.f32 %v190_v39  ;;  %v198_v63 = vadd.f32 %v547_v12, %v112_v52  ;;  %v116_v0 = vmul.f32 %v545_v11, %v30_v56  ;;  %v199_v2 = vadd.f32 %v551_v14, %v113_v55  ;;  %v44_v52 = vld [vmem:[%s1066_s0 + $0xf0] sm:$0xff]  ;;  %v45_v56 = vld [vmem:[%s1066_s0 + $0xf8] sm:$0xff] }
  0x11   :  { %392 = vtanh.f32 %v191_v42  ;;  %v117_v3 = vmul.f32 %v549_v13, %v31_v59  ;;  %v200_v6 = vadd.f32 %v564_v19, %v114_v58  ;;  %v118_v7 = vmul.f32 %v562_v18, %v32_v62 }
  0x12   :  { %394 = vtanh.f32 %v192_v45  ;;  %v201_v10 = vadd.f32 %v568_v21, %v115_v61  ;;  %v119_v15 = vmul.f32 %v566_v20, %v33_v1  ;;  %v202_v22 = vadd.f32 %v547_v12, %v116_v0  ;;  %v47_v0 = vld [vmem:[%s1066_s0 + $0x108] sm:$0xff] }
  0x13   :  { %396 = vtanh.f32 %v193_v48  ;;  %v120_v23 = vmul.f32 %v545_v11, %v34_v4  ;;  %v203_v26 = vadd.f32 %v551_v14, %v117_v3  ;;  %v121_v27 = vmul.f32 %v549_v13, %v35_v8  ;;  %v43_v48 = vld [vmem:[%s1066_s0 + $0xe8] sm:$0xff]  ;;  %v48_v4 = vld [vmem:[%s1066_s0 + $0x110] sm:$0xff]  ;;  %v49_v8 = vld [vmem:[%s1066_s0 + $0x118] sm:$0xff] }
  0x14   :  { %398 = vtanh.f32 %v194_v51  ;;  %v204_v30 = vadd.f32 %v564_v19, %v118_v7  ;;  %v122_v31 = vmul.f32 %v562_v18, %v36_v16  ;;  %v205_v34 = vadd.f32 %v568_v21, %v119_v15  ;;  %v50_v16 = vld [vmem:[%s1066_s0 + $0x120] sm:$0xff] }
  0x15   :  { %400 = vtanh.f32 %v195_v54  ;;  %v123_v35 = vmul.f32 %v566_v20, %v37_v24  ;;  %v206_v38 = vadd.f32 %v547_v12, %v120_v23  ;;  %v124_v39 = vmul.f32 %v545_v11, %v38_v28  ;;  %v51_v24 = vld [vmem:[%s1066_s0 + $0x128] sm:$0xff]  ;;  %v52_v28 = vld [vmem:[%s1066_s0 + $0x130] sm:$0xff] }
  0x16   :  { %v383_v5 = vpop.eup %382  ;;  %402 = vtanh.f32 %v196_v57  ;;  %v207_v42 = vadd.f32 %v551_v14, %v121_v27  ;;  %v125_v43 = vmul.f32 %v549_v13, %v39_v32  ;;  %v208_v46 = vadd.f32 %v564_v19, %v122_v31  ;;  %v53_v32 = vld [vmem:[%s1066_s0 + $0x138] sm:$0xff] }
  0x17   :  { %v385_v9 = vpop.eup %384  ;;  %314 = vst [vmem:[%s1067_s3] sm:$0xff] %v383_v5  ;;  %404 = vtanh.f32 %v197_v60  ;;  %v126_v47 = vmul.f32 %v562_v18, %v40_v36  ;;  %v209_v50 = vadd.f32 %v568_v21, %v123_v35  ;;  %v127_v51 = vmul.f32 %v566_v20, %v41_v40  ;;  %v46_v60 = vld [vmem:[%s1066_s0 + $0x100] sm:$0xff]  ;;  %v55_v40 = vld [vmem:[%s1066_s0 + $0x148] sm:$0xff] }
  0x18   :  { %v387_v17 = vpop.eup %386  ;;  %315 = vst [vmem:[%s1067_s3 + $0x8] sm:$0xff] %v385_v9  ;;  %406 = vtanh.f32 %v198_v63  ;;  %v210_v54 = vadd.f32 %v547_v12, %v124_v39  ;;  %v128_v55 = vmul.f32 %v545_v11, %v42_v44  ;;  %v211_v58 = vadd.f32 %v551_v14, %v125_v43  ;;  %v54_v36 = vld [vmem:[%s1066_s0 + $0x140] sm:$0xff]  ;;  %v56_v44 = vld [vmem:[%s1066_s0 + $0x150] sm:$0xff] }
  0x19   :  { %v389_v25 = vpop.eup %388  ;;  %316 = vst [vmem:[%s1067_s3 + $0x10] sm:$0xff] %v387_v17  ;;  %408 = vtanh.f32 %v199_v2  ;;  %v129_v59 = vmul.f32 %v549_v13, %v43_v48  ;;  %v212_v62 = vadd.f32 %v564_v19, %v126_v47  ;;  %v130_v63 = vmul.f32 %v562_v18, %v44_v52  ;;  %v57_v48 = vld [vmem:[%s1066_s0 + $0x158] sm:$0xff]  ;;  %v58_v52 = vld [vmem:[%s1066_s0 + $0x160] sm:$0xff] }
  0x1a   :  { %v391_v29 = vpop.eup %390  ;;  %317 = vst [vmem:[%s1067_s3 + $0x18] sm:$0xff] %v389_v25  ;;  %410 = vtanh.f32 %v200_v6  ;;  %v213_v2 = vadd.f32 %v568_v21, %v127_v51  ;;  %v131_v3 = vmul.f32 %v566_v20, %v45_v56  ;;  %v214_v6 = vadd.f32 %v547_v12, %v128_v55  ;;  %v59_v56 = vld [vmem:[%s1066_s0 + $0x168] sm:$0xff] }
  0x1b   :  { %v393_v33 = vpop.eup %392  ;;  %318 = vst [vmem:[%s1067_s3 + $0x20] sm:$0xff] %v391_v29  ;;  %412 = vtanh.f32 %v201_v10  ;;  %v132_v7 = vmul.f32 %v545_v11, %v46_v60  ;;  %v215_v10 = vadd.f32 %v551_v14, %v129_v59  ;;  %v133_v15 = vmul.f32 %v549_v13, %v47_v0  ;;  %v60_v60 = vld [vmem:[%s1066_s0 + $0x170] sm:$0xff]  ;;  %v61_v0 = vld [vmem:[%s1066_s0 + $0x178] sm:$0xff] }
  0x1c   :  { %v395_v37 = vpop.eup %394  ;;  %319 = vst [vmem:[%s1067_s3 + $0x28] sm:$0xff] %v393_v33  ;;  %414 = vtanh.f32 %v202_v22  ;;  %v216_v22 = vadd.f32 %v564_v19, %v130_v63  ;;  %v134_v23 = vmul.f32 %v562_v18, %v48_v4  ;;  %v135_v27 = vmul.f32 %v566_v20, %v49_v8  ;;  %v62_v4 = vld [vmem:[%s1066_s0 + $0x180] sm:$0xff]  ;;  %v63_v8 = vld [vmem:[%s1066_s0 + $0x188] sm:$0xff] }
  0x1d   :  { %v397_v41 = vpop.eup %396  ;;  %320 = vst [vmem:[%s1067_s3 + $0x30] sm:$0xff] %v395_v37  ;;  %416 = vtanh.f32 %v203_v26  ;;  %v217_v26 = vadd.f32 %v568_v21, %v131_v3  ;;  %v136_v31 = vmul.f32 %v545_v11, %v50_v16  ;;  %v137_v35 = vmul.f32 %v549_v13, %v51_v24  ;;  %v64_v16 = vld [vmem:[%s1066_s0 + $0x190] sm:$0xff]  ;;  %v65_v24 = vld [vmem:[%s1066_s0 + $0x198] sm:$0xff] }
  0x1e   :  { %v399_v45 = vpop.eup %398  ;;  %321 = vst [vmem:[%s1067_s3 + $0x38] sm:$0xff] %v397_v41  ;;  %418 = vtanh.f32 %v204_v30  ;;  %v218_v30 = vadd.f32 %v547_v12, %v132_v7  ;;  %v138_v39 = vmul.f32 %v562_v18, %v52_v28  ;;  %v139_v43 = vmul.f32 %v566_v20, %v53_v32  ;;  %v66_v28 = vld [vmem:[%s1066_s0 + $0x1a0] sm:$0xff]  ;;  %v67_v32 = vld [vmem:[%s1066_s0 + $0x1a8] sm:$0xff] }
  0x1f   :  { %v401_v49 = vpop.eup %400  ;;  %322 = vst [vmem:[%s1067_s3 + $0x40] sm:$0xff] %v399_v45  ;;  %420 = vtanh.f32 %v205_v34  ;;  %v219_v34 = vadd.f32 %v551_v14, %v133_v15  ;;  %v140_v47 = vmul.f32 %v545_v11, %v54_v36  ;;  %v141_v51 = vmul.f32 %v549_v13, %v55_v40  ;;  %v68_v36 = vld [vmem:[%s1066_s0 + $0x1b0] sm:$0xff]  ;;  %v69_v40 = vld [vmem:[%s1066_s0 + $0x1b8] sm:$0xff] }
  0x20   :  { %v403_v53 = vpop.eup %402  ;;  %323 = vst [vmem:[%s1067_s3 + $0x48] sm:$0xff] %v401_v49  ;;  %422 = vtanh.f32 %v206_v38  ;;  %v220_v38 = vadd.f32 %v564_v19, %v134_v23  ;;  %v142_v55 = vmul.f32 %v562_v18, %v56_v44  ;;  %v143_v59 = vmul.f32 %v566_v20, %v57_v48  ;;  %v70_v44 = vld [vmem:[%s1066_s0 + $0x1c0] sm:$0xff]  ;;  %v71_v48 = vld [vmem:[%s1066_s0 + $0x1c8] sm:$0xff] }
  0x21   :  { %v405_v57 = vpop.eup %404  ;;  %324 = vst [vmem:[%s1067_s3 + $0x50] sm:$0xff] %v403_v53  ;;  %424 = vtanh.f32 %v207_v42  ;;  %v221_v42 = vadd.f32 %v568_v21, %v135_v27  ;;  %v144_v63 = vmul.f32 %v545_v11, %v58_v52  ;;  %v145_v3 = vmul.f32 %v549_v13, %v59_v56  ;;  %v72_v52 = vld [vmem:[%s1066_s0 + $0x1d0] sm:$0xff]  ;;  %v73_v56 = vld [vmem:[%s1066_s0 + $0x1d8] sm:$0xff] }
  0x22   :  { %v407_v61 = vpop.eup %406  ;;  %325 = vst [vmem:[%s1067_s3 + $0x58] sm:$0xff] %v405_v57  ;;  %426 = vtanh.f32 %v208_v46  ;;  %v222_v46 = vadd.f32 %v547_v12, %v136_v31  ;;  %v146_v7 = vmul.f32 %v562_v18, %v60_v60  ;;  %v147_v15 = vmul.f32 %v566_v20, %v61_v0  ;;  %v74_v60 = vld [vmem:[%s1066_s0 + $0x1e0] sm:$0xff]  ;;  %v75_v0 = vld [vmem:[%s1066_s0 + $0x1e8] sm:$0xff] }
  0x23   :  { %v409_v1 = vpop.eup %408  ;;  %326 = vst [vmem:[%s1067_s3 + $0x60] sm:$0xff] %v407_v61  ;;  %428 = vtanh.f32 %v209_v50  ;;  %v223_v50 = vadd.f32 %v551_v14, %v137_v35  ;;  %v148_v23 = vmul.f32 %v545_v11, %v62_v4  ;;  %v149_v27 = vmul.f32 %v549_v13, %v63_v8  ;;  %v76_v4 = vld [vmem:[%s1066_s0 + $0x1f0] sm:$0xff]  ;;  %v77_v8 = vld [vmem:[%s1066_s0 + $0x1f8] sm:$0xff] }
  0x24   :  { %v411_v5 = vpop.eup %410  ;;  %327 = vst [vmem:[%s1067_s3 + $0x68] sm:$0xff] %v409_v1  ;;  %430 = vtanh.f32 %v210_v54  ;;  %v224_v54 = vadd.f32 %v564_v19, %v138_v39  ;;  %v150_v31 = vmul.f32 %v562_v18, %v64_v16  ;;  %v151_v35 = vmul.f32 %v566_v20, %v65_v24 }
  0x25   :  { %v413_v9 = vpop.eup %412  ;;  %328 = vst [vmem:[%s1067_s3 + $0x70] sm:$0xff] %v411_v5  ;;  %432 = vtanh.f32 %v211_v58  ;;  %v225_v58 = vadd.f32 %v568_v21, %v139_v43  ;;  %v152_v39 = vmul.f32 %v545_v11, %v66_v28  ;;  %v153_v43 = vmul.f32 %v549_v13, %v67_v32 }
  0x26   :  { %v415_v17 = vpop.eup %414  ;;  %329 = vst [vmem:[%s1067_s3 + $0x78] sm:$0xff] %v413_v9  ;;  %434 = vtanh.f32 %v212_v62  ;;  %v226_v62 = vadd.f32 %v547_v12, %v140_v47  ;;  %v154_v47 = vmul.f32 %v562_v18, %v68_v36 }
  0x27   :  { %v417_v25 = vpop.eup %416  ;;  %330 = vst [vmem:[%s1067_s3 + $0x80] sm:$0xff] %v415_v17  ;;  %436 = vtanh.f32 %v213_v2  ;;  %v227_v2 = vadd.f32 %v551_v14, %v141_v51  ;;  %v155_v51 = vmul.f32 %v566_v20, %v69_v40 }
  0x28   :  { %v419_v29 = vpop.eup %418  ;;  %331 = vst [vmem:[%s1067_s3 + $0x88] sm:$0xff] %v417_v25  ;;  %438 = vtanh.f32 %v214_v6  ;;  %v228_v6 = vadd.f32 %v564_v19, %v142_v55  ;;  %v156_v55 = vmul.f32 %v545_v11, %v70_v44 }
  0x29   :  { %v421_v33 = vpop.eup %420  ;;  %332 = vst [vmem:[%s1067_s3 + $0x90] sm:$0xff] %v419_v29  ;;  %440 = vtanh.f32 %v215_v10  ;;  %v229_v10 = vadd.f32 %v568_v21, %v143_v59  ;;  %v157_v59 = vmul.f32 %v549_v13, %v71_v48 }
  0x2a   :  { %v423_v37 = vpop.eup %422  ;;  %333 = vst [vmem:[%s1067_s3 + $0x98] sm:$0xff] %v421_v33  ;;  %442 = vtanh.f32 %v216_v22  ;;  %v230_v22 = vadd.f32 %v547_v12, %v144_v63  ;;  %v158_v63 = vmul.f32 %v562_v18, %v72_v52 }
  0x2b   :  { %v425_v41 = vpop.eup %424  ;;  %334 = vst [vmem:[%s1067_s3 + $0xa0] sm:$0xff] %v423_v37  ;;  %444 = vtanh.f32 %v217_v26  ;;  %v231_v26 = vadd.f32 %v551_v14, %v145_v3  ;;  %v159_v3 = vmul.f32 %v566_v20, %v73_v56 }
  0x2c   :  { %v427_v45 = vpop.eup %426  ;;  %335 = vst [vmem:[%s1067_s3 + $0xa8] sm:$0xff] %v425_v41  ;;  %446 = vtanh.f32 %v218_v30  ;;  %v232_v30 = vadd.f32 %v564_v19, %v146_v7  ;;  %v160_v7 = vmul.f32 %v545_v11, %v74_v60  ;;  %v244_v11 = vadd.f32 %v564_v19, %v158_v63 }
  0x2d   :  { %v429_v49 = vpop.eup %428  ;;  %336 = vst [vmem:[%s1067_s3 + $0xb0] sm:$0xff] %v427_v45  ;;  %448 = vtanh.f32 %v219_v34  ;;  %v233_v34 = vadd.f32 %v568_v21, %v147_v15  ;;  %v161_v15 = vmul.f32 %v549_v13, %v75_v0  ;;  %v163_v13 = vmul.f32 %v566_v20, %v77_v8 }
  0x2e   :  { %v431_v53 = vpop.eup %430  ;;  %337 = vst [vmem:[%s1067_s3 + $0xb8] sm:$0xff] %v429_v49  ;;  %450 = vtanh.f32 %v220_v38  ;;  %v234_v38 = vadd.f32 %v547_v12, %v148_v23  ;;  %v245_v23 = vadd.f32 %v568_v21, %v159_v3 }
  0x2f   :  { %v433_v57 = vpop.eup %432  ;;  %338 = vst [vmem:[%s1067_s3 + $0xc0] sm:$0xff] %v431_v53  ;;  %452 = vtanh.f32 %v221_v42  ;;  %v235_v42 = vadd.f32 %v551_v14, %v149_v27 }
  0x30   :  { %v435_v61 = vpop.eup %434  ;;  %339 = vst [vmem:[%s1067_s3 + $0xc8] sm:$0xff] %v433_v57  ;;  %454 = vtanh.f32 %v222_v46  ;;  %v236_v46 = vadd.f32 %v564_v19, %v150_v31 }
  0x31   :  { %v437_v1 = vpop.eup %436  ;;  %340 = vst [vmem:[%s1067_s3 + $0xd0] sm:$0xff] %v435_v61  ;;  %456 = vtanh.f32 %v223_v50  ;;  %v237_v50 = vadd.f32 %v568_v21, %v151_v35 }
  0x32   :  { %v439_v5 = vpop.eup %438  ;;  %341 = vst [vmem:[%s1067_s3 + $0xd8] sm:$0xff] %v437_v1  ;;  %458 = vtanh.f32 %v224_v54  ;;  %v238_v54 = vadd.f32 %v547_v12, %v152_v39 }
  0x33   :  { %v441_v9 = vpop.eup %440  ;;  %342 = vst [vmem:[%s1067_s3 + $0xe0] sm:$0xff] %v439_v5  ;;  %460 = vtanh.f32 %v225_v58  ;;  %v239_v58 = vadd.f32 %v551_v14, %v153_v43 }
  0x34   :  { %v443_v17 = vpop.eup %442  ;;  %343 = vst [vmem:[%s1067_s3 + $0xe8] sm:$0xff] %v441_v9  ;;  %462 = vtanh.f32 %v226_v62  ;;  %v240_v62 = vadd.f32 %v564_v19, %v154_v47 }
  0x35   :  { %v445_v25 = vpop.eup %444  ;;  %344 = vst [vmem:[%s1067_s3 + $0xf0] sm:$0xff] %v443_v17  ;;  %464 = vtanh.f32 %v227_v2  ;;  %v241_v2 = vadd.f32 %v568_v21, %v155_v51  ;;  %v162_v17 = vmul.f32 %v562_v18, %v76_v4  ;;  %v247_v18 = vadd.f32 %v551_v14, %v161_v15 }
  0x36   :  { %v447_v29 = vpop.eup %446  ;;  %345 = vst [vmem:[%s1067_s3 + $0xf8] sm:$0xff] %v445_v25  ;;  %466 = vtanh.f32 %v228_v6  ;;  %v242_v6 = vadd.f32 %v547_v12, %v156_v55  ;;  %v246_v25 = vadd.f32 %v547_v12, %v160_v7  ;;  %v249_v12 = vadd.f32 %v568_v21, %v163_v13 }
  0x37   :  { %v449_v33 = vpop.eup %448  ;;  %346 = vst [vmem:[%s1067_s3 + $0x100] sm:$0xff] %v447_v29  ;;  %468 = vtanh.f32 %v229_v10  ;;  %v243_v10 = vadd.f32 %v551_v14, %v157_v59  ;;  %v248_v20 = vadd.f32 %v564_v19, %v162_v17 }
  0x38   :  { %v451_v37 = vpop.eup %450  ;;  %347 = vst [vmem:[%s1067_s3 + $0x108] sm:$0xff] %v449_v33  ;;  %470 = vtanh.f32 %v230_v22 }
  0x39   :  { %v453_v41 = vpop.eup %452  ;;  %348 = vst [vmem:[%s1067_s3 + $0x110] sm:$0xff] %v451_v37  ;;  %472 = vtanh.f32 %v231_v26 }
  0x3a   :  { %v455_v45 = vpop.eup %454  ;;  %349 = vst [vmem:[%s1067_s3 + $0x118] sm:$0xff] %v453_v41  ;;  %474 = vtanh.f32 %v232_v30 }
  0x3b   :  { %v457_v49 = vpop.eup %456  ;;  %350 = vst [vmem:[%s1067_s3 + $0x120] sm:$0xff] %v455_v45  ;;  %476 = vtanh.f32 %v233_v34 }
  0x3c   :  { %v459_v53 = vpop.eup %458  ;;  %351 = vst [vmem:[%s1067_s3 + $0x128] sm:$0xff] %v457_v49  ;;  %478 = vtanh.f32 %v234_v38 }
  0x3d   :  { %v461_v57 = vpop.eup %460  ;;  %352 = vst [vmem:[%s1067_s3 + $0x130] sm:$0xff] %v459_v53  ;;  %480 = vtanh.f32 %v235_v42 }
  0x3e   :  { %v463_v61 = vpop.eup %462  ;;  %353 = vst [vmem:[%s1067_s3 + $0x138] sm:$0xff] %v461_v57  ;;  %482 = vtanh.f32 %v236_v46 }
  0x3f   :  { %v465_v1 = vpop.eup %464  ;;  %354 = vst [vmem:[%s1067_s3 + $0x140] sm:$0xff] %v463_v61  ;;  %484 = vtanh.f32 %v237_v50 }
  0x40   :  { %v467_v5 = vpop.eup %466  ;;  %355 = vst [vmem:[%s1067_s3 + $0x148] sm:$0xff] %v465_v1  ;;  %486 = vtanh.f32 %v238_v54 }
  0x41   :  { %v469_v9 = vpop.eup %468  ;;  %356 = vst [vmem:[%s1067_s3 + $0x150] sm:$0xff] %v467_v5  ;;  %488 = vtanh.f32 %v239_v58 }
  0x42   :  { %v471_v16 = vpop.eup %470  ;;  %357 = vst [vmem:[%s1067_s3 + $0x158] sm:$0xff] %v469_v9  ;;  %490 = vtanh.f32 %v240_v62 }
  0x43   :  { %v473_v22 = vpop.eup %472  ;;  %358 = vst [vmem:[%s1067_s3 + $0x160] sm:$0xff] %v471_v16  ;;  %492 = vtanh.f32 %v241_v2 }
  0x44   :  { %v475_v24 = vpop.eup %474  ;;  %359 = vst [vmem:[%s1067_s3 + $0x168] sm:$0xff] %v473_v22  ;;  %494 = vtanh.f32 %v242_v6 }
  0x45   :  { %v477_v26 = vpop.eup %476  ;;  %360 = vst [vmem:[%s1067_s3 + $0x170] sm:$0xff] %v475_v24  ;;  %496 = vtanh.f32 %v243_v10 }
  0x46   :  { %v479_v27 = vpop.eup %478  ;;  %361 = vst [vmem:[%s1067_s3 + $0x178] sm:$0xff] %v477_v26  ;;  %498 = vtanh.f32 %v244_v11 }
  0x47   :  { %v481_v28 = vpop.eup %480  ;;  %362 = vst [vmem:[%s1067_s3 + $0x180] sm:$0xff] %v479_v27  ;;  %500 = vtanh.f32 %v245_v23 }
  0x48   :  { %v483_v29 = vpop.eup %482  ;;  %363 = vst [vmem:[%s1067_s3 + $0x188] sm:$0xff] %v481_v28  ;;  %502 = vtanh.f32 %v246_v25 }
  0x49   :  { %v485_v14 = vpop.eup %484  ;;  %364 = vst [vmem:[%s1067_s3 + $0x190] sm:$0xff] %v483_v29  ;;  %504 = vtanh.f32 %v247_v18 }
  0x4a   :  { %v487_v19 = vpop.eup %486  ;;  %365 = vst [vmem:[%s1067_s3 + $0x198] sm:$0xff] %v485_v14  ;;  %506 = vtanh.f32 %v248_v20 }
  0x4b   :  { %v489_v30 = vpop.eup %488  ;;  %366 = vst [vmem:[%s1067_s3 + $0x1a0] sm:$0xff] %v487_v19  ;;  %508 = vtanh.f32 %v249_v12 }
  0x4c   :  { %v491_v21 = vpop.eup %490  ;;  %367 = vst [vmem:[%s1067_s3 + $0x1a8] sm:$0xff] %v489_v30 }
  0x4d   :  { %v493_v31 = vpop.eup %492  ;;  %368 = vst [vmem:[%s1067_s3 + $0x1b0] sm:$0xff] %v491_v21 }
  0x4e   :  { %v495_v32 = vpop.eup %494  ;;  %369 = vst [vmem:[%s1067_s3 + $0x1b8] sm:$0xff] %v493_v31 }
  0x4f   :  { %v497_v33 = vpop.eup %496  ;;  %370 = vst [vmem:[%s1067_s3 + $0x1c0] sm:$0xff] %v495_v32 }
  0x50   :  { %v499_v34 = vpop.eup %498  ;;  %371 = vst [vmem:[%s1067_s3 + $0x1c8] sm:$0xff] %v497_v33 }
  0x51   :  { %v501_v35 = vpop.eup %500  ;;  %372 = vst [vmem:[%s1067_s3 + $0x1d0] sm:$0xff] %v499_v34 }
  0x52   :  { %v503_v36 = vpop.eup %502  ;;  %373 = vst [vmem:[%s1067_s3 + $0x1d8] sm:$0xff] %v501_v35 }
  0x53   :  { %v505_v37 = vpop.eup %504  ;;  %374 = vst [vmem:[%s1067_s3 + $0x1e0] sm:$0xff] %v503_v36 }
  0x54   :  { %v507_v38 = vpop.eup %506  ;;  %375 = vst [vmem:[%s1067_s3 + $0x1e8] sm:$0xff] %v505_v37 }
  0x55   :  { %v509_v39 = vpop.eup %508  ;;  %376 = vst [vmem:[%s1067_s3 + $0x1f0] sm:$0xff] %v507_v38 }
  0x56   :  { %377 = vst [vmem:[%s1067_s3 + $0x1f8] sm:$0xff] %v509_v39 }

</bundles_post_ra>
